<compile_context>
chip_gen: v7x
topology: tpu7x:2x2x1
jax: 0.10.0
libtpu: 0.0.40
codegen_flags: <defaults>
</compile_context>

<pallas_src>
import math
import functools

import numpy as np
import jax
import jax.numpy as jnp
from jax.experimental import pallas as pl
from jax.experimental.pallas import tpu as pltpu

LN_EPS = 1e-5


# --------------------------------------------------------------------------- in-kernel helpers

def _layernorm(x, gamma, beta):
    mu = jnp.mean(x, axis=-1, keepdims=True)
    var = jnp.mean(jnp.square(x - mu), axis=-1, keepdims=True)
    return (x - mu) * jax.lax.rsqrt(var + LN_EPS) * gamma + beta


def _gelu(x):
    # tanh-form GELU: tanh runs on the EUP slot instead of ~12 chained VALU ops of the erf
    # rational approximation.  Max drift vs torch's exact-erf nn.GELU() is ~1e-3.
    c = math.sqrt(2.0 / math.pi)
    return 0.5 * x * (1.0 + jnp.tanh(c * (x + 0.044715 * x * x * x)))


def _softmax(x):
    m = jnp.max(x, axis=-1, keepdims=True)
    e = jnp.exp(x - m)
    return e * pl.reciprocal(jnp.sum(e, axis=-1, keepdims=True), approx=True)


def _full_spec(shape):
    return pl.BlockSpec(shape, lambda i: (0,) * len(shape))


def _choose_tm(n, cap=512, min_steps=4):
    """Largest row tile (multiple of 8, <= cap) dividing n while keeping ~min_steps grid steps."""
    target = max(8, min(cap, (max(n, 8) // min_steps) // 8 * 8))
    for tm in range(target, 7, -8):
        if n % tm == 0:
            return tm
    return 8  # caller pads n up to a multiple of 8


def _choose_group(total_units, rows_per_unit, cap_rows=512, min_steps=4):
    """How many images to batch per grid step; each unit contributes rows_per_unit matmul rows."""
    want_steps = min(min_steps, total_units)
    best = 1
    for g in range(1, total_units + 1):
        if total_units % g:
            continue
        if g * rows_per_unit > cap_rows:
            break
        if total_units // g >= want_steps:
            best = g
    return best


# --------------------------------------------------------------------------- Pallas kernels

def _window_attn_kernel(has_mask, *refs):
    if has_mask:
        x_ref, m_ref, g_ref, be_ref, wqkv_ref, bqkv_ref, wp_ref, bp_ref, o_ref = refs
    else:
        x_ref, g_ref, be_ref, wqkv_ref, bqkv_ref, wp_ref, bp_ref, o_ref = refs
        m_ref = None
    x = x_ref[...]                                       # (Wb, S, C) f32, unnormalized (residual)
    Wb, S, C = x.shape
    R = Wb * S
    xn = _layernorm(x.reshape(R, C), g_ref[0], be_ref[0])
    # packed qkv projection (scale already folded into the q columns): one MXU push, one weight DMA
    qkv = jnp.dot(xn.astype(jnp.bfloat16), wqkv_ref[...],
                  preferred_element_type=jnp.float32) + bqkv_ref[0]          # (R, 3C) f32
    q = qkv[:, :C].reshape(Wb, S, C)
    k = qkv[:, C:2 * C].reshape(Wb, S, C)
    v = qkv[:, 2 * C:].reshape(Wb, S, C)
    attn = jnp.einsum("wqd,wkd->wqk", q.astype(jnp.bfloat16), k.astype(jnp.bfloat16),
                      preferred_element_type=jnp.float32)                    # (Wb, S, S)
    if has_mask:
        attn = attn + m_ref[...]
    p = _softmax(attn)
    ctx = jnp.einsum("wqk,wkd->wqd", p.astype(jnp.bfloat16), v.astype(jnp.bfloat16),
                     preferred_element_type=jnp.float32)
    proj = jnp.dot(ctx.reshape(R, C).astype(jnp.bfloat16), wp_ref[...],
                   preferred_element_type=jnp.float32) + bp_ref[0]
    o_ref[...] = x + proj.reshape(Wb, S, C)              # fused residual


def window_attention_pallas(win, mask, p, n_win_per_image):
    """win: (N, S, C) f32 windows (image-major); mask: (nW, S, S) np.float32 or None.
    Returns win + WindowAttention(LN(win)) with the residual fused in-kernel."""
    N, S, C = win.shape
    n_img = N // n_win_per_image
    Gb = _choose_group(n_img, n_win_per_image * S)
    Wb = Gb * n_win_per_image
    has_mask = mask is not None

    args = [win]
    in_specs = [pl.BlockSpec((Wb, S, C), lambda i: (i, 0, 0))]
    if has_mask:
        # trace-time constant, tiled so it covers the Gb images of one grid step; constant
        # block index -> DMA'd once by the pipeline.
        args.append(jnp.asarray(np.tile(mask, (Gb, 1, 1))))
        in_specs.append(pl.BlockSpec((Wb, S, S), lambda i: (0, 0, 0)))
    weights = (p["ln_g"], p["ln_b"], p["wqkv"], p["bqkv"], p["wp"], p["bp"])
    args += list(weights)
    in_specs += [_full_spec(w.shape) for w in weights]

    return pl.pallas_call(
        functools.partial(_window_attn_kernel, has_mask),
        out_shape=jax.ShapeDtypeStruct((N, S, C), jnp.float32),
        grid=(N // Wb,),
        in_specs=in_specs,
        out_specs=pl.BlockSpec((Wb, S, C), lambda i: (i, 0, 0)),
        compiler_params=pltpu.CompilerParams(dimension_semantics=("parallel",)),
    )(*args)


def _cross_attn_kernel(x1_ref, x2_ref, g1_ref, be1_ref, g2_ref, be2_ref,
                       wq_ref, bq_ref, wkv_ref, bkv_ref, wp_ref, bp_ref, o_ref):
    x1 = x1_ref[...]                                     # (Gb, S, C) f32 -- shortcut
    x2 = x2_ref[...]
    Gb, S, C = x1.shape
    R = Gb * S
    a = _layernorm(x1.reshape(R, C), g1_ref[0], be1_ref[0])
    b = _layernorm(x2.reshape(R, C), g2_ref[0], be2_ref[0])
    q = jnp.dot(a.astype(jnp.bfloat16), wq_ref[...],
                preferred_element_type=jnp.float32) + bq_ref[0]              # scale folded
    kv = jnp.dot(b.astype(jnp.bfloat16), wkv_ref[...],
                 preferred_element_type=jnp.float32) + bkv_ref[0]            # (R, 2C)
    q3 = q.reshape(Gb, S, C)
    k3 = kv[:, :C].reshape(Gb, S, C)
    v3 = kv[:, C:].reshape(Gb, S, C)
    # TODO(synk): for very large feature maps (S = H*W in the thousands, v7x 64 MiB VMEM) tile
    # this flash-style with online softmax instead of materializing the full (S, S) scores.
    attn = jnp.einsum("bqd,bkd->bqk", q3.astype(jnp.bfloat16), k3.astype(jnp.bfloat16),
                      preferred_element_type=jnp.float32)
    pr = _softmax(attn)
    ctx = jnp.einsum("bqk,bkd->bqd", pr.astype(jnp.bfloat16), v3.astype(jnp.bfloat16),
                     preferred_element_type=jnp.float32)
    proj = jnp.dot(ctx.reshape(R, C).astype(jnp.bfloat16), wp_ref[...],
                   preferred_element_type=jnp.float32) + bp_ref[0]
    o_ref[...] = x1 + proj.reshape(Gb, S, C)             # fused residual (shortcut = fmap1)


def cross_attention_pallas(x1, x2, p):
    """x1, x2: (B, S, C). Returns x1 + GlobalAttention(LN1(x1), LN2(x2))."""
    B, S, C = x1.shape
    Gb = _choose_group(B, S)
    weights = (p["ln1_g"], p["ln1_b"], p["ln2_g"], p["ln2_b"],
               p["wq"], p["bq"], p["wkv"], p["bkv"], p["wp"], p["bp"])
    in_specs = ([pl.BlockSpec((Gb, S, C), lambda i: (i, 0, 0)),
                 pl.BlockSpec((Gb, S, C), lambda i: (i, 0, 0))]
                + [_full_spec(w.shape) for w in weights])
    return pl.pallas_call(
        _cross_attn_kernel,
        out_shape=jax.ShapeDtypeStruct((B, S, C), jnp.float32),
        grid=(B // Gb,),
        in_specs=in_specs,
        out_specs=pl.BlockSpec((Gb, S, C), lambda i: (i, 0, 0)),
        compiler_params=pltpu.CompilerParams(dimension_semantics=("parallel",)),
    )(x1, x2, *weights)


def _ln_mlp_kernel(has_extra, *refs):
    if has_extra:
        x_ref, e_ref, g_ref, be_ref, w1_ref, b1_ref, w2_ref, b2_ref, o_ref = refs
    else:
        x_ref, g_ref, be_ref, w1_ref, b1_ref, w2_ref, b2_ref, o_ref = refs
        e_ref = None
    x = x_ref[...]                                       # (TM, C) f32
    xn = _layernorm(x, g_ref[0], be_ref[0])
    h = jnp.dot(xn.astype(jnp.bfloat16), w1_ref[...],
                preferred_element_type=jnp.float32) + b1_ref[0]
    h = _gelu(h)
    y = jnp.dot(h.astype(jnp.bfloat16), w2_ref[...],
                preferred_element_type=jnp.float32) + b2_ref[0]
    out = x + y                                          # residual: x + MLP(LN(x))
    if has_extra:
        out = out + e_ref[...]                           # fused outer residual (cross path)
    o_ref[...] = out
    # TODO(synk): lane-dense (128-wide) store relayout skipped for C < 128; kept (TM, C) stores.


def ln_mlp_pallas(x, p, extra=None):
    """x: (N, C) tokens. Returns x + MLP(LN(x)) (+ extra if given)."""
    N, C = x.shape
    TM = _choose_tm(N)
    Npad = -(-N // TM) * TM
    xin = x if Npad == N else jnp.pad(x, ((0, Npad - N), (0, 0)))
    args = [xin]
    in_specs = [pl.BlockSpec((TM, C), lambda i: (i, 0))]
    if extra is not None:
        ein = extra if Npad == N else jnp.pad(extra, ((0, Npad - N), (0, 0)))
        args.append(ein)
        in_specs.append(pl.BlockSpec((TM, C), lambda i: (i, 0)))
    weights = (p["ln_g"], p["ln_b"], p["w1"], p["b1"], p["w2"], p["b2"])
    args += list(weights)
    in_specs += [_full_spec(w.shape) for w in weights]
    out = pl.pallas_call(
        functools.partial(_ln_mlp_kernel, extra is not None),
        out_shape=jax.ShapeDtypeStruct((Npad, C), jnp.float32),
        grid=(Npad // TM,),
        in_specs=in_specs,
        out_specs=pl.BlockSpec((TM, C), lambda i: (i, 0)),
        compiler_params=pltpu.CompilerParams(dimension_semantics=("parallel",)),
    )(*args)
    return out if Npad == N else out[:N]


# --------------------------------------------------------------------------- JAX glue

def window_partition(fmap, window_size):
    B, H, W, C = fmap.shape
    x = fmap.reshape(B, H // window_size[0], window_size[0], W // window_size[1], window_size[1], C)
    x = jnp.transpose(x, (0, 1, 3, 2, 4, 5))
    return x.reshape(B * (H // window_size[0]) * (W // window_size[1]),
                     window_size[0] * window_size[1], C)


def window_reverse(fmap, window_size, H, W):
    Bnw, _, C = fmap.shape
    nW = (H // window_size[0]) * (W // window_size[1])
    B = Bnw // nW
    x = fmap.reshape(B, H // window_size[0], W // window_size[1], window_size[0], window_size[1], C)
    x = jnp.transpose(x, (0, 1, 3, 2, 4, 5))
    return x.reshape(B, H, W, C)


def build_shift_attn_mask(H, W, window_size, shift_size):
    """Shifted-window attn_mask (mask=None path), built purely in numpy at trace time."""
    img = np.zeros((H, W), np.float32)
    h_slices = [slice(0, -window_size[0]), slice(-window_size[0], -shift_size[0]),
                slice(-shift_size[0], None)]
    w_slices = [slice(0, -window_size[1]), slice(-window_size[1], -shift_size[1]),
                slice(-shift_size[1], None)]
    cnt = 0
    for h in h_slices:
        for w in w_slices:
            img[h, w] = cnt
            cnt += 1
    win = img.reshape(H // window_size[0], window_size[0], W // window_size[1], window_size[1])
    win = win.transpose(0, 2, 1, 3).reshape(-1, window_size[0] * window_size[1])   # (nW, S)
    diff = win[:, :, None] - win[:, None, :]
    return np.where(diff != 0, np.float32(-100.0), np.float32(0.0)).astype(np.float32)


def self_transformer_block(fmap, p, window_size, shift_size):
    """SelfTransformerBlcok.forward (mask=None path). fmap: (B, H, W, C)."""
    B, H, W, C = fmap.shape
    nW = (H // window_size[0]) * (W // window_size[1])
    x = fmap  # LN1 is fused into the attention kernel (per-token -> commutes with roll/partition)
    if shift_size is not None:
        x = jnp.roll(x, shift=(-shift_size[0], -shift_size[1]), axis=(1, 2))
        attn_mask = build_shift_attn_mask(H, W, window_size, shift_size)        # (nW, S, S)
    else:
        attn_mask = None                                                        # mask-free kernel
    win = window_partition(x, window_size)                                      # (B*nW, S, C)
    attn_out = window_attention_pallas(win, attn_mask, p["attn"], nW)           # residual fused
    x = window_reverse(attn_out, window_size, H, W)
    if shift_size is not None:
        x = jnp.roll(x, shift=(shift_size[0], shift_size[1]), axis=(1, 2))
    # x == shortcut + attention output (roll/partition commute with the fused residual add)
    tokens = ln_mlp_pallas(x.reshape(B * H * W, C), p["mlp"])                   # + MLP(LN2(.))
    return tokens.reshape(B, H, W, C)


def cross_transformer_block(fmap1, fmap2, p, outer_residual):
    """CrossTransformerBlcok(fmap1, fmap2) + outer_residual (outer residual fused into MLP)."""
    B, H, W, C = fmap1.shape
    S = H * W
    x1 = fmap1.reshape(B, S, C)
    x2 = fmap2.reshape(B, S, C)
    attn_fmap = cross_attention_pallas(x1, x2, p["attn"])                       # x1 + attn (fused)
    out = ln_mlp_pallas(attn_fmap.reshape(B * S, C), p["mlp"],
                        extra=outer_residual.reshape(B * S, C))                 # + MLP(LN3) + outer
    return out.reshape(B, H, W, C)


def basic_layer_forward(fmap1, fmap2, params, window_size):
    """BasicLayer.forward (mask=None). fmap1/fmap2: (B, H, W, C) -> (fmap1, fmap2)."""
    B = fmap1.shape[0]
    fmap = jnp.concatenate([fmap1, fmap2], axis=0)
    for n, blk in enumerate(params["blocks"]):
        shift = None if n % 2 == 0 else (window_size[0] // 2, window_size[1] // 2)
        fmap = self_transformer_block(fmap, blk, window_size, shift)
    fmap1, fmap2 = fmap[:B], fmap[B:]
    if params["cross"] is not None:
        cp = params["cross"]
        fmap2 = cross_transformer_block(fmap2, fmap1, cp, outer_residual=fmap2)
        fmap1 = cross_transformer_block(fmap1, fmap2, cp, outer_residual=fmap1)
    return fmap1, fmap2


# --------------------------------------------------------------------------- parameter init

def _init_linear(key, din, dout):
    w = jax.random.normal(key, (din, dout), jnp.float32) * 0.02
    b = jnp.zeros((1, dout), jnp.float32)
    return w, b


def _init_window_attn(key, dim):
    ks = jax.random.split(key, 4)
    scale = dim ** (-0.5)
    wq, bq = _init_linear(ks[0], dim, dim)
    wk, bk = _init_linear(ks[1], dim, dim)
    wv, bv = _init_linear(ks[2], dim, dim)
    wp, bp = _init_linear(ks[3], dim, dim)
    # Pack q/k/v into one (C, 3C) weight; fold the attention scale into the q columns.
    wqkv = jnp.concatenate([wq * scale, wk, wv], axis=1).astype(jnp.bfloat16)
    bqkv = jnp.concatenate([bq * scale, bk, bv], axis=1)
    return dict(ln_g=jnp.ones((1, dim), jnp.float32), ln_b=jnp.zeros((1, dim), jnp.float32),
                wqkv=wqkv, bqkv=bqkv, wp=wp.astype(jnp.bfloat16), bp=bp)


def _init_cross_attn(key, dim):
    ks = jax.random.split(key, 4)
    scale = dim ** (-0.5)
    wq, bq = _init_linear(ks[0], dim, dim)
    wk, bk = _init_linear(ks[1], dim, dim)
    wv, bv = _init_linear(ks[2], dim, dim)
    wp, bp = _init_linear(ks[3], dim, dim)
    ones = jnp.ones((1, dim), jnp.float32)
    zeros = jnp.zeros((1, dim), jnp.float32)
    return dict(ln1_g=ones, ln1_b=zeros, ln2_g=ones, ln2_b=zeros,
                wq=(wq * scale).astype(jnp.bfloat16), bq=bq * scale,
                wkv=jnp.concatenate([wk, wv], axis=1).astype(jnp.bfloat16),
                bkv=jnp.concatenate([bk, bv], axis=1),
                wp=wp.astype(jnp.bfloat16), bp=bp)


def _init_mlp(key, dim, mlp_scale):
    ks = jax.random.split(key, 2)
    w1, b1 = _init_linear(ks[0], dim, dim * mlp_scale)
    w2, b2 = _init_linear(ks[1], dim * mlp_scale, dim)
    return dict(ln_g=jnp.ones((1, dim), jnp.float32), ln_b=jnp.zeros((1, dim), jnp.float32),
                w1=w1.astype(jnp.bfloat16), b1=b1, w2=w2.astype(jnp.bfloat16), b2=b2)


def init_basic_layer(key, num_layer, dim, mlp_scale, cross):
    assert num_layer % 2 == 0, "The number of Transformer Block must be even!"
    keys = jax.random.split(key, num_layer + 1)
    blocks = []
    for n in range(num_layer):
        bk = jax.random.split(keys[n], 2)
        blocks.append(dict(attn=_init_window_attn(bk[0], dim),
                           mlp=_init_mlp(bk[1], dim, mlp_scale)))
    cross_p = None
    if cross:
        ck = jax.random.split(keys[-1], 2)
        cross_p = dict(attn=_init_cross_attn(ck[0], dim), mlp=_init_mlp(ck[1], dim, mlp_scale))
    return dict(blocks=blocks, cross=cross_p)


# --------------------------------------------------------------------------- main

if __name__ == "__main__":
    B, H, W, C = 2, 8, 8, 32
    num_layer = 2
    mlp_scale = 2
    window_size = (4, 4)

    key = jax.random.PRNGKey(0)
    k_par, k1, k2 = jax.random.split(key, 3)
    params = init_basic_layer(k_par, num_layer, C, mlp_scale, cross=True)

    fmap1 = jax.random.normal(k1, (B, H, W, C), jnp.float32)
    fmap2 = jax.random.normal(k2, (B, H, W, C), jnp.float32)

    fwd = jax.jit(functools.partial(basic_layer_forward, window_size=window_size))
    out1, out2 = fwd(fmap1, fmap2, params)
    jax.block_until_ready((out1, out2))

    assert out1.shape == (B, H, W, C) and out2.shape == (B, H, W, C)
    assert bool(jnp.isfinite(out1).all()) and bool(jnp.isfinite(out2).all())
    print("KERNEL_OK")
</pallas_src>

<mosaic_0001>
module attributes {stable_mosaic.version = 11 : i64} {
  func.func @_window_attn_kernel(%arg0: i32, %arg1: memref<4x16x32xf32, #tpu.memory_space<vmem>>, %arg2: memref<1x32xf32, #tpu.memory_space<vmem>>, %arg3: memref<1x32xf32, #tpu.memory_space<vmem>>, %arg4: memref<32x96xbf16, #tpu.memory_space<vmem>>, %arg5: memref<1x96xf32, #tpu.memory_space<vmem>>, %arg6: memref<32x32xbf16, #tpu.memory_space<vmem>>, %arg7: memref<1x32xf32, #tpu.memory_space<vmem>>, %arg8: memref<4x16x32xf32, #tpu.memory_space<vmem>>) attributes {dimension_semantics = [#tpu.dimension_semantics<parallel>], iteration_bounds = array<i64: 4>, scalar_prefetch = 0 : i64, scratch_operands = 0 : i64, tpu.core_type = #tpu.core_type<tc>, window_params = [{transform_indices = @transform_0, window_bounds = array<i64: 4, 16, 32>}, {pipeline_mode = #tpu.pipeline_mode<synchronous>, transform_indices = @transform_1, window_bounds = array<i64: 1, 32>}, {pipeline_mode = #tpu.pipeline_mode<synchronous>, transform_indices = @transform_2, window_bounds = array<i64: 1, 32>}, {pipeline_mode = #tpu.pipeline_mode<synchronous>, transform_indices = @transform_3, window_bounds = array<i64: 32, 96>}, {pipeline_mode = #tpu.pipeline_mode<synchronous>, transform_indices = @transform_4, window_bounds = array<i64: 1, 96>}, {pipeline_mode = #tpu.pipeline_mode<synchronous>, transform_indices = @transform_5, window_bounds = array<i64: 32, 32>}, {pipeline_mode = #tpu.pipeline_mode<synchronous>, transform_indices = @transform_6, window_bounds = array<i64: 1, 32>}, {transform_indices = @transform_7, window_bounds = array<i64: 4, 16, 32>}]} {
    %c0 = arith.constant 0 : index
    %c0_0 = arith.constant 0 : index
    %c0_1 = arith.constant 0 : index
    %0 = vector.load %arg1[%c0, %c0_0, %c0_1] : memref<4x16x32xf32, #tpu.memory_space<vmem>>, vector<4x16x32xf32>
    %1 = vector.shape_cast %0 : vector<4x16x32xf32> to vector<64x32xf32>
    %c0_2 = arith.constant 0 : index
    %c0_3 = arith.constant 0 : index
    %2 = vector.load %arg2[%c0_2, %c0_3] : memref<1x32xf32, #tpu.memory_space<vmem>>, vector<1x32xf32>
    %3 = vector.shape_cast %2 : vector<1x32xf32> to vector<32xf32>
    %c0_4 = arith.constant 0 : index
    %c0_5 = arith.constant 0 : index
    %4 = vector.load %arg3[%c0_4, %c0_5] : memref<1x32xf32, #tpu.memory_space<vmem>>, vector<1x32xf32>
    %5 = vector.shape_cast %4 : vector<1x32xf32> to vector<32xf32>
    %cst = arith.constant dense<0.000000e+00> : vector<64xf32>
    %6 = vector.multi_reduction <add>, %1, %cst [1] : vector<64x32xf32> to vector<64xf32>
    %7 = vector.shape_cast %6 : vector<64xf32> to vector<64x1xf32>
    %cst_6 = arith.constant 3.200000e+01 : f32
    %8 = vector.broadcast %cst_6 : f32 to vector<64x1xf32>
    %9 = arith.divf %7, %8 : vector<64x1xf32>
    %10 = vector.broadcast %9 : vector<64x1xf32> to vector<64x32xf32>
    %11 = arith.subf %1, %10 : vector<64x32xf32>
    %12 = arith.mulf %11, %11 : vector<64x32xf32>
    %cst_7 = arith.constant dense<0.000000e+00> : vector<64xf32>
    %13 = vector.multi_reduction <add>, %12, %cst_7 [1] : vector<64x32xf32> to vector<64xf32>
    %14 = vector.shape_cast %13 : vector<64xf32> to vector<64x1xf32>
    %cst_8 = arith.constant 3.200000e+01 : f32
    %15 = vector.broadcast %cst_8 : f32 to vector<64x1xf32>
    %16 = arith.divf %14, %15 : vector<64x1xf32>
    %17 = vector.broadcast %9 : vector<64x1xf32> to vector<64x32xf32>
    %18 = arith.subf %1, %17 : vector<64x32xf32>
    %cst_9 = arith.constant 9.99999974E-6 : f32
    %19 = vector.broadcast %cst_9 : f32 to vector<64x1xf32>
    %20 = arith.addf %16, %19 : vector<64x1xf32>
    %21 = math.rsqrt %20 : vector<64x1xf32>
    %22 = vector.broadcast %21 : vector<64x1xf32> to vector<64x32xf32>
    %23 = arith.mulf %18, %22 : vector<64x32xf32>
    %24 = vector.shape_cast %3 : vector<32xf32> to vector<1x32xf32>
    %25 = vector.broadcast %24 : vector<1x32xf32> to vector<64x32xf32>
    %26 = arith.mulf %23, %25 : vector<64x32xf32>
    %27 = vector.shape_cast %5 : vector<32xf32> to vector<1x32xf32>
    %28 = vector.broadcast %27 : vector<1x32xf32> to vector<64x32xf32>
    %29 = arith.addf %26, %28 : vector<64x32xf32>
    %30 = arith.truncf %29 : vector<64x32xf32> to vector<64x32xbf16>
    %c0_10 = arith.constant 0 : index
    %c0_11 = arith.constant 0 : index
    %31 = vector.load %arg4[%c0_10, %c0_11] : memref<32x96xbf16, #tpu.memory_space<vmem>>, vector<32x96xbf16>
    %cst_12 = arith.constant dense<0.000000e+00> : vector<64x96xf32>
    %32 = tpu.matmul %30, %31, %cst_12 {dimension_numbers = #tpu.dot_dimension_numbers<[1], [0], [0], [1], [0, 0, 1, 1], [], []>} : vector<64x32xbf16>, vector<32x96xbf16>, vector<64x96xf32> -> vector<64x96xf32>
    %c0_13 = arith.constant 0 : index
    %c0_14 = arith.constant 0 : index
    %33 = vector.load %arg5[%c0_13, %c0_14] : memref<1x96xf32, #tpu.memory_space<vmem>>, vector<1x96xf32>
    %34 = vector.shape_cast %33 : vector<1x96xf32> to vector<96xf32>
    %35 = vector.shape_cast %34 : vector<96xf32> to vector<1x96xf32>
    %36 = vector.broadcast %35 : vector<1x96xf32> to vector<64x96xf32>
    %37 = arith.addf %32, %36 : vector<64x96xf32>
    %38 = vector.extract_strided_slice %37 {offsets = [0, 0], sizes = [64, 32], strides = [1, 1]} : vector<64x96xf32> to vector<64x32xf32>
    %39 = vector.shape_cast %38 : vector<64x32xf32> to vector<4x16x32xf32>
    %40 = vector.extract_strided_slice %37 {offsets = [0, 32], sizes = [64, 32], strides = [1, 1]} : vector<64x96xf32> to vector<64x32xf32>
    %41 = vector.shape_cast %40 : vector<64x32xf32> to vector<4x16x32xf32>
    %42 = vector.extract_strided_slice %37 {offsets = [0, 64], sizes = [64, 32], strides = [1, 1]} : vector<64x96xf32> to vector<64x32xf32>
    %43 = vector.shape_cast %42 : vector<64x32xf32> to vector<4x16x32xf32>
    %44 = arith.truncf %39 : vector<4x16x32xf32> to vector<4x16x32xbf16>
    %45 = arith.truncf %41 : vector<4x16x32xf32> to vector<4x16x32xbf16>
    "tpu.trace_start"() <{level = 10 : i32, message = "wqd,wkd->wqk"}> : () -> ()
    %cst_15 = arith.constant dense<0.000000e+00> : vector<4x16x16xf32>
    %46 = tpu.matmul %44, %45, %cst_15 {dimension_numbers = #tpu.dot_dimension_numbers<[2], [2], [1], [1], [0, 0, 0, 1, 1, 1], [0], [0]>} : vector<4x16x32xbf16>, vector<4x16x32xbf16>, vector<4x16x16xf32> -> vector<4x16x16xf32>
    "tpu.trace_stop"() : () -> ()
    %cst_16 = arith.constant dense<0xFF800000> : vector<4x16xf32>
    %47 = vector.multi_reduction <maximumf>, %46, %cst_16 [2] : vector<4x16x16xf32> to vector<4x16xf32>
    %48 = vector.shape_cast %47 : vector<4x16xf32> to vector<4x16x1xf32>
    %49 = vector.broadcast %48 : vector<4x16x1xf32> to vector<4x16x16xf32>
    %50 = arith.subf %46, %49 : vector<4x16x16xf32>
    %51 = math.exp %50 : vector<4x16x16xf32>
    %cst_17 = arith.constant dense<0.000000e+00> : vector<4x16xf32>
    %52 = vector.multi_reduction <add>, %51, %cst_17 [2] : vector<4x16x16xf32> to vector<4x16xf32>
    %53 = vector.shape_cast %52 : vector<4x16xf32> to vector<4x16x1xf32>
    %54 = tpu.reciprocal %53 {approx = true} : vector<4x16x1xf32> -> vector<4x16x1xf32>
    %55 = vector.broadcast %54 : vector<4x16x1xf32> to vector<4x16x16xf32>
    %56 = arith.mulf %51, %55 : vector<4x16x16xf32>
    %57 = arith.truncf %56 : vector<4x16x16xf32> to vector<4x16x16xbf16>
    %58 = arith.truncf %43 : vector<4x16x32xf32> to vector<4x16x32xbf16>
    "tpu.trace_start"() <{level = 10 : i32, message = "wqk,wkd->wqd"}> : () -> ()
    %cst_18 = arith.constant dense<0.000000e+00> : vector<4x16x32xf32>
    %59 = tpu.matmul %57, %58, %cst_18 {dimension_numbers = #tpu.dot_dimension_numbers<[2], [1], [1], [2], [0, 0, 0, 1, 1, 2], [0], [0]>} : vector<4x16x16xbf16>, vector<4x16x32xbf16>, vector<4x16x32xf32> -> vector<4x16x32xf32>
    "tpu.trace_stop"() : () -> ()
    %60 = vector.shape_cast %59 : vector<4x16x32xf32> to vector<64x32xf32>
    %61 = arith.truncf %60 : vector<64x32xf32> to vector<64x32xbf16>
    %c0_19 = arith.constant 0 : index
    %c0_20 = arith.constant 0 : index
    %62 = vector.load %arg6[%c0_19, %c0_20] : memref<32x32xbf16, #tpu.memory_space<vmem>>, vector<32x32xbf16>
    %cst_21 = arith.constant dense<0.000000e+00> : vector<64x32xf32>
    %63 = tpu.matmul %61, %62, %cst_21 {dimension_numbers = #tpu.dot_dimension_numbers<[1], [0], [0], [1], [0, 0, 1, 1], [], []>} : vector<64x32xbf16>, vector<32x32xbf16>, vector<64x32xf32> -> vector<64x32xf32>
    %c0_22 = arith.constant 0 : index
    %c0_23 = arith.constant 0 : index
    %64 = vector.load %arg7[%c0_22, %c0_23] : memref<1x32xf32, #tpu.memory_space<vmem>>, vector<1x32xf32>
    %65 = vector.shape_cast %64 : vector<1x32xf32> to vector<32xf32>
    %66 = vector.shape_cast %65 : vector<32xf32> to vector<1x32xf32>
    %67 = vector.broadcast %66 : vector<1x32xf32> to vector<64x32xf32>
    %68 = arith.addf %63, %67 : vector<64x32xf32>
    %69 = vector.shape_cast %68 : vector<64x32xf32> to vector<4x16x32xf32>
    %70 = arith.addf %0, %69 : vector<4x16x32xf32>
    %c0_24 = arith.constant 0 : index
    %c0_25 = arith.constant 0 : index
    %c0_26 = arith.constant 0 : index
    %71 = vector.load %arg8[%c0_24, %c0_25, %c0_26] : memref<4x16x32xf32, #tpu.memory_space<vmem>>, vector<4x16x32xf32>
    tpu.vector_store %arg8[%c0_24, %c0_25, %c0_26], %70 {strides = array<i32>} : memref<4x16x32xf32, #tpu.memory_space<vmem>>, vector<4x16x32xf32>,
    return
  }
  func.func @transform_0(%arg0: i32) -> (i32, i32, i32) {
    %c0_i32 = arith.constant 0 : i32
    %c0_i32_0 = arith.constant 0 : i32
    %c0_i32_1 = arith.constant 0 : i32
    return %arg0, %c0_i32, %c0_i32_0 : i32, i32, i32
  }
  func.func @transform_1(%arg0: i32) -> (i32, i32) {
    %c0_i32 = arith.constant 0 : i32
    %c0_i32_0 = arith.constant 0 : i32
    %c0_i32_1 = arith.constant 0 : i32
    return %c0_i32, %c0_i32_0 : i32, i32
  }
  func.func @transform_2(%arg0: i32) -> (i32, i32) {
    %c0_i32 = arith.constant 0 : i32
    %c0_i32_0 = arith.constant 0 : i32
    %c0_i32_1 = arith.constant 0 : i32
    return %c0_i32, %c0_i32_0 : i32, i32
  }
  func.func @transform_3(%arg0: i32) -> (i32, i32) {
    %c0_i32 = arith.constant 0 : i32
    %c0_i32_0 = arith.constant 0 : i32
    %c0_i32_1 = arith.constant 0 : i32
    return %c0_i32, %c0_i32_0 : i32, i32
  }
  func.func @transform_4(%arg0: i32) -> (i32, i32) {
    %c0_i32 = arith.constant 0 : i32
    %c0_i32_0 = arith.constant 0 : i32
    %c0_i32_1 = arith.constant 0 : i32
    return %c0_i32, %c0_i32_0 : i32, i32
  }
  func.func @transform_5(%arg0: i32) -> (i32, i32) {
    %c0_i32 = arith.constant 0 : i32
    %c0_i32_0 = arith.constant 0 : i32
    %c0_i32_1 = arith.constant 0 : i32
    return %c0_i32, %c0_i32_0 : i32, i32
  }
  func.func @transform_6(%arg0: i32) -> (i32, i32) {
    %c0_i32 = arith.constant 0 : i32
    %c0_i32_0 = arith.constant 0 : i32
    %c0_i32_1 = arith.constant 0 : i32
    return %c0_i32, %c0_i32_0 : i32, i32
  }
  func.func @transform_7(%arg0: i32) -> (i32, i32, i32) {
    %c0_i32 = arith.constant 0 : i32
    %c0_i32_0 = arith.constant 0 : i32
    %c0_i32_1 = arith.constant 0 : i32
    return %arg0, %c0_i32, %c0_i32_0 : i32, i32, i32
  }
}

module attributes {stable_mosaic.version = 11 : i64} {
  func.func @_ln_mlp_kernel(%arg0: i32, %arg1: memref<64x32xf32, #tpu.memory_space<vmem>>, %arg2: memref<1x32xf32, #tpu.memory_space<vmem>>, %arg3: memref<1x32xf32, #tpu.memory_space<vmem>>, %arg4: memref<32x64xbf16, #tpu.memory_space<vmem>>, %arg5: memref<1x64xf32, #tpu.memory_space<vmem>>, %arg6: memref<64x32xbf16, #tpu.memory_space<vmem>>, %arg7: memref<1x32xf32, #tpu.memory_space<vmem>>, %arg8: memref<64x32xf32, #tpu.memory_space<vmem>>) attributes {dimension_semantics = [#tpu.dimension_semantics<parallel>], iteration_bounds = array<i64: 4>, scalar_prefetch = 0 : i64, scratch_operands = 0 : i64, tpu.core_type = #tpu.core_type<tc>, window_params = [{transform_indices = @transform_0, window_bounds = array<i64: 64, 32>}, {pipeline_mode = #tpu.pipeline_mode<synchronous>, transform_indices = @transform_1, window_bounds = array<i64: 1, 32>}, {pipeline_mode = #tpu.pipeline_mode<synchronous>, transform_indices = @transform_2, window_bounds = array<i64: 1, 32>}, {pipeline_mode = #tpu.pipeline_mode<synchronous>, transform_indices = @transform_3, window_bounds = array<i64: 32, 64>}, {pipeline_mode = #tpu.pipeline_mode<synchronous>, transform_indices = @transform_4, window_bounds = array<i64: 1, 64>}, {pipeline_mode = #tpu.pipeline_mode<synchronous>, transform_indices = @transform_5, window_bounds = array<i64: 64, 32>}, {pipeline_mode = #tpu.pipeline_mode<synchronous>, transform_indices = @transform_6, window_bounds = array<i64: 1, 32>}, {transform_indices = @transform_7, window_bounds = array<i64: 64, 32>}]} {
    %c0 = arith.constant 0 : index
    %c0_0 = arith.constant 0 : index
    %0 = vector.load %arg1[%c0, %c0_0] : memref<64x32xf32, #tpu.memory_space<vmem>>, vector<64x32xf32>
    %c0_1 = arith.constant 0 : index
    %c0_2 = arith.constant 0 : index
    %1 = vector.load %arg2[%c0_1, %c0_2] : memref<1x32xf32, #tpu.memory_space<vmem>>, vector<1x32xf32>
    %2 = vector.shape_cast %1 : vector<1x32xf32> to vector<32xf32>
    %c0_3 = arith.constant 0 : index
    %c0_4 = arith.constant 0 : index
    %3 = vector.load %arg3[%c0_3, %c0_4] : memref<1x32xf32, #tpu.memory_space<vmem>>, vector<1x32xf32>
    %4 = vector.shape_cast %3 : vector<1x32xf32> to vector<32xf32>
    %cst = arith.constant dense<0.000000e+00> : vector<64xf32>
    %5 = vector.multi_reduction <add>, %0, %cst [1] : vector<64x32xf32> to vector<64xf32>
    %6 = vector.shape_cast %5 : vector<64xf32> to vector<64x1xf32>
    %cst_5 = arith.constant 3.200000e+01 : f32
    %7 = vector.broadcast %cst_5 : f32 to vector<64x1xf32>
    %8 = arith.divf %6, %7 : vector<64x1xf32>
    %9 = vector.broadcast %8 : vector<64x1xf32> to vector<64x32xf32>
    %10 = arith.subf %0, %9 : vector<64x32xf32>
    %11 = arith.mulf %10, %10 : vector<64x32xf32>
    %cst_6 = arith.constant dense<0.000000e+00> : vector<64xf32>
    %12 = vector.multi_reduction <add>, %11, %cst_6 [1] : vector<64x32xf32> to vector<64xf32>
    %13 = vector.shape_cast %12 : vector<64xf32> to vector<64x1xf32>
    %cst_7 = arith.constant 3.200000e+01 : f32
    %14 = vector.broadcast %cst_7 : f32 to vector<64x1xf32>
    %15 = arith.divf %13, %14 : vector<64x1xf32>
    %16 = vector.broadcast %8 : vector<64x1xf32> to vector<64x32xf32>
    %17 = arith.subf %0, %16 : vector<64x32xf32>
    %cst_8 = arith.constant 9.99999974E-6 : f32
    %18 = vector.broadcast %cst_8 : f32 to vector<64x1xf32>
    %19 = arith.addf %15, %18 : vector<64x1xf32>
    %20 = math.rsqrt %19 : vector<64x1xf32>
    %21 = vector.broadcast %20 : vector<64x1xf32> to vector<64x32xf32>
    %22 = arith.mulf %17, %21 : vector<64x32xf32>
    %23 = vector.shape_cast %2 : vector<32xf32> to vector<1x32xf32>
    %24 = vector.broadcast %23 : vector<1x32xf32> to vector<64x32xf32>
    %25 = arith.mulf %22, %24 : vector<64x32xf32>
    %26 = vector.shape_cast %4 : vector<32xf32> to vector<1x32xf32>
    %27 = vector.broadcast %26 : vector<1x32xf32> to vector<64x32xf32>
    %28 = arith.addf %25, %27 : vector<64x32xf32>
    %29 = arith.truncf %28 : vector<64x32xf32> to vector<64x32xbf16>
    %c0_9 = arith.constant 0 : index
    %c0_10 = arith.constant 0 : index
    %30 = vector.load %arg4[%c0_9, %c0_10] : memref<32x64xbf16, #tpu.memory_space<vmem>>, vector<32x64xbf16>
    %cst_11 = arith.constant dense<0.000000e+00> : vector<64x64xf32>
    %31 = tpu.matmul %29, %30, %cst_11 {dimension_numbers = #tpu.dot_dimension_numbers<[1], [0], [0], [1], [0, 0, 1, 1], [], []>} : vector<64x32xbf16>, vector<32x64xbf16>, vector<64x64xf32> -> vector<64x64xf32>
    %c0_12 = arith.constant 0 : index
    %c0_13 = arith.constant 0 : index
    %32 = vector.load %arg5[%c0_12, %c0_13] : memref<1x64xf32, #tpu.memory_space<vmem>>, vector<1x64xf32>
    %33 = vector.shape_cast %32 : vector<1x64xf32> to vector<64xf32>
    %34 = vector.shape_cast %33 : vector<64xf32> to vector<1x64xf32>
    %35 = vector.broadcast %34 : vector<1x64xf32> to vector<64x64xf32>
    %36 = arith.addf %31, %35 : vector<64x64xf32>
    %cst_14 = arith.constant 5.000000e-01 : f32
    %37 = vector.broadcast %cst_14 : f32 to vector<64x64xf32>
    %38 = arith.mulf %37, %36 : vector<64x64xf32>
    %cst_15 = arith.constant 4.471500e-02 : f32
    %39 = vector.broadcast %cst_15 : f32 to vector<64x64xf32>
    %40 = arith.mulf %39, %36 : vector<64x64xf32>
    %41 = arith.mulf %40, %36 : vector<64x64xf32>
    %42 = arith.mulf %41, %36 : vector<64x64xf32>
    %43 = arith.addf %36, %42 : vector<64x64xf32>
    %cst_16 = arith.constant 0.797884583 : f32
    %44 = vector.broadcast %cst_16 : f32 to vector<64x64xf32>
    %45 = arith.mulf %44, %43 : vector<64x64xf32>
    %46 = math.tanh %45 : vector<64x64xf32>
    %cst_17 = arith.constant 1.000000e+00 : f32
    %47 = vector.broadcast %cst_17 : f32 to vector<64x64xf32>
    %48 = arith.addf %47, %46 : vector<64x64xf32>
    %49 = arith.mulf %38, %48 : vector<64x64xf32>
    %50 = arith.truncf %49 : vector<64x64xf32> to vector<64x64xbf16>
    %c0_18 = arith.constant 0 : index
    %c0_19 = arith.constant 0 : index
    %51 = vector.load %arg6[%c0_18, %c0_19] : memref<64x32xbf16, #tpu.memory_space<vmem>>, vector<64x32xbf16>
    %cst_20 = arith.constant dense<0.000000e+00> : vector<64x32xf32>
    %52 = tpu.matmul %50, %51, %cst_20 {dimension_numbers = #tpu.dot_dimension_numbers<[1], [0], [0], [1], [0, 0, 1, 1], [], []>} : vector<64x64xbf16>, vector<64x32xbf16>, vector<64x32xf32> -> vector<64x32xf32>
    %c0_21 = arith.constant 0 : index
    %c0_22 = arith.constant 0 : index
    %53 = vector.load %arg7[%c0_21, %c0_22] : memref<1x32xf32, #tpu.memory_space<vmem>>, vector<1x32xf32>
    %54 = vector.shape_cast %53 : vector<1x32xf32> to vector<32xf32>
    %55 = vector.shape_cast %54 : vector<32xf32> to vector<1x32xf32>
    %56 = vector.broadcast %55 : vector<1x32xf32> to vector<64x32xf32>
    %57 = arith.addf %52, %56 : vector<64x32xf32>
    %58 = arith.addf %0, %57 : vector<64x32xf32>
    %c0_23 = arith.constant 0 : index
    %c0_24 = arith.constant 0 : index
    %59 = vector.load %arg8[%c0_23, %c0_24] : memref<64x32xf32, #tpu.memory_space<vmem>>, vector<64x32xf32>
    tpu.vector_store %arg8[%c0_23, %c0_24], %58 {strides = array<i32>} : memref<64x32xf32, #tpu.memory_space<vmem>>, vector<64x32xf32>,
    return
  }
  func.func @transform_0(%arg0: i32) -> (i32, i32) {
    %c0_i32 = arith.constant 0 : i32
    %c0_i32_0 = arith.constant 0 : i32
    return %arg0, %c0_i32 : i32, i32
  }
  func.func @transform_1(%arg0: i32) -> (i32, i32) {
    %c0_i32 = arith.constant 0 : i32
    %c0_i32_0 = arith.constant 0 : i32
    %c0_i32_1 = arith.constant 0 : i32
    return %c0_i32, %c0_i32_0 : i32, i32
  }
  func.func @transform_2(%arg0: i32) -> (i32, i32) {
    %c0_i32 = arith.constant 0 : i32
    %c0_i32_0 = arith.constant 0 : i32
    %c0_i32_1 = arith.constant 0 : i32
    return %c0_i32, %c0_i32_0 : i32, i32
  }
  func.func @transform_3(%arg0: i32) -> (i32, i32) {
    %c0_i32 = arith.constant 0 : i32
    %c0_i32_0 = arith.constant 0 : i32
    %c0_i32_1 = arith.constant 0 : i32
    return %c0_i32, %c0_i32_0 : i32, i32
  }
  func.func @transform_4(%arg0: i32) -> (i32, i32) {
    %c0_i32 = arith.constant 0 : i32
    %c0_i32_0 = arith.constant 0 : i32
    %c0_i32_1 = arith.constant 0 : i32
    return %c0_i32, %c0_i32_0 : i32, i32
  }
  func.func @transform_5(%arg0: i32) -> (i32, i32) {
    %c0_i32 = arith.constant 0 : i32
    %c0_i32_0 = arith.constant 0 : i32
    %c0_i32_1 = arith.constant 0 : i32
    return %c0_i32, %c0_i32_0 : i32, i32
  }
  func.func @transform_6(%arg0: i32) -> (i32, i32) {
    %c0_i32 = arith.constant 0 : i32
    %c0_i32_0 = arith.constant 0 : i32
    %c0_i32_1 = arith.constant 0 : i32
    return %c0_i32, %c0_i32_0 : i32, i32
  }
  func.func @transform_7(%arg0: i32) -> (i32, i32) {
    %c0_i32 = arith.constant 0 : i32
    %c0_i32_0 = arith.constant 0 : i32
    return %arg0, %c0_i32 : i32, i32
  }
}

module attributes {stable_mosaic.version = 11 : i64} {
  func.func @_window_attn_kernel(%arg0: i32, %arg1: memref<4x16x32xf32, #tpu.memory_space<vmem>>, %arg2: memref<4x16x16xf32, #tpu.memory_space<vmem>>, %arg3: memref<1x32xf32, #tpu.memory_space<vmem>>, %arg4: memref<1x32xf32, #tpu.memory_space<vmem>>, %arg5: memref<32x96xbf16, #tpu.memory_space<vmem>>, %arg6: memref<1x96xf32, #tpu.memory_space<vmem>>, %arg7: memref<32x32xbf16, #tpu.memory_space<vmem>>, %arg8: memref<1x32xf32, #tpu.memory_space<vmem>>, %arg9: memref<4x16x32xf32, #tpu.memory_space<vmem>>) attributes {dimension_semantics = [#tpu.dimension_semantics<parallel>], iteration_bounds = array<i64: 4>, scalar_prefetch = 0 : i64, scratch_operands = 0 : i64, tpu.core_type = #tpu.core_type<tc>, window_params = [{transform_indices = @transform_0, window_bounds = array<i64: 4, 16, 32>}, {pipeline_mode = #tpu.pipeline_mode<synchronous>, transform_indices = @transform_1, window_bounds = array<i64: 4, 16, 16>}, {pipeline_mode = #tpu.pipeline_mode<synchronous>, transform_indices = @transform_2, window_bounds = array<i64: 1, 32>}, {pipeline_mode = #tpu.pipeline_mode<synchronous>, transform_indices = @transform_3, window_bounds = array<i64: 1, 32>}, {pipeline_mode = #tpu.pipeline_mode<synchronous>, transform_indices = @transform_4, window_bounds = array<i64: 32, 96>}, {pipeline_mode = #tpu.pipeline_mode<synchronous>, transform_indices = @transform_5, window_bounds = array<i64: 1, 96>}, {pipeline_mode = #tpu.pipeline_mode<synchronous>, transform_indices = @transform_6, window_bounds = array<i64: 32, 32>}, {pipeline_mode = #tpu.pipeline_mode<synchronous>, transform_indices = @transform_7, window_bounds = array<i64: 1, 32>}, {transform_indices = @transform_8, window_bounds = array<i64: 4, 16, 32>}]} {
    %c0 = arith.constant 0 : index
    %c0_0 = arith.constant 0 : index
    %c0_1 = arith.constant 0 : index
    %0 = vector.load %arg1[%c0, %c0_0, %c0_1] : memref<4x16x32xf32, #tpu.memory_space<vmem>>, vector<4x16x32xf32>
    %1 = vector.shape_cast %0 : vector<4x16x32xf32> to vector<64x32xf32>
    %c0_2 = arith.constant 0 : index
    %c0_3 = arith.constant 0 : index
    %2 = vector.load %arg3[%c0_2, %c0_3] : memref<1x32xf32, #tpu.memory_space<vmem>>, vector<1x32xf32>
    %3 = vector.shape_cast %2 : vector<1x32xf32> to vector<32xf32>
    %c0_4 = arith.constant 0 : index
    %c0_5 = arith.constant 0 : index
    %4 = vector.load %arg4[%c0_4, %c0_5] : memref<1x32xf32, #tpu.memory_space<vmem>>, vector<1x32xf32>
    %5 = vector.shape_cast %4 : vector<1x32xf32> to vector<32xf32>
    %cst = arith.constant dense<0.000000e+00> : vector<64xf32>
    %6 = vector.multi_reduction <add>, %1, %cst [1] : vector<64x32xf32> to vector<64xf32>
    %7 = vector.shape_cast %6 : vector<64xf32> to vector<64x1xf32>
    %cst_6 = arith.constant 3.200000e+01 : f32
    %8 = vector.broadcast %cst_6 : f32 to vector<64x1xf32>
    %9 = arith.divf %7, %8 : vector<64x1xf32>
    %10 = vector.broadcast %9 : vector<64x1xf32> to vector<64x32xf32>
    %11 = arith.subf %1, %10 : vector<64x32xf32>
    %12 = arith.mulf %11, %11 : vector<64x32xf32>
    %cst_7 = arith.constant dense<0.000000e+00> : vector<64xf32>
    %13 = vector.multi_reduction <add>, %12, %cst_7 [1] : vector<64x32xf32> to vector<64xf32>
    %14 = vector.shape_cast %13 : vector<64xf32> to vector<64x1xf32>
    %cst_8 = arith.constant 3.200000e+01 : f32
    %15 = vector.broadcast %cst_8 : f32 to vector<64x1xf32>
    %16 = arith.divf %14, %15 : vector<64x1xf32>
    %17 = vector.broadcast %9 : vector<64x1xf32> to vector<64x32xf32>
    %18 = arith.subf %1, %17 : vector<64x32xf32>
    %cst_9 = arith.constant 9.99999974E-6 : f32
    %19 = vector.broadcast %cst_9 : f32 to vector<64x1xf32>
    %20 = arith.addf %16, %19 : vector<64x1xf32>
    %21 = math.rsqrt %20 : vector<64x1xf32>
    %22 = vector.broadcast %21 : vector<64x1xf32> to vector<64x32xf32>
    %23 = arith.mulf %18, %22 : vector<64x32xf32>
    %24 = vector.shape_cast %3 : vector<32xf32> to vector<1x32xf32>
    %25 = vector.broadcast %24 : vector<1x32xf32> to vector<64x32xf32>
    %26 = arith.mulf %23, %25 : vector<64x32xf32>
    %27 = vector.shape_cast %5 : vector<32xf32> to vector<1x32xf32>
    %28 = vector.broadcast %27 : vector<1x32xf32> to vector<64x32xf32>
    %29 = arith.addf %26, %28 : vector<64x32xf32>
    %30 = arith.truncf %29 : vector<64x32xf32> to vector<64x32xbf16>
    %c0_10 = arith.constant 0 : index
    %c0_11 = arith.constant 0 : index
    %31 = vector.load %arg5[%c0_10, %c0_11] : memref<32x96xbf16, #tpu.memory_space<vmem>>, vector<32x96xbf16>
    %cst_12 = arith.constant dense<0.000000e+00> : vector<64x96xf32>
    %32 = tpu.matmul %30, %31, %cst_12 {dimension_numbers = #tpu.dot_dimension_numbers<[1], [0], [0], [1], [0, 0, 1, 1], [], []>} : vector<64x32xbf16>, vector<32x96xbf16>, vector<64x96xf32> -> vector<64x96xf32>
    %c0_13 = arith.constant 0 : index
    %c0_14 = arith.constant 0 : index
    %33 = vector.load %arg6[%c0_13, %c0_14] : memref<1x96xf32, #tpu.memory_space<vmem>>, vector<1x96xf32>
    %34 = vector.shape_cast %33 : vector<1x96xf32> to vector<96xf32>
    %35 = vector.shape_cast %34 : vector<96xf32> to vector<1x96xf32>
    %36 = vector.broadcast %35 : vector<1x96xf32> to vector<64x96xf32>
    %37 = arith.addf %32, %36 : vector<64x96xf32>
    %38 = vector.extract_strided_slice %37 {offsets = [0, 0], sizes = [64, 32], strides = [1, 1]} : vector<64x96xf32> to vector<64x32xf32>
    %39 = vector.shape_cast %38 : vector<64x32xf32> to vector<4x16x32xf32>
    %40 = vector.extract_strided_slice %37 {offsets = [0, 32], sizes = [64, 32], strides = [1, 1]} : vector<64x96xf32> to vector<64x32xf32>
    %41 = vector.shape_cast %40 : vector<64x32xf32> to vector<4x16x32xf32>
    %42 = vector.extract_strided_slice %37 {offsets = [0, 64], sizes = [64, 32], strides = [1, 1]} : vector<64x96xf32> to vector<64x32xf32>
    %43 = vector.shape_cast %42 : vector<64x32xf32> to vector<4x16x32xf32>
    %44 = arith.truncf %39 : vector<4x16x32xf32> to vector<4x16x32xbf16>
    %45 = arith.truncf %41 : vector<4x16x32xf32> to vector<4x16x32xbf16>
    "tpu.trace_start"() <{level = 10 : i32, message = "wqd,wkd->wqk"}> : () -> ()
    %cst_15 = arith.constant dense<0.000000e+00> : vector<4x16x16xf32>
    %46 = tpu.matmul %44, %45, %cst_15 {dimension_numbers = #tpu.dot_dimension_numbers<[2], [2], [1], [1], [0, 0, 0, 1, 1, 1], [0], [0]>} : vector<4x16x32xbf16>, vector<4x16x32xbf16>, vector<4x16x16xf32> -> vector<4x16x16xf32>
    "tpu.trace_stop"() : () -> ()
    %c0_16 = arith.constant 0 : index
    %c0_17 = arith.constant 0 : index
    %c0_18 = arith.constant 0 : index
    %47 = vector.load %arg2[%c0_16, %c0_17, %c0_18] : memref<4x16x16xf32, #tpu.memory_space<vmem>>, vector<4x16x16xf32>
    %48 = arith.addf %46, %47 : vector<4x16x16xf32>
    %cst_19 = arith.constant dense<0xFF800000> : vector<4x16xf32>
    %49 = vector.multi_reduction <maximumf>, %48, %cst_19 [2] : vector<4x16x16xf32> to vector<4x16xf32>
    %50 = vector.shape_cast %49 : vector<4x16xf32> to vector<4x16x1xf32>
    %51 = vector.broadcast %50 : vector<4x16x1xf32> to vector<4x16x16xf32>
    %52 = arith.subf %48, %51 : vector<4x16x16xf32>
    %53 = math.exp %52 : vector<4x16x16xf32>
    %cst_20 = arith.constant dense<0.000000e+00> : vector<4x16xf32>
    %54 = vector.multi_reduction <add>, %53, %cst_20 [2] : vector<4x16x16xf32> to vector<4x16xf32>
    %55 = vector.shape_cast %54 : vector<4x16xf32> to vector<4x16x1xf32>
    %56 = tpu.reciprocal %55 {approx = true} : vector<4x16x1xf32> -> vector<4x16x1xf32>
    %57 = vector.broadcast %56 : vector<4x16x1xf32> to vector<4x16x16xf32>
    %58 = arith.mulf %53, %57 : vector<4x16x16xf32>
    %59 = arith.truncf %58 : vector<4x16x16xf32> to vector<4x16x16xbf16>
    %60 = arith.truncf %43 : vector<4x16x32xf32> to vector<4x16x32xbf16>
    "tpu.trace_start"() <{level = 10 : i32, message = "wqk,wkd->wqd"}> : () -> ()
    %cst_21 = arith.constant dense<0.000000e+00> : vector<4x16x32xf32>
    %61 = tpu.matmul %59, %60, %cst_21 {dimension_numbers = #tpu.dot_dimension_numbers<[2], [1], [1], [2], [0, 0, 0, 1, 1, 2], [0], [0]>} : vector<4x16x16xbf16>, vector<4x16x32xbf16>, vector<4x16x32xf32> -> vector<4x16x32xf32>
    "tpu.trace_stop"() : () -> ()
    %62 = vector.shape_cast %61 : vector<4x16x32xf32> to vector<64x32xf32>
    %63 = arith.truncf %62 : vector<64x32xf32> to vector<64x32xbf16>
    %c0_22 = arith.constant 0 : index
    %c0_23 = arith.constant 0 : index
    %64 = vector.load %arg7[%c0_22, %c0_23] : memref<32x32xbf16, #tpu.memory_space<vmem>>, vector<32x32xbf16>
    %cst_24 = arith.constant dense<0.000000e+00> : vector<64x32xf32>
    %65 = tpu.matmul %63, %64, %cst_24 {dimension_numbers = #tpu.dot_dimension_numbers<[1], [0], [0], [1], [0, 0, 1, 1], [], []>} : vector<64x32xbf16>, vector<32x32xbf16>, vector<64x32xf32> -> vector<64x32xf32>
    %c0_25 = arith.constant 0 : index
    %c0_26 = arith.constant 0 : index
    %66 = vector.load %arg8[%c0_25, %c0_26] : memref<1x32xf32, #tpu.memory_space<vmem>>, vector<1x32xf32>
    %67 = vector.shape_cast %66 : vector<1x32xf32> to vector<32xf32>
    %68 = vector.shape_cast %67 : vector<32xf32> to vector<1x32xf32>
    %69 = vector.broadcast %68 : vector<1x32xf32> to vector<64x32xf32>
    %70 = arith.addf %65, %69 : vector<64x32xf32>
    %71 = vector.shape_cast %70 : vector<64x32xf32> to vector<4x16x32xf32>
    %72 = arith.addf %0, %71 : vector<4x16x32xf32>
    %c0_27 = arith.constant 0 : index
    %c0_28 = arith.constant 0 : index
    %c0_29 = arith.constant 0 : index
    %73 = vector.load %arg9[%c0_27, %c0_28, %c0_29] : memref<4x16x32xf32, #tpu.memory_space<vmem>>, vector<4x16x32xf32>
    tpu.vector_store %arg9[%c0_27, %c0_28, %c0_29], %72 {strides = array<i32>} : memref<4x16x32xf32, #tpu.memory_space<vmem>>, vector<4x16x32xf32>,
    return
  }
  func.func @transform_0(%arg0: i32) -> (i32, i32, i32) {
    %c0_i32 = arith.constant 0 : i32
    %c0_i32_0 = arith.constant 0 : i32
    %c0_i32_1 = arith.constant 0 : i32
    return %arg0, %c0_i32, %c0_i32_0 : i32, i32, i32
  }
  func.func @transform_1(%arg0: i32) -> (i32, i32, i32) {
    %c0_i32 = arith.constant 0 : i32
    %c0_i32_0 = arith.constant 0 : i32
    %c0_i32_1 = arith.constant 0 : i32
    %c0_i32_2 = arith.constant 0 : i32
    return %c0_i32, %c0_i32_0, %c0_i32_1 : i32, i32, i32
  }
  func.func @transform_2(%arg0: i32) -> (i32, i32) {
    %c0_i32 = arith.constant 0 : i32
    %c0_i32_0 = arith.constant 0 : i32
    %c0_i32_1 = arith.constant 0 : i32
    return %c0_i32, %c0_i32_0 : i32, i32
  }
  func.func @transform_3(%arg0: i32) -> (i32, i32) {
    %c0_i32 = arith.constant 0 : i32
    %c0_i32_0 = arith.constant 0 : i32
    %c0_i32_1 = arith.constant 0 : i32
    return %c0_i32, %c0_i32_0 : i32, i32
  }
  func.func @transform_4(%arg0: i32) -> (i32, i32) {
    %c0_i32 = arith.constant 0 : i32
    %c0_i32_0 = arith.constant 0 : i32
    %c0_i32_1 = arith.constant 0 : i32
    return %c0_i32, %c0_i32_0 : i32, i32
  }
  func.func @transform_5(%arg0: i32) -> (i32, i32) {
    %c0_i32 = arith.constant 0 : i32
    %c0_i32_0 = arith.constant 0 : i32
    %c0_i32_1 = arith.constant 0 : i32
    return %c0_i32, %c0_i32_0 : i32, i32
  }
  func.func @transform_6(%arg0: i32) -> (i32, i32) {
    %c0_i32 = arith.constant 0 : i32
    %c0_i32_0 = arith.constant 0 : i32
    %c0_i32_1 = arith.constant 0 : i32
    return %c0_i32, %c0_i32_0 : i32, i32
  }
  func.func @transform_7(%arg0: i32) -> (i32, i32) {
    %c0_i32 = arith.constant 0 : i32
    %c0_i32_0 = arith.constant 0 : i32
    %c0_i32_1 = arith.constant 0 : i32
    return %c0_i32, %c0_i32_0 : i32, i32
  }
  func.func @transform_8(%arg0: i32) -> (i32, i32, i32) {
    %c0_i32 = arith.constant 0 : i32
    %c0_i32_0 = arith.constant 0 : i32
    %c0_i32_1 = arith.constant 0 : i32
    return %arg0, %c0_i32, %c0_i32_0 : i32, i32, i32
  }
}

module attributes {stable_mosaic.version = 11 : i64} {
  func.func @_ln_mlp_kernel(%arg0: i32, %arg1: memref<32x32xf32, #tpu.memory_space<vmem>>, %arg2: memref<32x32xf32, #tpu.memory_space<vmem>>, %arg3: memref<1x32xf32, #tpu.memory_space<vmem>>, %arg4: memref<1x32xf32, #tpu.memory_space<vmem>>, %arg5: memref<32x64xbf16, #tpu.memory_space<vmem>>, %arg6: memref<1x64xf32, #tpu.memory_space<vmem>>, %arg7: memref<64x32xbf16, #tpu.memory_space<vmem>>, %arg8: memref<1x32xf32, #tpu.memory_space<vmem>>, %arg9: memref<32x32xf32, #tpu.memory_space<vmem>>) attributes {dimension_semantics = [#tpu.dimension_semantics<parallel>], iteration_bounds = array<i64: 4>, scalar_prefetch = 0 : i64, scratch_operands = 0 : i64, tpu.core_type = #tpu.core_type<tc>, window_params = [{transform_indices = @transform_0, window_bounds = array<i64: 32, 32>}, {transform_indices = @transform_1, window_bounds = array<i64: 32, 32>}, {pipeline_mode = #tpu.pipeline_mode<synchronous>, transform_indices = @transform_2, window_bounds = array<i64: 1, 32>}, {pipeline_mode = #tpu.pipeline_mode<synchronous>, transform_indices = @transform_3, window_bounds = array<i64: 1, 32>}, {pipeline_mode = #tpu.pipeline_mode<synchronous>, transform_indices = @transform_4, window_bounds = array<i64: 32, 64>}, {pipeline_mode = #tpu.pipeline_mode<synchronous>, transform_indices = @transform_5, window_bounds = array<i64: 1, 64>}, {pipeline_mode = #tpu.pipeline_mode<synchronous>, transform_indices = @transform_6, window_bounds = array<i64: 64, 32>}, {pipeline_mode = #tpu.pipeline_mode<synchronous>, transform_indices = @transform_7, window_bounds = array<i64: 1, 32>}, {transform_indices = @transform_8, window_bounds = array<i64: 32, 32>}]} {
    %c0 = arith.constant 0 : index
    %c0_0 = arith.constant 0 : index
    %0 = vector.load %arg1[%c0, %c0_0] : memref<32x32xf32, #tpu.memory_space<vmem>>, vector<32x32xf32>
    %c0_1 = arith.constant 0 : index
    %c0_2 = arith.constant 0 : index
    %1 = vector.load %arg3[%c0_1, %c0_2] : memref<1x32xf32, #tpu.memory_space<vmem>>, vector<1x32xf32>
    %2 = vector.shape_cast %1 : vector<1x32xf32> to vector<32xf32>
    %c0_3 = arith.constant 0 : index
    %c0_4 = arith.constant 0 : index
    %3 = vector.load %arg4[%c0_3, %c0_4] : memref<1x32xf32, #tpu.memory_space<vmem>>, vector<1x32xf32>
    %4 = vector.shape_cast %3 : vector<1x32xf32> to vector<32xf32>
    %cst = arith.constant dense<0.000000e+00> : vector<32xf32>
    %5 = vector.multi_reduction <add>, %0, %cst [1] : vector<32x32xf32> to vector<32xf32>
    %6 = vector.shape_cast %5 : vector<32xf32> to vector<32x1xf32>
    %cst_5 = arith.constant 3.200000e+01 : f32
    %7 = vector.broadcast %cst_5 : f32 to vector<32x1xf32>
    %8 = arith.divf %6, %7 : vector<32x1xf32>
    %9 = vector.broadcast %8 : vector<32x1xf32> to vector<32x32xf32>
    %10 = arith.subf %0, %9 : vector<32x32xf32>
    %11 = arith.mulf %10, %10 : vector<32x32xf32>
    %cst_6 = arith.constant dense<0.000000e+00> : vector<32xf32>
    %12 = vector.multi_reduction <add>, %11, %cst_6 [1] : vector<32x32xf32> to vector<32xf32>
    %13 = vector.shape_cast %12 : vector<32xf32> to vector<32x1xf32>
    %cst_7 = arith.constant 3.200000e+01 : f32
    %14 = vector.broadcast %cst_7 : f32 to vector<32x1xf32>
    %15 = arith.divf %13, %14 : vector<32x1xf32>
    %16 = vector.broadcast %8 : vector<32x1xf32> to vector<32x32xf32>
    %17 = arith.subf %0, %16 : vector<32x32xf32>
    %cst_8 = arith.constant 9.99999974E-6 : f32
    %18 = vector.broadcast %cst_8 : f32 to vector<32x1xf32>
    %19 = arith.addf %15, %18 : vector<32x1xf32>
    %20 = math.rsqrt %19 : vector<32x1xf32>
    %21 = vector.broadcast %20 : vector<32x1xf32> to vector<32x32xf32>
    %22 = arith.mulf %17, %21 : vector<32x32xf32>
    %23 = vector.shape_cast %2 : vector<32xf32> to vector<1x32xf32>
    %24 = vector.broadcast %23 : vector<1x32xf32> to vector<32x32xf32>
    %25 = arith.mulf %22, %24 : vector<32x32xf32>
    %26 = vector.shape_cast %4 : vector<32xf32> to vector<1x32xf32>
    %27 = vector.broadcast %26 : vector<1x32xf32> to vector<32x32xf32>
    %28 = arith.addf %25, %27 : vector<32x32xf32>
    %29 = arith.truncf %28 : vector<32x32xf32> to vector<32x32xbf16>
    %c0_9 = arith.constant 0 : index
    %c0_10 = arith.constant 0 : index
    %30 = vector.load %arg5[%c0_9, %c0_10] : memref<32x64xbf16, #tpu.memory_space<vmem>>, vector<32x64xbf16>
    %cst_11 = arith.constant dense<0.000000e+00> : vector<32x64xf32>
    %31 = tpu.matmul %29, %30, %cst_11 {dimension_numbers = #tpu.dot_dimension_numbers<[1], [0], [0], [1], [0, 0, 1, 1], [], []>} : vector<32x32xbf16>, vector<32x64xbf16>, vector<32x64xf32> -> vector<32x64xf32>
    %c0_12 = arith.constant 0 : index
    %c0_13 = arith.constant 0 : index
    %32 = vector.load %arg6[%c0_12, %c0_13] : memref<1x64xf32, #tpu.memory_space<vmem>>, vector<1x64xf32>
    %33 = vector.shape_cast %32 : vector<1x64xf32> to vector<64xf32>
    %34 = vector.shape_cast %33 : vector<64xf32> to vector<1x64xf32>
    %35 = vector.broadcast %34 : vector<1x64xf32> to vector<32x64xf32>
    %36 = arith.addf %31, %35 : vector<32x64xf32>
    %cst_14 = arith.constant 5.000000e-01 : f32
    %37 = vector.broadcast %cst_14 : f32 to vector<32x64xf32>
    %38 = arith.mulf %37, %36 : vector<32x64xf32>
    %cst_15 = arith.constant 4.471500e-02 : f32
    %39 = vector.broadcast %cst_15 : f32 to vector<32x64xf32>
    %40 = arith.mulf %39, %36 : vector<32x64xf32>
    %41 = arith.mulf %40, %36 : vector<32x64xf32>
    %42 = arith.mulf %41, %36 : vector<32x64xf32>
    %43 = arith.addf %36, %42 : vector<32x64xf32>
    %cst_16 = arith.constant 0.797884583 : f32
    %44 = vector.broadcast %cst_16 : f32 to vector<32x64xf32>
    %45 = arith.mulf %44, %43 : vector<32x64xf32>
    %46 = math.tanh %45 : vector<32x64xf32>
    %cst_17 = arith.constant 1.000000e+00 : f32
    %47 = vector.broadcast %cst_17 : f32 to vector<32x64xf32>
    %48 = arith.addf %47, %46 : vector<32x64xf32>
    %49 = arith.mulf %38, %48 : vector<32x64xf32>
    %50 = arith.truncf %49 : vector<32x64xf32> to vector<32x64xbf16>
    %c0_18 = arith.constant 0 : index
    %c0_19 = arith.constant 0 : index
    %51 = vector.load %arg7[%c0_18, %c0_19] : memref<64x32xbf16, #tpu.memory_space<vmem>>, vector<64x32xbf16>
    %cst_20 = arith.constant dense<0.000000e+00> : vector<32x32xf32>
    %52 = tpu.matmul %50, %51, %cst_20 {dimension_numbers = #tpu.dot_dimension_numbers<[1], [0], [0], [1], [0, 0, 1, 1], [], []>} : vector<32x64xbf16>, vector<64x32xbf16>, vector<32x32xf32> -> vector<32x32xf32>
    %c0_21 = arith.constant 0 : index
    %c0_22 = arith.constant 0 : index
    %53 = vector.load %arg8[%c0_21, %c0_22] : memref<1x32xf32, #tpu.memory_space<vmem>>, vector<1x32xf32>
    %54 = vector.shape_cast %53 : vector<1x32xf32> to vector<32xf32>
    %55 = vector.shape_cast %54 : vector<32xf32> to vector<1x32xf32>
    %56 = vector.broadcast %55 : vector<1x32xf32> to vector<32x32xf32>
    %57 = arith.addf %52, %56 : vector<32x32xf32>
    %58 = arith.addf %0, %57 : vector<32x32xf32>
    %c0_23 = arith.constant 0 : index
    %c0_24 = arith.constant 0 : index
    %59 = vector.load %arg2[%c0_23, %c0_24] : memref<32x32xf32, #tpu.memory_space<vmem>>, vector<32x32xf32>
    %60 = arith.addf %58, %59 : vector<32x32xf32>
    %c0_25 = arith.constant 0 : index
    %c0_26 = arith.constant 0 : index
    %61 = vector.load %arg9[%c0_25, %c0_26] : memref<32x32xf32, #tpu.memory_space<vmem>>, vector<32x32xf32>
    tpu.vector_store %arg9[%c0_25, %c0_26], %60 {strides = array<i32>} : memref<32x32xf32, #tpu.memory_space<vmem>>, vector<32x32xf32>,
    return
  }
  func.func @transform_0(%arg0: i32) -> (i32, i32) {
    %c0_i32 = arith.constant 0 : i32
    %c0_i32_0 = arith.constant 0 : i32
    return %arg0, %c0_i32 : i32, i32
  }
  func.func @transform_1(%arg0: i32) -> (i32, i32) {
    %c0_i32 = arith.constant 0 : i32
    %c0_i32_0 = arith.constant 0 : i32
    return %arg0, %c0_i32 : i32, i32
  }
  func.func @transform_2(%arg0: i32) -> (i32, i32) {
    %c0_i32 = arith.constant 0 : i32
    %c0_i32_0 = arith.constant 0 : i32
    %c0_i32_1 = arith.constant 0 : i32
    return %c0_i32, %c0_i32_0 : i32, i32
  }
  func.func @transform_3(%arg0: i32) -> (i32, i32) {
    %c0_i32 = arith.constant 0 : i32
    %c0_i32_0 = arith.constant 0 : i32
    %c0_i32_1 = arith.constant 0 : i32
    return %c0_i32, %c0_i32_0 : i32, i32
  }
  func.func @transform_4(%arg0: i32) -> (i32, i32) {
    %c0_i32 = arith.constant 0 : i32
    %c0_i32_0 = arith.constant 0 : i32
    %c0_i32_1 = arith.constant 0 : i32
    return %c0_i32, %c0_i32_0 : i32, i32
  }
  func.func @transform_5(%arg0: i32) -> (i32, i32) {
    %c0_i32 = arith.constant 0 : i32
    %c0_i32_0 = arith.constant 0 : i32
    %c0_i32_1 = arith.constant 0 : i32
    return %c0_i32, %c0_i32_0 : i32, i32
  }
  func.func @transform_6(%arg0: i32) -> (i32, i32) {
    %c0_i32 = arith.constant 0 : i32
    %c0_i32_0 = arith.constant 0 : i32
    %c0_i32_1 = arith.constant 0 : i32
    return %c0_i32, %c0_i32_0 : i32, i32
  }
  func.func @transform_7(%arg0: i32) -> (i32, i32) {
    %c0_i32 = arith.constant 0 : i32
    %c0_i32_0 = arith.constant 0 : i32
    %c0_i32_1 = arith.constant 0 : i32
    return %c0_i32, %c0_i32_0 : i32, i32
  }
  func.func @transform_8(%arg0: i32) -> (i32, i32) {
    %c0_i32 = arith.constant 0 : i32
    %c0_i32_0 = arith.constant 0 : i32
    return %arg0, %c0_i32 : i32, i32
  }
}

module attributes {stable_mosaic.version = 11 : i64} {
  func.func @_ln_mlp_kernel(%arg0: i32, %arg1: memref<32x32xf32, #tpu.memory_space<vmem>>, %arg2: memref<32x32xf32, #tpu.memory_space<vmem>>, %arg3: memref<1x32xf32, #tpu.memory_space<vmem>>, %arg4: memref<1x32xf32, #tpu.memory_space<vmem>>, %arg5: memref<32x64xbf16, #tpu.memory_space<vmem>>, %arg6: memref<1x64xf32, #tpu.memory_space<vmem>>, %arg7: memref<64x32xbf16, #tpu.memory_space<vmem>>, %arg8: memref<1x32xf32, #tpu.memory_space<vmem>>, %arg9: memref<32x32xf32, #tpu.memory_space<vmem>>) attributes {dimension_semantics = [#tpu.dimension_semantics<parallel>], iteration_bounds = array<i64: 4>, scalar_prefetch = 0 : i64, scratch_operands = 0 : i64, tpu.core_type = #tpu.core_type<tc>, window_params = [{transform_indices = @transform_0, window_bounds = array<i64: 32, 32>}, {transform_indices = @transform_1, window_bounds = array<i64: 32, 32>}, {pipeline_mode = #tpu.pipeline_mode<synchronous>, transform_indices = @transform_2, window_bounds = array<i64: 1, 32>}, {pipeline_mode = #tpu.pipeline_mode<synchronous>, transform_indices = @transform_3, window_bounds = array<i64: 1, 32>}, {pipeline_mode = #tpu.pipeline_mode<synchronous>, transform_indices = @transform_4, window_bounds = array<i64: 32, 64>}, {pipeline_mode = #tpu.pipeline_mode<synchronous>, transform_indices = @transform_5, window_bounds = array<i64: 1, 64>}, {pipeline_mode = #tpu.pipeline_mode<synchronous>, transform_indices = @transform_6, window_bounds = array<i64: 64, 32>}, {pipeline_mode = #tpu.pipeline_mode<synchronous>, transform_indices = @transform_7, window_bounds = array<i64: 1, 32>}, {transform_indices = @transform_8, window_bounds = array<i64: 32, 32>}]} {
    %c0 = arith.constant 0 : index
    %c0_0 = arith.constant 0 : index
    %0 = vector.load %arg1[%c0, %c0_0] : memref<32x32xf32, #tpu.memory_space<vmem>>, vector<32x32xf32>
    %c0_1 = arith.constant 0 : index
    %c0_2 = arith.constant 0 : index
    %1 = vector.load %arg3[%c0_1, %c0_2] : memref<1x32xf32, #tpu.memory_space<vmem>>, vector<1x32xf32>
    %2 = vector.shape_cast %1 : vector<1x32xf32> to vector<32xf32>
    %c0_3 = arith.constant 0 : index
    %c0_4 = arith.constant 0 : index
    %3 = vector.load %arg4[%c0_3, %c0_4] : memref<1x32xf32, #tpu.memory_space<vmem>>, vector<1x32xf32>
    %4 = vector.shape_cast %3 : vector<1x32xf32> to vector<32xf32>
    %cst = arith.constant dense<0.000000e+00> : vector<32xf32>
    %5 = vector.multi_reduction <add>, %0, %cst [1] : vector<32x32xf32> to vector<32xf32>
    %6 = vector.shape_cast %5 : vector<32xf32> to vector<32x1xf32>
    %cst_5 = arith.constant 3.200000e+01 : f32
    %7 = vector.broadcast %cst_5 : f32 to vector<32x1xf32>
    %8 = arith.divf %6, %7 : vector<32x1xf32>
    %9 = vector.broadcast %8 : vector<32x1xf32> to vector<32x32xf32>
    %10 = arith.subf %0, %9 : vector<32x32xf32>
    %11 = arith.mulf %10, %10 : vector<32x32xf32>
    %cst_6 = arith.constant dense<0.000000e+00> : vector<32xf32>
    %12 = vector.multi_reduction <add>, %11, %cst_6 [1] : vector<32x32xf32> to vector<32xf32>
    %13 = vector.shape_cast %12 : vector<32xf32> to vector<32x1xf32>
    %cst_7 = arith.constant 3.200000e+01 : f32
    %14 = vector.broadcast %cst_7 : f32 to vector<32x1xf32>
    %15 = arith.divf %13, %14 : vector<32x1xf32>
    %16 = vector.broadcast %8 : vector<32x1xf32> to vector<32x32xf32>
    %17 = arith.subf %0, %16 : vector<32x32xf32>
    %cst_8 = arith.constant 9.99999974E-6 : f32
    %18 = vector.broadcast %cst_8 : f32 to vector<32x1xf32>
    %19 = arith.addf %15, %18 : vector<32x1xf32>
    %20 = math.rsqrt %19 : vector<32x1xf32>
    %21 = vector.broadcast %20 : vector<32x1xf32> to vector<32x32xf32>
    %22 = arith.mulf %17, %21 : vector<32x32xf32>
    %23 = vector.shape_cast %2 : vector<32xf32> to vector<1x32xf32>
    %24 = vector.broadcast %23 : vector<1x32xf32> to vector<32x32xf32>
    %25 = arith.mulf %22, %24 : vector<32x32xf32>
    %26 = vector.shape_cast %4 : vector<32xf32> to vector<1x32xf32>
    %27 = vector.broadcast %26 : vector<1x32xf32> to vector<32x32xf32>
    %28 = arith.addf %25, %27 : vector<32x32xf32>
    %29 = arith.truncf %28 : vector<32x32xf32> to vector<32x32xbf16>
    %c0_9 = arith.constant 0 : index
    %c0_10 = arith.constant 0 : index
    %30 = vector.load %arg5[%c0_9, %c0_10] : memref<32x64xbf16, #tpu.memory_space<vmem>>, vector<32x64xbf16>
    %cst_11 = arith.constant dense<0.000000e+00> : vector<32x64xf32>
    %31 = tpu.matmul %29, %30, %cst_11 {dimension_numbers = #tpu.dot_dimension_numbers<[1], [0], [0], [1], [0, 0, 1, 1], [], []>} : vector<32x32xbf16>, vector<32x64xbf16>, vector<32x64xf32> -> vector<32x64xf32>
    %c0_12 = arith.constant 0 : index
    %c0_13 = arith.constant 0 : index
    %32 = vector.load %arg6[%c0_12, %c0_13] : memref<1x64xf32, #tpu.memory_space<vmem>>, vector<1x64xf32>
    %33 = vector.shape_cast %32 : vector<1x64xf32> to vector<64xf32>
    %34 = vector.shape_cast %33 : vector<64xf32> to vector<1x64xf32>
    %35 = vector.broadcast %34 : vector<1x64xf32> to vector<32x64xf32>
    %36 = arith.addf %31, %35 : vector<32x64xf32>
    %cst_14 = arith.constant 5.000000e-01 : f32
    %37 = vector.broadcast %cst_14 : f32 to vector<32x64xf32>
    %38 = arith.mulf %37, %36 : vector<32x64xf32>
    %cst_15 = arith.constant 4.471500e-02 : f32
    %39 = vector.broadcast %cst_15 : f32 to vector<32x64xf32>
    %40 = arith.mulf %39, %36 : vector<32x64xf32>
    %41 = arith.mulf %40, %36 : vector<32x64xf32>
    %42 = arith.mulf %41, %36 : vector<32x64xf32>
    %43 = arith.addf %36, %42 : vector<32x64xf32>
    %cst_16 = arith.constant 0.797884583 : f32
    %44 = vector.broadcast %cst_16 : f32 to vector<32x64xf32>
    %45 = arith.mulf %44, %43 : vector<32x64xf32>
    %46 = math.tanh %45 : vector<32x64xf32>
    %cst_17 = arith.constant 1.000000e+00 : f32
    %47 = vector.broadcast %cst_17 : f32 to vector<32x64xf32>
    %48 = arith.addf %47, %46 : vector<32x64xf32>
    %49 = arith.mulf %38, %48 : vector<32x64xf32>
    %50 = arith.truncf %49 : vector<32x64xf32> to vector<32x64xbf16>
    %c0_18 = arith.constant 0 : index
    %c0_19 = arith.constant 0 : index
    %51 = vector.load %arg7[%c0_18, %c0_19] : memref<64x32xbf16, #tpu.memory_space<vmem>>, vector<64x32xbf16>
    %cst_20 = arith.constant dense<0.000000e+00> : vector<32x32xf32>
    %52 = tpu.matmul %50, %51, %cst_20 {dimension_numbers = #tpu.dot_dimension_numbers<[1], [0], [0], [1], [0, 0, 1, 1], [], []>} : vector<32x64xbf16>, vector<64x32xbf16>, vector<32x32xf32> -> vector<32x32xf32>
    %c0_21 = arith.constant 0 : index
    %c0_22 = arith.constant 0 : index
    %53 = vector.load %arg8[%c0_21, %c0_22] : memref<1x32xf32, #tpu.memory_space<vmem>>, vector<1x32xf32>
    %54 = vector.shape_cast %53 : vector<1x32xf32> to vector<32xf32>
    %55 = vector.shape_cast %54 : vector<32xf32> to vector<1x32xf32>
    %56 = vector.broadcast %55 : vector<1x32xf32> to vector<32x32xf32>
    %57 = arith.addf %52, %56 : vector<32x32xf32>
    %58 = arith.addf %0, %57 : vector<32x32xf32>
    %c0_23 = arith.constant 0 : index
    %c0_24 = arith.constant 0 : index
    %59 = vector.load %arg2[%c0_23, %c0_24] : memref<32x32xf32, #tpu.memory_space<vmem>>, vector<32x32xf32>
    %60 = arith.addf %58, %59 : vector<32x32xf32>
    %c0_25 = arith.constant 0 : index
    %c0_26 = arith.constant 0 : index
    %61 = vector.load %arg9[%c0_25, %c0_26] : memref<32x32xf32, #tpu.memory_space<vmem>>, vector<32x32xf32>
    tpu.vector_store %arg9[%c0_25, %c0_26], %60 {strides = array<i32>} : memref<32x32xf32, #tpu.memory_space<vmem>>, vector<32x32xf32>,
    return
  }
  func.func @transform_0(%arg0: i32) -> (i32, i32) {
    %c0_i32 = arith.constant 0 : i32
    %c0_i32_0 = arith.constant 0 : i32
    return %arg0, %c0_i32 : i32, i32
  }
  func.func @transform_1(%arg0: i32) -> (i32, i32) {
    %c0_i32 = arith.constant 0 : i32
    %c0_i32_0 = arith.constant 0 : i32
    return %arg0, %c0_i32 : i32, i32
  }
  func.func @transform_2(%arg0: i32) -> (i32, i32) {
    %c0_i32 = arith.constant 0 : i32
    %c0_i32_0 = arith.constant 0 : i32
    %c0_i32_1 = arith.constant 0 : i32
    return %c0_i32, %c0_i32_0 : i32, i32
  }
  func.func @transform_3(%arg0: i32) -> (i32, i32) {
    %c0_i32 = arith.constant 0 : i32
    %c0_i32_0 = arith.constant 0 : i32
    %c0_i32_1 = arith.constant 0 : i32
    return %c0_i32, %c0_i32_0 : i32, i32
  }
  func.func @transform_4(%arg0: i32) -> (i32, i32) {
    %c0_i32 = arith.constant 0 : i32
    %c0_i32_0 = arith.constant 0 : i32
    %c0_i32_1 = arith.constant 0 : i32
    return %c0_i32, %c0_i32_0 : i32, i32
  }
  func.func @transform_5(%arg0: i32) -> (i32, i32) {
    %c0_i32 = arith.constant 0 : i32
    %c0_i32_0 = arith.constant 0 : i32
    %c0_i32_1 = arith.constant 0 : i32
    return %c0_i32, %c0_i32_0 : i32, i32
  }
  func.func @transform_6(%arg0: i32) -> (i32, i32) {
    %c0_i32 = arith.constant 0 : i32
    %c0_i32_0 = arith.constant 0 : i32
    %c0_i32_1 = arith.constant 0 : i32
    return %c0_i32, %c0_i32_0 : i32, i32
  }
  func.func @transform_7(%arg0: i32) -> (i32, i32) {
    %c0_i32 = arith.constant 0 : i32
    %c0_i32_0 = arith.constant 0 : i32
    %c0_i32_1 = arith.constant 0 : i32
    return %c0_i32, %c0_i32_0 : i32, i32
  }
  func.func @transform_8(%arg0: i32) -> (i32, i32) {
    %c0_i32 = arith.constant 0 : i32
    %c0_i32_0 = arith.constant 0 : i32
    return %arg0, %c0_i32 : i32, i32
  }
}

module attributes {stable_mosaic.version = 11 : i64} {
  func.func @_cross_attn_kernel(%arg0: i32, %arg1: memref<1x64x32xf32, #tpu.memory_space<vmem>>, %arg2: memref<1x64x32xf32, #tpu.memory_space<vmem>>, %arg3: memref<1x32xf32, #tpu.memory_space<vmem>>, %arg4: memref<1x32xf32, #tpu.memory_space<vmem>>, %arg5: memref<1x32xf32, #tpu.memory_space<vmem>>, %arg6: memref<1x32xf32, #tpu.memory_space<vmem>>, %arg7: memref<32x32xbf16, #tpu.memory_space<vmem>>, %arg8: memref<1x32xf32, #tpu.memory_space<vmem>>, %arg9: memref<32x64xbf16, #tpu.memory_space<vmem>>, %arg10: memref<1x64xf32, #tpu.memory_space<vmem>>, %arg11: memref<32x32xbf16, #tpu.memory_space<vmem>>, %arg12: memref<1x32xf32, #tpu.memory_space<vmem>>, %arg13: memref<1x64x32xf32, #tpu.memory_space<vmem>>) attributes {dimension_semantics = [#tpu.dimension_semantics<parallel>], iteration_bounds = array<i64: 2>, scalar_prefetch = 0 : i64, scratch_operands = 0 : i64, tpu.core_type = #tpu.core_type<tc>, window_params = [{transform_indices = @transform_0, window_bounds = array<i64: 1, 64, 32>}, {transform_indices = @transform_1, window_bounds = array<i64: 1, 64, 32>}, {pipeline_mode = #tpu.pipeline_mode<synchronous>, transform_indices = @transform_2, window_bounds = array<i64: 1, 32>}, {pipeline_mode = #tpu.pipeline_mode<synchronous>, transform_indices = @transform_3, window_bounds = array<i64: 1, 32>}, {pipeline_mode = #tpu.pipeline_mode<synchronous>, transform_indices = @transform_4, window_bounds = array<i64: 1, 32>}, {pipeline_mode = #tpu.pipeline_mode<synchronous>, transform_indices = @transform_5, window_bounds = array<i64: 1, 32>}, {pipeline_mode = #tpu.pipeline_mode<synchronous>, transform_indices = @transform_6, window_bounds = array<i64: 32, 32>}, {pipeline_mode = #tpu.pipeline_mode<synchronous>, transform_indices = @transform_7, window_bounds = array<i64: 1, 32>}, {pipeline_mode = #tpu.pipeline_mode<synchronous>, transform_indices = @transform_8, window_bounds = array<i64: 32, 64>}, {pipeline_mode = #tpu.pipeline_mode<synchronous>, transform_indices = @transform_9, window_bounds = array<i64: 1, 64>}, {pipeline_mode = #tpu.pipeline_mode<synchronous>, transform_indices = @transform_10, window_bounds = array<i64: 32, 32>}, {pipeline_mode = #tpu.pipeline_mode<synchronous>, transform_indices = @transform_11, window_bounds = array<i64: 1, 32>}, {transform_indices = @transform_12, window_bounds = array<i64: 1, 64, 32>}]} {
    %c0 = arith.constant 0 : index
    %c0_0 = arith.constant 0 : index
    %c0_1 = arith.constant 0 : index
    %0 = vector.load %arg1[%c0, %c0_0, %c0_1] : memref<1x64x32xf32, #tpu.memory_space<vmem>>, vector<1x64x32xf32>
    %c0_2 = arith.constant 0 : index
    %c0_3 = arith.constant 0 : index
    %c0_4 = arith.constant 0 : index
    %1 = vector.load %arg2[%c0_2, %c0_3, %c0_4] : memref<1x64x32xf32, #tpu.memory_space<vmem>>, vector<1x64x32xf32>
    %2 = vector.shape_cast %0 : vector<1x64x32xf32> to vector<64x32xf32>
    %c0_5 = arith.constant 0 : index
    %c0_6 = arith.constant 0 : index
    %3 = vector.load %arg3[%c0_5, %c0_6] : memref<1x32xf32, #tpu.memory_space<vmem>>, vector<1x32xf32>
    %4 = vector.shape_cast %3 : vector<1x32xf32> to vector<32xf32>
    %c0_7 = arith.constant 0 : index
    %c0_8 = arith.constant 0 : index
    %5 = vector.load %arg4[%c0_7, %c0_8] : memref<1x32xf32, #tpu.memory_space<vmem>>, vector<1x32xf32>
    %6 = vector.shape_cast %5 : vector<1x32xf32> to vector<32xf32>
    %cst = arith.constant dense<0.000000e+00> : vector<64xf32>
    %7 = vector.multi_reduction <add>, %2, %cst [1] : vector<64x32xf32> to vector<64xf32>
    %8 = vector.shape_cast %7 : vector<64xf32> to vector<64x1xf32>
    %cst_9 = arith.constant 3.200000e+01 : f32
    %9 = vector.broadcast %cst_9 : f32 to vector<64x1xf32>
    %10 = arith.divf %8, %9 : vector<64x1xf32>
    %11 = vector.broadcast %10 : vector<64x1xf32> to vector<64x32xf32>
    %12 = arith.subf %2, %11 : vector<64x32xf32>
    %13 = arith.mulf %12, %12 : vector<64x32xf32>
    %cst_10 = arith.constant dense<0.000000e+00> : vector<64xf32>
    %14 = vector.multi_reduction <add>, %13, %cst_10 [1] : vector<64x32xf32> to vector<64xf32>
    %15 = vector.shape_cast %14 : vector<64xf32> to vector<64x1xf32>
    %cst_11 = arith.constant 3.200000e+01 : f32
    %16 = vector.broadcast %cst_11 : f32 to vector<64x1xf32>
    %17 = arith.divf %15, %16 : vector<64x1xf32>
    %18 = vector.broadcast %10 : vector<64x1xf32> to vector<64x32xf32>
    %19 = arith.subf %2, %18 : vector<64x32xf32>
    %cst_12 = arith.constant 9.99999974E-6 : f32
    %20 = vector.broadcast %cst_12 : f32 to vector<64x1xf32>
    %21 = arith.addf %17, %20 : vector<64x1xf32>
    %22 = math.rsqrt %21 : vector<64x1xf32>
    %23 = vector.broadcast %22 : vector<64x1xf32> to vector<64x32xf32>
    %24 = arith.mulf %19, %23 : vector<64x32xf32>
    %25 = vector.shape_cast %4 : vector<32xf32> to vector<1x32xf32>
    %26 = vector.broadcast %25 : vector<1x32xf32> to vector<64x32xf32>
    %27 = arith.mulf %24, %26 : vector<64x32xf32>
    %28 = vector.shape_cast %6 : vector<32xf32> to vector<1x32xf32>
    %29 = vector.broadcast %28 : vector<1x32xf32> to vector<64x32xf32>
    %30 = arith.addf %27, %29 : vector<64x32xf32>
    %31 = vector.shape_cast %1 : vector<1x64x32xf32> to vector<64x32xf32>
    %c0_13 = arith.constant 0 : index
    %c0_14 = arith.constant 0 : index
    %32 = vector.load %arg5[%c0_13, %c0_14] : memref<1x32xf32, #tpu.memory_space<vmem>>, vector<1x32xf32>
    %33 = vector.shape_cast %32 : vector<1x32xf32> to vector<32xf32>
    %c0_15 = arith.constant 0 : index
    %c0_16 = arith.constant 0 : index
    %34 = vector.load %arg6[%c0_15, %c0_16] : memref<1x32xf32, #tpu.memory_space<vmem>>, vector<1x32xf32>
    %35 = vector.shape_cast %34 : vector<1x32xf32> to vector<32xf32>
    %cst_17 = arith.constant dense<0.000000e+00> : vector<64xf32>
    %36 = vector.multi_reduction <add>, %31, %cst_17 [1] : vector<64x32xf32> to vector<64xf32>
    %37 = vector.shape_cast %36 : vector<64xf32> to vector<64x1xf32>
    %cst_18 = arith.constant 3.200000e+01 : f32
    %38 = vector.broadcast %cst_18 : f32 to vector<64x1xf32>
    %39 = arith.divf %37, %38 : vector<64x1xf32>
    %40 = vector.broadcast %39 : vector<64x1xf32> to vector<64x32xf32>
    %41 = arith.subf %31, %40 : vector<64x32xf32>
    %42 = arith.mulf %41, %41 : vector<64x32xf32>
    %cst_19 = arith.constant dense<0.000000e+00> : vector<64xf32>
    %43 = vector.multi_reduction <add>, %42, %cst_19 [1] : vector<64x32xf32> to vector<64xf32>
    %44 = vector.shape_cast %43 : vector<64xf32> to vector<64x1xf32>
    %cst_20 = arith.constant 3.200000e+01 : f32
    %45 = vector.broadcast %cst_20 : f32 to vector<64x1xf32>
    %46 = arith.divf %44, %45 : vector<64x1xf32>
    %47 = vector.broadcast %39 : vector<64x1xf32> to vector<64x32xf32>
    %48 = arith.subf %31, %47 : vector<64x32xf32>
    %cst_21 = arith.constant 9.99999974E-6 : f32
    %49 = vector.broadcast %cst_21 : f32 to vector<64x1xf32>
    %50 = arith.addf %46, %49 : vector<64x1xf32>
    %51 = math.rsqrt %50 : vector<64x1xf32>
    %52 = vector.broadcast %51 : vector<64x1xf32> to vector<64x32xf32>
    %53 = arith.mulf %48, %52 : vector<64x32xf32>
    %54 = vector.shape_cast %33 : vector<32xf32> to vector<1x32xf32>
    %55 = vector.broadcast %54 : vector<1x32xf32> to vector<64x32xf32>
    %56 = arith.mulf %53, %55 : vector<64x32xf32>
    %57 = vector.shape_cast %35 : vector<32xf32> to vector<1x32xf32>
    %58 = vector.broadcast %57 : vector<1x32xf32> to vector<64x32xf32>
    %59 = arith.addf %56, %58 : vector<64x32xf32>
    %60 = arith.truncf %30 : vector<64x32xf32> to vector<64x32xbf16>
    %c0_22 = arith.constant 0 : index
    %c0_23 = arith.constant 0 : index
    %61 = vector.load %arg7[%c0_22, %c0_23] : memref<32x32xbf16, #tpu.memory_space<vmem>>, vector<32x32xbf16>
    %cst_24 = arith.constant dense<0.000000e+00> : vector<64x32xf32>
    %62 = tpu.matmul %60, %61, %cst_24 {dimension_numbers = #tpu.dot_dimension_numbers<[1], [0], [0], [1], [0, 0, 1, 1], [], []>} : vector<64x32xbf16>, vector<32x32xbf16>, vector<64x32xf32> -> vector<64x32xf32>
    %c0_25 = arith.constant 0 : index
    %c0_26 = arith.constant 0 : index
    %63 = vector.load %arg8[%c0_25, %c0_26] : memref<1x32xf32, #tpu.memory_space<vmem>>, vector<1x32xf32>
    %64 = vector.shape_cast %63 : vector<1x32xf32> to vector<32xf32>
    %65 = vector.shape_cast %64 : vector<32xf32> to vector<1x32xf32>
    %66 = vector.broadcast %65 : vector<1x32xf32> to vector<64x32xf32>
    %67 = arith.addf %62, %66 : vector<64x32xf32>
    %68 = arith.truncf %59 : vector<64x32xf32> to vector<64x32xbf16>
    %c0_27 = arith.constant 0 : index
    %c0_28 = arith.constant 0 : index
    %69 = vector.load %arg9[%c0_27, %c0_28] : memref<32x64xbf16, #tpu.memory_space<vmem>>, vector<32x64xbf16>
    %cst_29 = arith.constant dense<0.000000e+00> : vector<64x64xf32>
    %70 = tpu.matmul %68, %69, %cst_29 {dimension_numbers = #tpu.dot_dimension_numbers<[1], [0], [0], [1], [0, 0, 1, 1], [], []>} : vector<64x32xbf16>, vector<32x64xbf16>, vector<64x64xf32> -> vector<64x64xf32>
    %c0_30 = arith.constant 0 : index
    %c0_31 = arith.constant 0 : index
    %71 = vector.load %arg10[%c0_30, %c0_31] : memref<1x64xf32, #tpu.memory_space<vmem>>, vector<1x64xf32>
    %72 = vector.shape_cast %71 : vector<1x64xf32> to vector<64xf32>
    %73 = vector.shape_cast %72 : vector<64xf32> to vector<1x64xf32>
    %74 = vector.broadcast %73 : vector<1x64xf32> to vector<64x64xf32>
    %75 = arith.addf %70, %74 : vector<64x64xf32>
    %76 = vector.shape_cast %67 : vector<64x32xf32> to vector<1x64x32xf32>
    %77 = vector.extract_strided_slice %75 {offsets = [0, 0], sizes = [64, 32], strides = [1, 1]} : vector<64x64xf32> to vector<64x32xf32>
    %78 = vector.shape_cast %77 : vector<64x32xf32> to vector<1x64x32xf32>
    %79 = vector.extract_strided_slice %75 {offsets = [0, 32], sizes = [64, 32], strides = [1, 1]} : vector<64x64xf32> to vector<64x32xf32>
    %80 = vector.shape_cast %79 : vector<64x32xf32> to vector<1x64x32xf32>
    %81 = arith.truncf %76 : vector<1x64x32xf32> to vector<1x64x32xbf16>
    %82 = arith.truncf %78 : vector<1x64x32xf32> to vector<1x64x32xbf16>
    "tpu.trace_start"() <{level = 10 : i32, message = "bqd,bkd->bqk"}> : () -> ()
    %cst_32 = arith.constant dense<0.000000e+00> : vector<1x64x64xf32>
    %83 = tpu.matmul %81, %82, %cst_32 {dimension_numbers = #tpu.dot_dimension_numbers<[2], [2], [1], [1], [0, 0, 0, 1, 1, 1], [0], [0]>} : vector<1x64x32xbf16>, vector<1x64x32xbf16>, vector<1x64x64xf32> -> vector<1x64x64xf32>
    "tpu.trace_stop"() : () -> ()
    %cst_33 = arith.constant dense<0xFF800000> : vector<1x64xf32>
    %84 = vector.multi_reduction <maximumf>, %83, %cst_33 [2] : vector<1x64x64xf32> to vector<1x64xf32>
    %85 = vector.shape_cast %84 : vector<1x64xf32> to vector<1x64x1xf32>
    %86 = vector.broadcast %85 : vector<1x64x1xf32> to vector<1x64x64xf32>
    %87 = arith.subf %83, %86 : vector<1x64x64xf32>
    %88 = math.exp %87 : vector<1x64x64xf32>
    %cst_34 = arith.constant dense<0.000000e+00> : vector<1x64xf32>
    %89 = vector.multi_reduction <add>, %88, %cst_34 [2] : vector<1x64x64xf32> to vector<1x64xf32>
    %90 = vector.shape_cast %89 : vector<1x64xf32> to vector<1x64x1xf32>
    %91 = tpu.reciprocal %90 {approx = true} : vector<1x64x1xf32> -> vector<1x64x1xf32>
    %92 = vector.broadcast %91 : vector<1x64x1xf32> to vector<1x64x64xf32>
    %93 = arith.mulf %88, %92 : vector<1x64x64xf32>
    %94 = arith.truncf %93 : vector<1x64x64xf32> to vector<1x64x64xbf16>
    %95 = arith.truncf %80 : vector<1x64x32xf32> to vector<1x64x32xbf16>
    "tpu.trace_start"() <{level = 10 : i32, message = "bqk,bkd->bqd"}> : () -> ()
    %cst_35 = arith.constant dense<0.000000e+00> : vector<1x64x32xf32>
    %96 = tpu.matmul %94, %95, %cst_35 {dimension_numbers = #tpu.dot_dimension_numbers<[2], [1], [1], [2], [0, 0, 0, 1, 1, 2], [0], [0]>} : vector<1x64x64xbf16>, vector<1x64x32xbf16>, vector<1x64x32xf32> -> vector<1x64x32xf32>
    "tpu.trace_stop"() : () -> ()
    %97 = vector.shape_cast %96 : vector<1x64x32xf32> to vector<64x32xf32>
    %98 = arith.truncf %97 : vector<64x32xf32> to vector<64x32xbf16>
    %c0_36 = arith.constant 0 : index
    %c0_37 = arith.constant 0 : index
    %99 = vector.load %arg11[%c0_36, %c0_37] : memref<32x32xbf16, #tpu.memory_space<vmem>>, vector<32x32xbf16>
    %cst_38 = arith.constant dense<0.000000e+00> : vector<64x32xf32>
    %100 = tpu.matmul %98, %99, %cst_38 {dimension_numbers = #tpu.dot_dimension_numbers<[1], [0], [0], [1], [0, 0, 1, 1], [], []>} : vector<64x32xbf16>, vector<32x32xbf16>, vector<64x32xf32> -> vector<64x32xf32>
    %c0_39 = arith.constant 0 : index
    %c0_40 = arith.constant 0 : index
    %101 = vector.load %arg12[%c0_39, %c0_40] : memref<1x32xf32, #tpu.memory_space<vmem>>, vector<1x32xf32>
    %102 = vector.shape_cast %101 : vector<1x32xf32> to vector<32xf32>
    %103 = vector.shape_cast %102 : vector<32xf32> to vector<1x32xf32>
    %104 = vector.broadcast %103 : vector<1x32xf32> to vector<64x32xf32>
    %105 = arith.addf %100, %104 : vector<64x32xf32>
    %106 = vector.shape_cast %105 : vector<64x32xf32> to vector<1x64x32xf32>
    %107 = arith.addf %0, %106 : vector<1x64x32xf32>
    %c0_41 = arith.constant 0 : index
    %c0_42 = arith.constant 0 : index
    %c0_43 = arith.constant 0 : index
    %108 = vector.load %arg13[%c0_41, %c0_42, %c0_43] : memref<1x64x32xf32, #tpu.memory_space<vmem>>, vector<1x64x32xf32>
    tpu.vector_store %arg13[%c0_41, %c0_42, %c0_43], %107 {strides = array<i32>} : memref<1x64x32xf32, #tpu.memory_space<vmem>>, vector<1x64x32xf32>,
    return
  }
  func.func @transform_0(%arg0: i32) -> (i32, i32, i32) {
    %c0_i32 = arith.constant 0 : i32
    %c0_i32_0 = arith.constant 0 : i32
    %c0_i32_1 = arith.constant 0 : i32
    return %arg0, %c0_i32, %c0_i32_0 : i32, i32, i32
  }
  func.func @transform_1(%arg0: i32) -> (i32, i32, i32) {
    %c0_i32 = arith.constant 0 : i32
    %c0_i32_0 = arith.constant 0 : i32
    %c0_i32_1 = arith.constant 0 : i32
    return %arg0, %c0_i32, %c0_i32_0 : i32, i32, i32
  }
  func.func @transform_2(%arg0: i32) -> (i32, i32) {
    %c0_i32 = arith.constant 0 : i32
    %c0_i32_0 = arith.constant 0 : i32
    %c0_i32_1 = arith.constant 0 : i32
    return %c0_i32, %c0_i32_0 : i32, i32
  }
  func.func @transform_3(%arg0: i32) -> (i32, i32) {
    %c0_i32 = arith.constant 0 : i32
    %c0_i32_0 = arith.constant 0 : i32
    %c0_i32_1 = arith.constant 0 : i32
    return %c0_i32, %c0_i32_0 : i32, i32
  }
  func.func @transform_4(%arg0: i32) -> (i32, i32) {
    %c0_i32 = arith.constant 0 : i32
    %c0_i32_0 = arith.constant 0 : i32
    %c0_i32_1 = arith.constant 0 : i32
    return %c0_i32, %c0_i32_0 : i32, i32
  }
  func.func @transform_5(%arg0: i32) -> (i32, i32) {
    %c0_i32 = arith.constant 0 : i32
    %c0_i32_0 = arith.constant 0 : i32
    %c0_i32_1 = arith.constant 0 : i32
    return %c0_i32, %c0_i32_0 : i32, i32
  }
  func.func @transform_6(%arg0: i32) -> (i32, i32) {
    %c0_i32 = arith.constant 0 : i32
    %c0_i32_0 = arith.constant 0 : i32
    %c0_i32_1 = arith.constant 0 : i32
    return %c0_i32, %c0_i32_0 : i32, i32
  }
  func.func @transform_7(%arg0: i32) -> (i32, i32) {
    %c0_i32 = arith.constant 0 : i32
    %c0_i32_0 = arith.constant 0 : i32
    %c0_i32_1 = arith.constant 0 : i32
    return %c0_i32, %c0_i32_0 : i32, i32
  }
  func.func @transform_8(%arg0: i32) -> (i32, i32) {
    %c0_i32 = arith.constant 0 : i32
    %c0_i32_0 = arith.constant 0 : i32
    %c0_i32_1 = arith.constant 0 : i32
    return %c0_i32, %c0_i32_0 : i32, i32
  }
  func.func @transform_9(%arg0: i32) -> (i32, i32) {
    %c0_i32 = arith.constant 0 : i32
    %c0_i32_0 = arith.constant 0 : i32
    %c0_i32_1 = arith.constant 0 : i32
    return %c0_i32, %c0_i32_0 : i32, i32
  }
  func.func @transform_10(%arg0: i32) -> (i32, i32) {
    %c0_i32 = arith.constant 0 : i32
    %c0_i32_0 = arith.constant 0 : i32
    %c0_i32_1 = arith.constant 0 : i32
    return %c0_i32, %c0_i32_0 : i32, i32
  }
  func.func @transform_11(%arg0: i32) -> (i32, i32) {
    %c0_i32 = arith.constant 0 : i32
    %c0_i32_0 = arith.constant 0 : i32
    %c0_i32_1 = arith.constant 0 : i32
    return %c0_i32, %c0_i32_0 : i32, i32
  }
  func.func @transform_12(%arg0: i32) -> (i32, i32, i32) {
    %c0_i32 = arith.constant 0 : i32
    %c0_i32_0 = arith.constant 0 : i32
    %c0_i32_1 = arith.constant 0 : i32
    return %arg0, %c0_i32, %c0_i32_0 : i32, i32, i32
  }
}

</mosaic_0001>

<bundles_post_ra>
// kernel: basic_layer_forward.9
= control target key start
LH: loop header
LB: loop body
LE: loop exit
PB: predicated region body
PF: predicated region fallthrough
CT: control target
= control target key end

     0   :  { %s961_s24 = smov 0   ;;  %s1169_s0 = inlined_call_operand.vmem [shape: f32[256,32], index: 0, kind: input, shape index: {}]   ;;  %s1170_s1 = inlined_call_operand.vmem [shape: f32[1,32], index: 1, kind: input, shape index: {}]   ;;  %s1171_s2 = inlined_call_operand.vmem [shape: f32[1,32], index: 2, kind: input, shape index: {}]   ;;  %s1172_s3 = inlined_call_operand.vmem [shape: bf16[32,64], index: 3, kind: input, shape index: {}]   ;;  %s1173_s4 = inlined_call_operand.vmem [shape: f32[1,64], index: 4, kind: input, shape index: {}]   ;;  %s1174_s5 = inlined_call_operand.vmem [shape: bf16[64,32], index: 5, kind: input, shape index: {}]   ;;  %s1175_s6 = inlined_call_operand.vmem [shape: f32[1,32], index: 6, kind: input, shape index: {}]   ;;  %s1176_s7 = inlined_call_operand.vmem [shape: f32[256,32], index: 7, kind: output, shape index: {}]  }
   0x1 LB: > { %s796_s25 = sadd.s32 4294967295, %s919_s24   ;;  %p800_p0 = scmp.ge.s32.totalorder %s919_s24, 1  ;;  %s919_s24 = sphi %s961_s24, %s17_s24  }
   0x2   : > { %p238_p1 = scmp.lt.s32.totalorder %s919_s24, 5 }
   0x4   : > { %p239_p2 = pnand %p800_p0, %p238_p1 }
   0x5   : > { %s801_s26 = sshll.u32 (!%p239_p2), %s796_s25, 3  ;;  %vm293_vm0 = vcmask (!%p239_p2), 261120   ;;  %v875_v56 = vld [vmem:[%s1172_s3] sm:$0xff] (!%p239_p2)   ;;  %v876_v57 = vld [vmem:[%s1172_s3 + $0x8] sm:$0xff] (!%p239_p2)   ;;  %vm646_vm1 = vcmask (!%p239_p2), 523264  }
   0x6   : > { %242 = sbr.rel (%p239_p2) target bundleno = 813 (0x32d), region = 48  ;;  %p271_p3 = scmp.lt.s32.totalorder (!%p239_p2), %s801_s26, 31  ;;  %839 = vmatprep.subr.bf16.mxu0 (!%p239_p2), %v875_v56 }
   0x7   : > { %840 = vmatpush3.bf16.msra.mxu0 (!%p239_p2), %v875_v56 }
   0x8   : > { %841 = vmatprep.subr.bf16.mxu0 (!%p239_p2), %v876_v57 }
   0xb   : > { %842 = vmatpush3.bf16.msra.mxu0 (!%p239_p2), %v876_v57 }
   0xd   : > { %s1178_s26 = smov (!%p271_p3, %s801_s26), 31 }
   0xe   : > { %s802_s27 = sshll.u32 %s1178_s26, 3 }
   0xf   : > { %s274_s30 = scalar_lea.vmem %s1169_s0, %s802_s27  ;;  %s280_s10 = scalar_lea.vmem %s1176_s7, %s802_s27 }
  0x10   : > { %v977_v0 = vld [vmem:[%s274_s30] sm:$0xff]  ;;  %v979_v1 = vld [vmem:[%s274_s30 + $0x10] sm:$0xff]  ;;  %v981_v2 = vld [vmem:[%s274_s30 + $0x8] sm:$0xff] }
  0x11   : > { %v294_v3 = vsel %vm293_vm0, %v977_v0, 0.0  ;;  %v300_v4 = vsel %vm293_vm0, %v979_v1, 0.0  ;;  %v987_v5 = vld [vmem:[%s274_s30 + $0x18] sm:$0xff]  ;;  %v297_v6 = vsel %vm293_vm0, %v981_v2, 0.0  ;;  %v993_v8 = vld [vmem:[%s274_s30 + $0x20] sm:$0xff]  ;;  %v995_v9 = vld [vmem:[%s274_s30 + $0x28] sm:$0xff] }
  0x12   : > { %295 = vadd.xlane.f32.xlu0 %v294_v3  ;;  %301 = vadd.xlane.f32.xlu1 %v300_v4  ;;  %v303_v7 = vsel %vm293_vm0, %v987_v5, 0.0  ;;  %v306_v10 = vsel %vm293_vm0, %v993_v8, 0.0  ;;  %v309_v11 = vsel %vm293_vm0, %v995_v9, 0.0  ;;  %v1001_v12 = vld [vmem:[%s274_s30 + $0x30] sm:$0xff]  ;;  %v1003_v13 = vld [vmem:[%s274_s30 + $0x38] sm:$0xff] }
  0x13   : > { %v312_v14 = vsel %vm293_vm0, %v1001_v12, 0.0  ;;  %v315_v15 = vsel %vm293_vm0, %v1003_v13, 0.0 }
  0x16   : > { %298 = vadd.xlane.f32.xlu0 %v297_v6  ;;  %304 = vadd.xlane.f32.xlu1 %v303_v7 }
  0x1a   : > { %307 = vadd.xlane.f32.xlu0 %v306_v10  ;;  %310 = vadd.xlane.f32.xlu1 %v309_v11 }
  0x1e   : > { %313 = vadd.xlane.f32.xlu0 %v312_v14  ;;  %316 = vadd.xlane.f32.xlu1 %v315_v15 }
  0x9f   : > { %v296_v16 = vpop.xlane.xlu0 %295  ;;  %v302_v17 = vpop.xlane.xlu1 %301 }
  0xa0   : > { %v319_v18 = vmul.f32 0.03125, %v296_v16  ;;  %v321_v19 = vmul.f32 0.03125, %v302_v17 }
  0xa2   : > { %v1010_v20 = vsub.f32 %v977_v0, %v319_v18  ;;  %v1013_v21 = vsub.f32 %v979_v1, %v321_v19 }
  0xa3   : > { %v299_v22 = vpop.xlane.xlu0 %298  ;;  %v305_v23 = vpop.xlane.xlu1 %304 }
  0xa4   : > { %v320_v24 = vmul.f32 0.03125, %v299_v22  ;;  %v322_v25 = vmul.f32 0.03125, %v305_v23  ;;  %v335_v26 = vmul.f32 %v1010_v20, %v1010_v20  ;;  %v337_v27 = vmul.f32 %v1013_v21, %v1013_v21 }
  0xa6   : > { %v1020_v28 = vsub.f32 %v981_v2, %v320_v24  ;;  %v1023_v29 = vsub.f32 %v987_v5, %v322_v25  ;;  %v343_v30 = vsel %vm293_vm0, %v335_v26, 0.0  ;;  %v349_v33 = vsel %vm293_vm0, %v337_v27, 0.0 }
  0xa7   : > { %344 = vadd.xlane.f32.xlu0 %v343_v30  ;;  %v308_v31 = vpop.xlane.xlu0 %307  ;;  %v311_v32 = vpop.xlane.xlu1 %310 }
  0xa8   : > { %v323_v34 = vmul.f32 0.03125, %v308_v31  ;;  %v324_v35 = vmul.f32 0.03125, %v311_v32  ;;  %v336_v36 = vmul.f32 %v1020_v28, %v1020_v28  ;;  %v338_v37 = vmul.f32 %v1023_v29, %v1023_v29  ;;  %v805_v31 = vld [vmem:[%s1170_s1] ss:$0 sm:$0xff] }
  0xaa   : > { %v1032_v38 = vsub.f32 %v993_v8, %v323_v34  ;;  %v1035_v39 = vsub.f32 %v995_v9, %v324_v35  ;;  %v346_v40 = vsel %vm293_vm0, %v336_v36, 0.0  ;;  %v352_v43 = vsel %vm293_vm0, %v338_v37, 0.0 }
  0xab   : > { %350 = vadd.xlane.f32.xlu0 %v349_v33  ;;  %347 = vadd.xlane.f32.xlu1 %v346_v40  ;;  %v314_v41 = vpop.xlane.xlu0 %313  ;;  %v317_v42 = vpop.xlane.xlu1 %316 }
  0xac   : > { %v325_v44 = vmul.f32 0.03125, %v314_v41  ;;  %v326_v45 = vmul.f32 0.03125, %v317_v42  ;;  %v339_v46 = vmul.f32 %v1032_v38, %v1032_v38  ;;  %v340_v47 = vmul.f32 %v1035_v39, %v1035_v39 }
  0xae   : > { %v1044_v48 = vsub.f32 %v1001_v12, %v325_v44  ;;  %v1047_v49 = vsub.f32 %v1003_v13, %v326_v45  ;;  %v355_v50 = vsel %vm293_vm0, %v339_v46, 0.0  ;;  %v358_v51 = vsel %vm293_vm0, %v340_v47, 0.0 }
  0xaf   : > { %353 = vadd.xlane.f32.xlu1 %v352_v43  ;;  %356 = vadd.xlane.f32.xlu0 %v355_v50 }
  0xb0   : > { %v341_v52 = vmul.f32 %v1044_v48, %v1044_v48  ;;  %v342_v53 = vmul.f32 %v1047_v49, %v1047_v49 }
  0xb2   : > { %v361_v54 = vsel %vm293_vm0, %v341_v52, 0.0  ;;  %v364_v55 = vsel %vm293_vm0, %v342_v53, 0.0 }
  0xb3   : > { %359 = vadd.xlane.f32.xlu1 %v358_v51  ;;  %362 = vadd.xlane.f32.xlu0 %v361_v54 }
  0xb7   : > { %365 = vadd.xlane.f32.xlu1 %v364_v55 }
 0x134   : > { %v345_v58 = vpop.xlane.xlu0 %344 }
 0x135   : > { %v367_v59 = vmul.f32 0.03125, %v345_v58 }
 0x137   : > { %v375_v60 = vadd.f32 1e-05, %v367_v59 }
 0x138   : > { %v348_v61 = vpop.xlane.xlu1 %347  ;;  %v351_v62 = vpop.xlane.xlu0 %350 }
 0x139   : > { %881 = vrsqrt.f32 %v375_v60  ;;  %v368_v63 = vmul.f32 0.03125, %v348_v61  ;;  %v369_v3 = vmul.f32 0.03125, %v351_v62 }
 0x13b   : > { %v376_v4 = vadd.f32 1e-05, %v368_v63  ;;  %v377_v6 = vadd.f32 1e-05, %v369_v3 }
 0x13c   : > { %v354_v7 = vpop.xlane.xlu1 %353  ;;  %v357_v10 = vpop.xlane.xlu0 %356 }
 0x13d   : > { %883 = vrsqrt.f32 %v376_v4  ;;  %v370_v11 = vmul.f32 0.03125, %v354_v7  ;;  %v371_v14 = vmul.f32 0.03125, %v357_v10  ;;  %v880_v7 = vld [vmem:[%s1174_s5 + $0x18] sm:$0xff]   ;;  %v807_v10 = vld [vmem:[%s1173_s4] ss:$0 sm:$0xff] }
 0x13e   : > { %885 = vrsqrt.f32 %v377_v6  ;;  %v879_v6 = vld [vmem:[%s1174_s5 + $0x10] sm:$0xff]  }
 0x13f   : > { %v378_v15 = vadd.f32 1e-05, %v370_v11  ;;  %v379_v16 = vadd.f32 1e-05, %v371_v14 }
 0x140   : > { %v360_v17 = vpop.xlane.xlu1 %359  ;;  %v363_v18 = vpop.xlane.xlu0 %362 }
 0x141   : > { %887 = vrsqrt.f32 %v378_v15  ;;  %v372_v19 = vmul.f32 0.03125, %v360_v17  ;;  %v373_v22 = vmul.f32 0.03125, %v363_v18 }
 0x142   : > { %889 = vrsqrt.f32 %v379_v16 }
 0x143   : > { %v882_v23 = vpop.eup %881  ;;  %v380_v24 = vadd.f32 1e-05, %v372_v19  ;;  %v381_v25 = vadd.f32 1e-05, %v373_v22 }
 0x144   : > { %v366_v26 = vpop.xlane.xlu1 %365  ;;  %v391_v27 = vmul.f32 %v882_v23, %v1010_v20  ;;  %v806_v20 = vld [vmem:[%s1171_s2] ss:$0 sm:$0xff] }
 0x145   : > { %891 = vrsqrt.f32 %v380_v24  ;;  %v374_v30 = vmul.f32 0.03125, %v366_v26 }
 0x146   : > { %893 = vrsqrt.f32 %v381_v25  ;;  %v405_v36 = vmul.f32 %v805_v31, %v391_v27 }
 0x147   : > { %v884_v32 = vpop.eup %883  ;;  %v382_v33 = vadd.f32 1e-05, %v374_v30 }
 0x148   : > { %v886_v34 = vpop.eup %885  ;;  %v392_v35 = vmul.f32 %v884_v32, %v1020_v28  ;;  %v419_v44 = vadd.f32 %v806_v20, %v405_v36 }
 0x149   : > { %v393_v37 = vmul.f32 %v886_v34, %v1013_v21  ;;  %895 = vrsqrt.f32 %v382_v33 }
 0x14a   : > { %v406_v40 = vmul.f32 %v805_v31, %v392_v35 }
 0x14b   : > { %v888_v41 = vpop.eup %887  ;;  %v407_v46 = vmul.f32 %v805_v31, %v393_v37 }
 0x14c   : > { %v890_v42 = vpop.eup %889  ;;  %v394_v43 = vmul.f32 %v888_v41, %v1023_v29  ;;  %v420_v45 = vadd.f32 %v806_v20, %v406_v40 }
 0x14d   : > { %v395_v47 = vmul.f32 %v890_v42, %v1032_v38  ;;  %v421_v53 = vadd.f32 %v806_v20, %v407_v46 }
 0x14e   : > { %v427_v50 = vpack.c.bf16 %v420_v45, %v419_v44  ;;  %v408_v28 = vmul.f32 %v805_v31, %v394_v43 }
 0x14f   : > { %v892_v51 = vpop.eup %891  ;;  %v409_v55 = vmul.f32 %v805_v31, %v395_v47 }
 0x150   : > { %v894_v52 = vpop.eup %893  ;;  %v396_v21 = vmul.f32 %v892_v51, %v1035_v39  ;;  %843 = vmatprep.mubr.msk.bf16.mxu0 %vm293_vm0, %v427_v50  ;;  %v422_v54 = vadd.f32 %v806_v20, %v408_v28 }
 0x151   : > { %v397_v56 = vmul.f32 %v894_v52, %v1044_v48  ;;  %v423_v38 = vadd.f32 %v806_v20, %v409_v55  ;;  %v877_v48 = vld [vmem:[%s1174_s5] sm:$0xff]  }
 0x152   : > { %v428_v57 = vpack.c.bf16 %v422_v54, %v421_v53  ;;  %v410_v29 = vmul.f32 %v805_v31, %v396_v21  ;;  %851 = vmatprep.subr.bf16.mxu1 %v877_v48 }
 0x153   : > { %v896_v58 = vpop.eup %895  ;;  %v411_v61 = vmul.f32 %v805_v31, %v397_v56  ;;  %852 = vmatpush3.bf16.msra.mxu1 %v877_v48 }
 0x154   : > { %v398_v59 = vmul.f32 %v896_v58, %v1047_v49  ;;  %844 = vmatmul.mubr.msk.bf16.vlgmr.msra.gmra.mrb[0].mxu0 %vm293_vm0, %v428_v57  ;;  %v424_v60 = vadd.f32 %v806_v20, %v410_v29  ;;  %v878_v49 = vld [vmem:[%s1174_s5 + $0x8] sm:$0xff]  }
 0x155   : > { %v425_v39 = vadd.f32 %v806_v20, %v411_v61  ;;  %853 = vmatprep.subr.bf16.mxu1 %v878_v49 }
 0x156   : > { %v429_v62 = vpack.c.bf16 %v424_v60, %v423_v38  ;;  %v412_v63 = vmul.f32 %v805_v31, %v398_v59 }
 0x157   : > { %854 = vmatpush3.bf16.msra.mxu1 %v878_v49 }
 0x158   : > { %847 = vmatprep.mubr.msk.bf16.mxu0 %vm293_vm0, %v429_v62  ;;  %v426_v3 = vadd.f32 %v806_v20, %v412_v63  ;;  %855 = vmatprep.subr.bf16.mxu1 %v879_v6 }
 0x15a   : > { %v430_v4 = vpack.c.bf16 %v426_v3, %v425_v39 }
 0x15b   : > { %856 = vmatpush3.bf16.msra.mxu1 %v879_v6 }
 0x15c   : > { %848 = vmatmul.mubr.msk.bf16.gmra.mrb[4].mxu0 %vm293_vm0, %v430_v4  ;;  %857 = vmatprep.subr.bf16.mxu1 %v880_v7 }
 0x15f   : > { %858 = vmatpush3.bf16.msra.mxu1 %v880_v7 }
 0x227   : > { %v845_v11 = vpop.f32.mrb[0].mxu0 }
 0x228   : > { %v1096_v14 = vadd.f32 %v845_v11, %v807_v10  ;;  %v500_v15 = vpop.f32.mrb[1].mxu0 }
 0x229   : > { %v1098_v16 = vadd.f32 %v807_v10, %v500_v15  ;;  %v846_v17 = vpop.f32.mrb[2].mxu0 }
 0x22a   : > { %v541_v18 = vmul.f32 0.044715, %v1096_v14  ;;  %v1101_v19 = vadd.f32 %v846_v17, %v807_v10  ;;  %v503_v22 = vpop.f32.mrb[3].mxu0 }
 0x22b   : > { %v539_v23 = vmul.f32 0.044715, %v1098_v16  ;;  %v1104_v24 = vadd.f32 %v807_v10, %v503_v22 }
 0x22c   : > { %v549_v25 = vmul.f32 %v541_v18, %v1096_v14  ;;  %v542_v26 = vmul.f32 0.044715, %v1101_v19 }
 0x22d   : > { %v547_v27 = vmul.f32 %v539_v23, %v1098_v16  ;;  %v540_v30 = vmul.f32 0.044715, %v1104_v24 }
 0x22e   : > { %v557_v31 = vmul.f32 %v549_v25, %v1096_v14  ;;  %v550_v32 = vmul.f32 %v542_v26, %v1101_v19  ;;  %v533_v25 = vmul.f32 0.5, %v1096_v14  ;;  %v534_v26 = vmul.f32 0.5, %v1101_v19 }
 0x22f   : > { %v548_v33 = vmul.f32 %v540_v30, %v1104_v24  ;;  %v849_v34 = vpop.f32.mrb[4].mxu0  ;;  %v555_v35 = vmul.f32 %v547_v27, %v1098_v16  ;;  %v531_v30 = vmul.f32 0.5, %v1098_v16 }
 0x230   : > { %v565_v36 = vadd.f32 %v557_v31, %v1096_v14  ;;  %v558_v37 = vmul.f32 %v550_v32, %v1101_v19  ;;  %v1116_v20 = vadd.f32 %v849_v34, %v807_v10  ;;  %v516_v40 = vpop.f32.mrb[5].mxu0  ;;  %v532_v31 = vmul.f32 0.5, %v1104_v24 }
 0x231   : > { %v1118_v41 = vadd.f32 %v807_v10, %v516_v40  ;;  %v850_v42 = vpop.f32.mrb[6].mxu0  ;;  %v556_v43 = vmul.f32 %v548_v33, %v1104_v24  ;;  %v563_v44 = vadd.f32 %v555_v35, %v1098_v16 }
 0x232   : > { %v573_v45 = vmul.f32 0.7978846, %v565_v36  ;;  %v566_v46 = vadd.f32 %v558_v37, %v1101_v19  ;;  %v545_v47 = vmul.f32 0.044715, %v1116_v20  ;;  %v528_v50 = vadd.f32 %v850_v42, %v807_v10  ;;  %v519_v28 = vpop.f32.mrb[7].mxu0 }
 0x233   : > { %v543_v51 = vmul.f32 0.044715, %v1118_v41  ;;  %v520_v52 = vadd.f32 %v807_v10, %v519_v28  ;;  %v564_v21 = vadd.f32 %v556_v43, %v1104_v24  ;;  %v571_v53 = vmul.f32 0.7978846, %v563_v44 }
 0x234   : > { %897 = vtanh.f32 %v573_v45  ;;  %v574_v54 = vmul.f32 0.7978846, %v566_v46  ;;  %v553_v55 = vmul.f32 %v545_v47, %v1116_v20  ;;  %v546_v56 = vmul.f32 0.044715, %v528_v50 }
 0x235   : > { %v551_v57 = vmul.f32 %v543_v51, %v1118_v41  ;;  %v544_v29 = vmul.f32 0.044715, %v520_v52  ;;  %v572_v58 = vmul.f32 0.7978846, %v564_v21  ;;  %899 = vtanh.f32 %v571_v53 }
 0x236   : > { %901 = vtanh.f32 %v574_v54  ;;  %v561_v59 = vmul.f32 %v553_v55, %v1116_v20  ;;  %v554_v38 = vmul.f32 %v546_v56, %v528_v50  ;;  %v537_v16 = vmul.f32 0.5, %v1116_v20 }
 0x237   : > { %v559_v60 = vmul.f32 %v551_v57, %v1118_v41  ;;  %v552_v61 = vmul.f32 %v544_v29, %v520_v52  ;;  %903 = vtanh.f32 %v572_v58  ;;  %v538_v24 = vmul.f32 0.5, %v528_v50 }
 0x238   : > { %v569_v62 = vadd.f32 %v561_v59, %v1116_v20  ;;  %v562_v63 = vmul.f32 %v554_v38, %v528_v50  ;;  %v535_v47 = vmul.f32 0.5, %v1118_v41  ;;  %v536_v28 = vmul.f32 0.5, %v520_v52  ;;  %v814_v20 = vld [vmem:[%s1175_s6] ss:$0 sm:$0xff] }
 0x239   : > { %v567_v39 = vadd.f32 %v559_v60, %v1118_v41  ;;  %v560_v3 = vmul.f32 %v552_v61, %v520_v52 }
 0x23a   : > { %v577_v4 = vmul.f32 0.7978846, %v569_v62  ;;  %v570_v48 = vadd.f32 %v562_v63, %v528_v50 }
 0x23b   : > { %v575_v49 = vmul.f32 0.7978846, %v567_v39  ;;  %v568_v6 = vadd.f32 %v560_v3, %v520_v52 }
 0x23c   : > { %905 = vtanh.f32 %v577_v4  ;;  %v578_v7 = vmul.f32 0.7978846, %v570_v48 }
 0x23d   : > { %907 = vtanh.f32 %v575_v49  ;;  %v576_v10 = vmul.f32 0.7978846, %v568_v6 }
 0x23e   : > { %v898_v11 = vpop.eup %897  ;;  %909 = vtanh.f32 %v578_v7 }
 0x23f   : > { %v900_v15 = vpop.eup %899  ;;  %911 = vtanh.f32 %v576_v10  ;;  %v589_v17 = vadd.f32 1.0, %v898_v11 }
 0x240   : > { %v902_v18 = vpop.eup %901  ;;  %v587_v22 = vadd.f32 1.0, %v900_v15 }
 0x241   : > { %v904_v23 = vpop.eup %903  ;;  %v590_v27 = vadd.f32 1.0, %v902_v18  ;;  %v597_v33 = vmul.f32 %v589_v17, %v533_v25 }
 0x242   : > { %v588_v32 = vadd.f32 1.0, %v904_v23  ;;  %v595_v35 = vmul.f32 %v587_v22, %v531_v30 }
 0x243   : > { %v598_v34 = vmul.f32 %v590_v27, %v534_v26 }
 0x244   : > { %v596_v36 = vmul.f32 %v588_v32, %v532_v31 }
 0x245   : > { %v604_v37 = vpack.c.bf16 %v598_v34, %v597_v33 }
 0x246   : > { %v906_v40 = vpop.eup %905  ;;  %v603_v42 = vpack.c.bf16 %v596_v36, %v595_v35 }
 0x247   : > { %v908_v43 = vpop.eup %907  ;;  %v593_v44 = vadd.f32 1.0, %v906_v40 }
 0x248   : > { %v910_v45 = vpop.eup %909  ;;  %859 = vmatprep.mubr.msk.bf16.mxu1 %vm646_vm1, %v603_v42  ;;  %v591_v14 = vadd.f32 1.0, %v908_v43 }
 0x249   : > { %v912_v19 = vpop.eup %911  ;;  %860 = vmatmul.mubr.msk.bf16.vlgmr.msra.gmra.mrb[0].mxu1 %vm646_vm1, %v604_v37  ;;  %v594_v46 = vadd.f32 1.0, %v910_v45  ;;  %v601_v21 = vmul.f32 %v593_v44, %v537_v16 }
 0x24a   : > { %v592_v51 = vadd.f32 1.0, %v912_v19  ;;  %v599_v54 = vmul.f32 %v591_v14, %v535_v47 }
 0x24b   : > { %v602_v53 = vmul.f32 %v594_v46, %v538_v24 }
 0x24c   : > { %v600_v55 = vmul.f32 %v592_v51, %v536_v28 }
 0x24d   : > { %v606_v56 = vpack.c.bf16 %v602_v53, %v601_v21 }
 0x24e   : > { %v605_v57 = vpack.c.bf16 %v600_v55, %v599_v54 }
 0x250   : > { %863 = vmatprep.mubr.msk.bf16.mxu1 %vm646_vm1, %v605_v57 }
 0x251   : > { %864 = vmatmul.mubr.msk.bf16.gmra.mrb[4].mxu1 %vm646_vm1, %v606_v56 }
 0x31c   : > { %v861_v50 = vpop.f32.mrb[0].mxu1 }
 0x31d   : > { %v702_v29 = vadd.f32 %v861_v50, %v814_v20  ;;  %v693_v58 = vpop.f32.mrb[1].mxu1 }
 0x31e   : > { %v694_v41 = vadd.f32 %v814_v20, %v693_v58  ;;  %v862_v52 = vpop.f32.mrb[2].mxu1 }
 0x31f   : > { %v726_v59 = vadd.f32 %v702_v29, %v979_v1  ;;  %v705_v38 = vadd.f32 %v862_v52, %v814_v20  ;;  %v696_v60 = vpop.f32.mrb[3].mxu1 }
 0x320   : > { %v724_v61 = vadd.f32 %v694_v41, %v977_v0  ;;  %v697_v62 = vadd.f32 %v814_v20, %v696_v60 }
 0x321   : > { %734 = vst.msk [vmem:[%s280_s10 + $0x10] sm:$0xff] %vm293_vm0, %v726_v59  ;;  %v727_v63 = vadd.f32 %v705_v38, %v987_v5 }
 0x322   : > { %732 = vst.msk [vmem:[%s280_s10] sm:$0xff] %vm293_vm0, %v724_v61  ;;  %v725_v39 = vadd.f32 %v697_v62, %v981_v2 }
 0x323   : > { %735 = vst.msk [vmem:[%s280_s10 + $0x18] sm:$0xff] %vm293_vm0, %v727_v63 }
 0x324   : > { %733 = vst.msk [vmem:[%s280_s10 + $0x8] sm:$0xff] %vm293_vm0, %v725_v39  ;;  %v865_v3 = vpop.f32.mrb[4].mxu1 }
 0x325   : > { %v718_v4 = vadd.f32 %v865_v3, %v814_v20  ;;  %v709_v1 = vpop.f32.mrb[5].mxu1 }
 0x326   : > { %v710_v48 = vadd.f32 %v814_v20, %v709_v1  ;;  %v866_v49 = vpop.f32.mrb[6].mxu1 }
 0x327   : > { %v730_v0 = vadd.f32 %v718_v4, %v1001_v12  ;;  %v721_v6 = vadd.f32 %v866_v49, %v814_v20  ;;  %v712_v7 = vpop.f32.mrb[7].mxu1 }
 0x328   : > { %v728_v10 = vadd.f32 %v710_v48, %v993_v8  ;;  %v713_v5 = vadd.f32 %v814_v20, %v712_v7 }
 0x329   : > { %738 = vst.msk [vmem:[%s280_s10 + $0x30] sm:$0xff] %vm293_vm0, %v730_v0  ;;  %v731_v2 = vadd.f32 %v721_v6, %v1003_v13 }
 0x32a   : > { %736 = vst.msk [vmem:[%s280_s10 + $0x20] sm:$0xff] %vm293_vm0, %v728_v10  ;;  %v729_v11 = vadd.f32 %v713_v5, %v995_v9 }
 0x32b   : > { %739 = vst.msk [vmem:[%s280_s10 + $0x38] sm:$0xff] %vm293_vm0, %v731_v2 }
 0x32c   : > { %737 = vst.msk [vmem:[%s280_s10 + $0x28] sm:$0xff] %vm293_vm0, %v729_v11 }
 0x32d PF: > { %s17_s24 = sadd.s32 1, %s919_s24  }
 0x32e   : > { %p14_p4 = scmp.ge.s32.totalorder %s17_s24, 6  }
 0x330   :  { %16 = sbr.rel (!%p14_p4) target bundleno = 1 (0x1), region = 78 }

// kernel: basic_layer_forward.8
= control target key start
LH: loop header
LB: loop body
LE: loop exit
PB: predicated region body
PF: predicated region fallthrough
CT: control target
= control target key end

     0   :  { %s1458_s24 = smov 0   ;;  %s1702_s0 = inlined_call_operand.vmem [shape: f32[16,16,32], index: 0, kind: input, shape index: {}]   ;;  %s1703_s1 = inlined_call_operand.vmem [shape: f32[1,32], index: 1, kind: input, shape index: {}]   ;;  %s1704_s2 = inlined_call_operand.vmem [shape: f32[1,32], index: 2, kind: input, shape index: {}]   ;;  %s1705_s3 = inlined_call_operand.vmem [shape: bf16[32,96], index: 3, kind: input, shape index: {}]   ;;  %s1706_s4 = inlined_call_operand.vmem [shape: f32[1,96], index: 4, kind: input, shape index: {}]   ;;  %s1707_s5 = inlined_call_operand.vmem [shape: bf16[32,32], index: 5, kind: input, shape index: {}]   ;;  %s1708_s6 = inlined_call_operand.vmem [shape: f32[1,32], index: 6, kind: input, shape index: {}]   ;;  %s1709_s7 = inlined_call_operand.vmem [shape: f32[16,16,32], index: 7, kind: output, shape index: {}]  }
   0x1 LB: > { %s1199_s25 = sadd.s32 4294967295, %s1412_s24   ;;  %p1203_p0 = scmp.ge.s32.totalorder %s1412_s24, 1  ;;  %s1412_s24 = sphi %s1458_s24, %s17_s24  }
   0x2   : > { %p239_p1 = scmp.lt.s32.totalorder %s1412_s24, 5 }
   0x4   : > { %p240_p2 = pnand %p1203_p0, %p239_p1 }
   0x5   : > { %s1204_s26 = sshll.u32 (!%p240_p2), %s1199_s25, 2  ;;  %vm298_vm0 = vcmask (!%p240_p2), 261120   ;;  %v1354_v56 = vld [vmem:[%s1705_s3] sm:$0xff] (!%p240_p2)   ;;  %v1355_v57 = vld [vmem:[%s1705_s3 + $0x8] sm:$0xff] (!%p240_p2)   ;;  %vm1415_vm1 = vmmov (!%p240_p2), 0   ;;  %s1416_s18 = smov (!%p240_p2), 96  }
   0x6   : > { %243 = sbr.rel (%p240_p2) target bundleno = 1717 (0x6b5), region = 48  ;;  %p274_p3 = scmp.lt.s32.totalorder (!%p240_p2), %s1204_s26, 15  ;;  %1266 = vmatprep.subr.bf16.mxu0 (!%p240_p2), %v1354_v56  ;;  %1338 = vmatprep.subr.bf16.mxu1 (!%p240_p2), %v1354_v56  ;;  %vm740_vm2 = vcmask (!%p240_p2), 130048  }
   0x7   : > { %1267 = vmatpush3.bf16.msra.mxu0 (!%p240_p2), %v1354_v56  ;;  %1340 = vmatpush3.bf16.msra.mxu1 (!%p240_p2), %v1354_v56  ;;  %s1417_s19 = smov (!%p240_p2), 64  }
   0x8   : > { %1268 = vmatprep.subr.bf16.mxu0 (!%p240_p2), %v1355_v57  ;;  %1339 = vmatprep.subr.bf16.mxu1 (!%p240_p2), %v1355_v57 }
   0xb   : > { %1269 = vmatpush3.bf16.msra.mxu0 (!%p240_p2), %v1355_v57  ;;  %1341 = vmatpush3.bf16.msra.mxu1 (!%p240_p2), %v1355_v57 }
   0xd   : > { %s1711_s26 = smov (!%p274_p3, %s1204_s26), 15 }
   0xe   : > { %s1236_s27 = sshll.u32 %s1711_s26, 4 }
   0xf   : > { %s278_s30 = scalar_lea.vmem %s1702_s0, %s1236_s27  ;;  %s285_s8 = scalar_lea.vmem %s1709_s7, %s1236_s27 }
  0x10   : > { %v1474_v0 = vld [vmem:[%s278_s30] sm:$0xff]  ;;  %v1476_v1 = vld [vmem:[%s278_s30 + $0x10] sm:$0xff]  ;;  %v1478_v2 = vld [vmem:[%s278_s30 + $0x8] sm:$0xff] }
  0x11   : > { %v299_v3 = vsel %vm298_vm0, %v1474_v0, 0.0  ;;  %v305_v4 = vsel %vm298_vm0, %v1476_v1, 0.0  ;;  %v1484_v5 = vld [vmem:[%s278_s30 + $0x18] sm:$0xff]  ;;  %v302_v6 = vsel %vm298_vm0, %v1478_v2, 0.0  ;;  %v1490_v8 = vld [vmem:[%s278_s30 + $0x20] sm:$0xff]  ;;  %v1492_v9 = vld [vmem:[%s278_s30 + $0x28] sm:$0xff] }
  0x12   : > { %300 = vadd.xlane.f32.xlu0 %v299_v3  ;;  %306 = vadd.xlane.f32.xlu1 %v305_v4  ;;  %v308_v7 = vsel %vm298_vm0, %v1484_v5, 0.0  ;;  %v311_v10 = vsel %vm298_vm0, %v1490_v8, 0.0  ;;  %v314_v11 = vsel %vm298_vm0, %v1492_v9, 0.0  ;;  %v1498_v12 = vld [vmem:[%s278_s30 + $0x30] sm:$0xff]  ;;  %v1500_v13 = vld [vmem:[%s278_s30 + $0x38] sm:$0xff] }
  0x13   : > { %v317_v14 = vsel %vm298_vm0, %v1498_v12, 0.0  ;;  %v320_v15 = vsel %vm298_vm0, %v1500_v13, 0.0 }
  0x16   : > { %303 = vadd.xlane.f32.xlu0 %v302_v6  ;;  %309 = vadd.xlane.f32.xlu1 %v308_v7 }
  0x1a   : > { %312 = vadd.xlane.f32.xlu0 %v311_v10  ;;  %315 = vadd.xlane.f32.xlu1 %v314_v11 }
  0x1e   : > { %318 = vadd.xlane.f32.xlu0 %v317_v14  ;;  %321 = vadd.xlane.f32.xlu1 %v320_v15 }
  0x9f   : > { %v301_v16 = vpop.xlane.xlu0 %300  ;;  %v307_v17 = vpop.xlane.xlu1 %306 }
  0xa0   : > { %v324_v18 = vmul.f32 0.03125, %v301_v16  ;;  %v326_v19 = vmul.f32 0.03125, %v307_v17 }
  0xa2   : > { %v1507_v20 = vsub.f32 %v1474_v0, %v324_v18  ;;  %v1510_v21 = vsub.f32 %v1476_v1, %v326_v19 }
  0xa3   : > { %v304_v22 = vpop.xlane.xlu0 %303  ;;  %v310_v23 = vpop.xlane.xlu1 %309 }
  0xa4   : > { %v325_v24 = vmul.f32 0.03125, %v304_v22  ;;  %v327_v25 = vmul.f32 0.03125, %v310_v23  ;;  %v340_v26 = vmul.f32 %v1507_v20, %v1507_v20  ;;  %v342_v27 = vmul.f32 %v1510_v21, %v1510_v21 }
  0xa6   : > { %v1517_v28 = vsub.f32 %v1478_v2, %v325_v24  ;;  %v1520_v29 = vsub.f32 %v1484_v5, %v327_v25  ;;  %v348_v30 = vsel %vm298_vm0, %v340_v26, 0.0  ;;  %v354_v33 = vsel %vm298_vm0, %v342_v27, 0.0 }
  0xa7   : > { %349 = vadd.xlane.f32.xlu0 %v348_v30  ;;  %v313_v31 = vpop.xlane.xlu0 %312  ;;  %v316_v32 = vpop.xlane.xlu1 %315 }
  0xa8   : > { %v328_v34 = vmul.f32 0.03125, %v313_v31  ;;  %v329_v35 = vmul.f32 0.03125, %v316_v32  ;;  %v341_v36 = vmul.f32 %v1517_v28, %v1517_v28  ;;  %v343_v37 = vmul.f32 %v1520_v29, %v1520_v29  ;;  %v1210_v31 = vld [vmem:[%s1703_s1] ss:$0 sm:$0xff] }
  0xaa   : > { %v1529_v38 = vsub.f32 %v1490_v8, %v328_v34  ;;  %v1532_v39 = vsub.f32 %v1492_v9, %v329_v35  ;;  %v351_v40 = vsel %vm298_vm0, %v341_v36, 0.0  ;;  %v357_v43 = vsel %vm298_vm0, %v343_v37, 0.0 }
  0xab   : > { %355 = vadd.xlane.f32.xlu0 %v354_v33  ;;  %352 = vadd.xlane.f32.xlu1 %v351_v40  ;;  %v319_v41 = vpop.xlane.xlu0 %318  ;;  %v322_v42 = vpop.xlane.xlu1 %321 }
  0xac   : > { %v330_v44 = vmul.f32 0.03125, %v319_v41  ;;  %v331_v45 = vmul.f32 0.03125, %v322_v42  ;;  %v344_v46 = vmul.f32 %v1529_v38, %v1529_v38  ;;  %v345_v47 = vmul.f32 %v1532_v39, %v1532_v39 }
  0xae   : > { %v1541_v48 = vsub.f32 %v1498_v12, %v330_v44  ;;  %v1544_v49 = vsub.f32 %v1500_v13, %v331_v45  ;;  %v360_v50 = vsel %vm298_vm0, %v344_v46, 0.0  ;;  %v363_v51 = vsel %vm298_vm0, %v345_v47, 0.0 }
  0xaf   : > { %358 = vadd.xlane.f32.xlu1 %v357_v43  ;;  %361 = vadd.xlane.f32.xlu0 %v360_v50 }
  0xb0   : > { %v346_v52 = vmul.f32 %v1541_v48, %v1541_v48  ;;  %v347_v53 = vmul.f32 %v1544_v49, %v1544_v49 }
  0xb2   : > { %v366_v54 = vsel %vm298_vm0, %v346_v52, 0.0  ;;  %v369_v55 = vsel %vm298_vm0, %v347_v53, 0.0 }
  0xb3   : > { %364 = vadd.xlane.f32.xlu1 %v363_v51  ;;  %367 = vadd.xlane.f32.xlu0 %v366_v54 }
  0xb7   : > { %370 = vadd.xlane.f32.xlu1 %v369_v55 }
 0x134   : > { %v350_v58 = vpop.xlane.xlu0 %349 }
 0x135   : > { %v372_v59 = vmul.f32 0.03125, %v350_v58 }
 0x137   : > { %v380_v60 = vadd.f32 1e-05, %v372_v59 }
 0x138   : > { %v353_v61 = vpop.xlane.xlu1 %352  ;;  %v356_v62 = vpop.xlane.xlu0 %355 }
 0x139   : > { %1358 = vrsqrt.f32 %v380_v60  ;;  %v373_v63 = vmul.f32 0.03125, %v353_v61  ;;  %v374_v3 = vmul.f32 0.03125, %v356_v62 }
 0x13b   : > { %v381_v4 = vadd.f32 1e-05, %v373_v63  ;;  %v382_v6 = vadd.f32 1e-05, %v374_v3 }
 0x13c   : > { %v359_v7 = vpop.xlane.xlu1 %358  ;;  %v362_v10 = vpop.xlane.xlu0 %361 }
 0x13d   : > { %1360 = vrsqrt.f32 %v381_v4  ;;  %v375_v11 = vmul.f32 0.03125, %v359_v7  ;;  %v376_v14 = vmul.f32 0.03125, %v362_v10 }
 0x13e   : > { %1362 = vrsqrt.f32 %v382_v6  ;;  %v1212_v6 = vld [vmem:[%s1706_s4] ss:$0 sm:$0xff] }
 0x13f   : > { %v383_v15 = vadd.f32 1e-05, %v375_v11  ;;  %v384_v16 = vadd.f32 1e-05, %v376_v14 }
 0x140   : > { %v365_v17 = vpop.xlane.xlu1 %364  ;;  %v368_v18 = vpop.xlane.xlu0 %367 }
 0x141   : > { %1364 = vrsqrt.f32 %v383_v15  ;;  %v377_v19 = vmul.f32 0.03125, %v365_v17  ;;  %v378_v22 = vmul.f32 0.03125, %v368_v18 }
 0x142   : > { %1366 = vrsqrt.f32 %v384_v16 }
 0x143   : > { %v1359_v23 = vpop.eup %1358  ;;  %v385_v24 = vadd.f32 1e-05, %v377_v19  ;;  %v386_v25 = vadd.f32 1e-05, %v378_v22 }
 0x144   : > { %v371_v26 = vpop.xlane.xlu1 %370  ;;  %v396_v27 = vmul.f32 %v1359_v23, %v1507_v20  ;;  %v1211_v20 = vld [vmem:[%s1704_s2] ss:$0 sm:$0xff] }
 0x145   : > { %1368 = vrsqrt.f32 %v385_v24  ;;  %v379_v30 = vmul.f32 0.03125, %v371_v26 }
 0x146   : > { %1370 = vrsqrt.f32 %v386_v25  ;;  %v410_v36 = vmul.f32 %v1210_v31, %v396_v27 }
 0x147   : > { %v1361_v32 = vpop.eup %1360  ;;  %v387_v33 = vadd.f32 1e-05, %v379_v30 }
 0x148   : > { %v1363_v34 = vpop.eup %1362  ;;  %v397_v35 = vmul.f32 %v1361_v32, %v1517_v28  ;;  %v424_v44 = vadd.f32 %v1211_v20, %v410_v36 }
 0x149   : > { %v398_v37 = vmul.f32 %v1363_v34, %v1510_v21  ;;  %1372 = vrsqrt.f32 %v387_v33 }
 0x14a   : > { %v411_v40 = vmul.f32 %v1210_v31, %v397_v35 }
 0x14b   : > { %v1365_v41 = vpop.eup %1364  ;;  %v412_v46 = vmul.f32 %v1210_v31, %v398_v37 }
 0x14c   : > { %v1367_v42 = vpop.eup %1366  ;;  %v399_v43 = vmul.f32 %v1365_v41, %v1520_v29  ;;  %v425_v45 = vadd.f32 %v1211_v20, %v411_v40 }
 0x14d   : > { %v400_v47 = vmul.f32 %v1367_v42, %v1529_v38  ;;  %v426_v21 = vadd.f32 %v1211_v20, %v412_v46 }
 0x14e   : > { %v432_v50 = vpack.c.bf16 %v425_v45, %v424_v44  ;;  %v413_v28 = vmul.f32 %v1210_v31, %v399_v43 }
 0x14f   : > { %v1369_v51 = vpop.eup %1368  ;;  %v414_v55 = vmul.f32 %v1210_v31, %v400_v47 }
 0x150   : > { %v1371_v52 = vpop.eup %1370  ;;  %1270 = vmatprep.mubr.msk.bf16.mxu0 %vm298_vm0, %v432_v50  ;;  %v427_v53 = vadd.f32 %v1211_v20, %v413_v28  ;;  %v401_v54 = vmul.f32 %v1369_v51, %v1532_v39 }
 0x151   : > { %v402_v56 = vmul.f32 %v1371_v52, %v1541_v48  ;;  %v428_v38 = vadd.f32 %v1211_v20, %v414_v55  ;;  %v1414_v48 = vmov 0.0  }
 0x152   : > { %v433_v57 = vpack.c.bf16 %v427_v53, %v426_v21  ;;  %v415_v29 = vmul.f32 %v1210_v31, %v401_v54  ;;  %1278 = vmatprep.subr.bf16.mxu1 %v1414_v48  ;;  %1290 = vmatprep.subr.bf16.mxu0 %v1414_v48 }
 0x153   : > { %v1373_v58 = vpop.eup %1372  ;;  %v416_v61 = vmul.f32 %v1210_v31, %v402_v56 }
 0x154   : > { %v403_v59 = vmul.f32 %v1373_v58, %v1544_v49  ;;  %1271 = vmatmul.mubr.msk.bf16.vlgmr.msra.gmra.mrb[0].mxu0 %vm298_vm0, %v433_v57  ;;  %v429_v60 = vadd.f32 %v1211_v20, %v415_v29 }
 0x155   : > { %v430_v3 = vadd.f32 %v1211_v20, %v416_v61  ;;  %1292 = vmatprep.mubr.msk.bf16.mxu0 %vm1415_vm1, %v1414_v48 }
 0x156   : > { %v434_v62 = vpack.c.bf16 %v429_v60, %v428_v38  ;;  %v417_v63 = vmul.f32 %v1210_v31, %v403_v59 }
 0x158   : > { %1274 = vmatprep.mubr.msk.bf16.mxu1 %vm298_vm0, %v434_v62  ;;  %v431_v4 = vadd.f32 %v1211_v20, %v417_v63 }
 0x15a   : > { %v435_v39 = vpack.c.bf16 %v431_v4, %v430_v3 }
 0x15c   : > { %1275 = vmatmul.mubr.msk.bf16.vlgmr.msra.gmra.mrb[0].mxu1 %vm298_vm0, %v435_v39 }
 0x15d   : > { %1280 = vmatprep.mubr.msk.bf16.mxu1 %vm1415_vm1, %v1414_v48 }
 0x227   : > { %v1272_v49 = vpop.f32.mrb[0].mxu0 }
 0x228   : > { %v505_v7 = vpop.f32.mrb[1].mxu0  ;;  %v514_v11 = vadd.f32 %v1272_v49, %v1212_v6 }
 0x229   : > { %v1273_v10 = vpop.f32.mrb[2].mxu0  ;;  %v506_v16 = vadd.f32 %v1212_v6, %v505_v7 }
 0x22a   : > { %v517_v14 = vadd.f32 %v1273_v10, %v1212_v6  ;;  %v508_v15 = vpop.f32.mrb[3].mxu0 }
 0x22b   : > { %v509_v17 = vadd.f32 %v1212_v6, %v508_v15 }
 0x22c   : > { %v1587_v18 = vpack.c.bf16 %v517_v14, %v514_v11 }
 0x22d   : > { %v1589_v19 = vpack.c.bf16 %v509_v17, %v506_v16 }
 0x22e   : > { %591 = vrot.lane.b32.xlu1 %v1587_v18, %s1416_s18 }
 0x22f   : > { %541 = vrot.lane.b32.xlu0 %v1589_v19, %s1416_s18  ;;  %v1276_v22 = vpop.f32.mrb[0].mxu1 }
 0x230   : > { %v521_v23 = vpop.f32.mrb[1].mxu1  ;;  %v530_v25 = vadd.f32 %v1276_v22, %v1212_v6 }
 0x231   : > { %v1277_v24 = vpop.f32.mrb[2].mxu1  ;;  %v522_v30 = vadd.f32 %v1212_v6, %v521_v23 }
 0x232   : > { %v533_v26 = vadd.f32 %v1277_v24, %v1212_v6  ;;  %v524_v27 = vpop.f32.mrb[3].mxu1 }
 0x233   : > { %v525_v31 = vadd.f32 %v1212_v6, %v524_v27 }
 0x234   : > { %v1593_v32 = vpack.c.bf16 %v533_v26, %v530_v25 }
 0x235   : > { %v1595_v33 = vpack.c.bf16 %v525_v31, %v522_v30 }
 0x237   : > { %641 = vrot.lane.b32.xlu1 %v1595_v33, %s1416_s18 }
 0x23b   : > { %691 = vrot.lane.b32.xlu1 %v1593_v32, %s1416_s18 }
 0x2a0   : > { %v592_v36 = vpop.permute.xlu1 %591 }
 0x2a1   : > { %v542_v34 = vpop.permute.xlu0 %541  ;;  %v597_v20 = vsel %vm298_vm0, %v592_v36, 0 }
 0x2a2   : > { %v547_v35 = vsel %vm298_vm0, %v542_v34, 0 }
 0x2a3   : > { %1279 = vmatpush3.bf16.xpose.msra.mxu1 %v547_v35 }
 0x2a4   : > { %1284 = vmatprep.subr.bf16.mxu1 %v1414_v48 }
 0x2a9   : > { %v642_v37 = vpop.permute.xlu1 %641 }
 0x2aa   : > { %v647_v40 = vsel %vm298_vm0, %v642_v37, 0  ;;  %1281 = vmatmul.mubr.msk.bf16.vlgmr.msra.gmra.mrb[4].mxu1 %vm298_vm0, %v1589_v19 }
 0x2ab   : > { %1285 = vmatpush3.bf16.xpose.msra.mxu1 %v597_v20  ;;  %1291 = vmatpush3.bf16.xpose.msra.mxu0 %v647_v40 }
 0x2ac   : > { %1286 = vmatprep.mubr.msk.bf16.mxu1 %vm1415_vm1, %v1414_v48  ;;  %1296 = vmatprep.subr.bf16.mxu1 %v1414_v48 }
 0x2ad   : > { %1302 = vmatprep.subr.bf16.mxu0 %v1414_v48  ;;  %v692_v41 = vpop.permute.xlu1 %691 }
 0x2ae   : > { %v697_v42 = vsel %vm298_vm0, %v692_v41, 0 }
 0x2b2   : > { %1287 = vmatmul.mubr.msk.bf16.vlgmr.msra.gmra.mrb[8].mxu1 %vm298_vm0, %v1587_v18  ;;  %1293 = vmatmul.mubr.msk.bf16.vlgmr.msra.gmra.mrb[4].mxu0 %vm298_vm0, %v1595_v33 }
 0x2b3   : > { %1297 = vmatpush3.bf16.xpose.msra.mxu1 %v697_v42  ;;  %1298 = vmatprep.mubr.msk.bf16.mxu1 %vm1415_vm1, %v1414_v48 }
 0x2b4   : > { %1308 = vmatprep.subr.bf16.mxu1 %v1414_v48  ;;  %1304 = vmatprep.mubr.msk.bf16.mxu0 %vm1415_vm1, %v1414_v48 }
 0x2ba   : > { %1299 = vmatmul.mubr.msk.bf16.vlgmr.msra.gmra.mrb[12].mxu1 %vm298_vm0, %v1593_v32 }
 0x2bb   : > { %1310 = vmatprep.mubr.msk.bf16.mxu1 %vm1415_vm1, %v1414_v48 }
 0x37d   : > { %v583_v43 = vpop.f32.mrb[4].mxu1 }
 0x37e   : > { %v1282_v44 = vpop.f32.mrb[5].mxu1  ;;  %v741_v45 = vsel %vm740_vm2, %v583_v43, -inf }
 0x37f   : > { %742 = vmax.xlane.f32.xlu0 %v741_v45  ;;  %v586_v46 = vpop.f32.mrb[6].mxu1 }
 0x380   : > { %v1283_v47 = vpop.f32.mrb[7].mxu1  ;;  %v744_v50 = vsel %vm740_vm2, %v586_v46, -inf }
 0x381   : > { %745 = vmax.xlane.f32.xlu1 %v744_v50 }
 0x385   : > { %v633_v28 = vpop.f32.mrb[8].mxu1  ;;  %v683_v51 = vpop.f32.mrb[4].mxu0 }
 0x386   : > { %v1288_v52 = vpop.f32.mrb[9].mxu1  ;;  %v1294_v21 = vpop.f32.mrb[5].mxu0  ;;  %v747_v53 = vsel %vm740_vm2, %v633_v28, -inf  ;;  %v753_v60 = vsel %vm740_vm2, %v683_v51, -inf }
 0x387   : > { %v686_v54 = vpop.f32.mrb[6].mxu0  ;;  %748 = vmax.xlane.f32.xlu0 %v747_v53  ;;  %v636_v55 = vpop.f32.mrb[10].mxu1 }
 0x388   : > { %v1289_v56 = vpop.f32.mrb[11].mxu1  ;;  %v1295_v57 = vpop.f32.mrb[7].mxu0  ;;  %v756_v29 = vsel %vm740_vm2, %v686_v54, -inf  ;;  %v750_v58 = vsel %vm740_vm2, %v636_v55, -inf }
 0x389   : > { %757 = vmax.xlane.f32.xlu1 %v756_v29 }
 0x38b   : > { %751 = vmax.xlane.f32.xlu0 %v750_v58 }
 0x38d   : > { %v733_v59 = vpop.f32.mrb[12].mxu1 }
 0x38e   : > { %v1300_v38 = vpop.f32.mrb[13].mxu1  ;;  %v759_v3 = vsel %vm740_vm2, %v733_v59, -inf }
 0x38f   : > { %754 = vmax.xlane.f32.xlu0 %v753_v60  ;;  %v736_v61 = vpop.f32.mrb[14].mxu1 }
 0x390   : > { %v1301_v62 = vpop.f32.mrb[15].mxu1  ;;  %v762_v63 = vsel %vm740_vm2, %v736_v61, -inf }
 0x391   : > { %763 = vmax.xlane.f32.xlu1 %v762_v63 }
 0x393   : > { %760 = vmax.xlane.f32.xlu0 %v759_v3 }
 0x40c   : > { %v743_v4 = vpop.xlane.xlu0 %742 }
 0x40d   : > { %v765_v39 = vsub.f32 %v583_v43, %v743_v4 }
 0x40e   : > { %v746_v49 = vpop.xlane.xlu1 %745 }
 0x40f   : > { %v773_v6 = vmul.f32 1.442695, %v765_v39  ;;  %v766_v7 = vsub.f32 %v586_v46, %v746_v49 }
 0x411   : > { %1374 = vpow2.f32 %v773_v6  ;;  %v775_v10 = vmul.f32 1.442695, %v766_v7 }
 0x413   : > { %1376 = vpow2.f32 %v775_v10 }
 0x414   : > { %v749_v11 = vpop.xlane.xlu0 %748 }
 0x415   : > { %v767_v24 = vsub.f32 %v633_v28, %v749_v11 }
 0x416   : > { %v758_v14 = vpop.xlane.xlu1 %757 }
 0x417   : > { %v770_v15 = vsub.f32 %v686_v54, %v758_v14  ;;  %v777_v35 = vmul.f32 1.442695, %v767_v24 }
 0x418   : > { %v752_v16 = vpop.xlane.xlu0 %751 }
 0x419   : > { %v783_v17 = vmul.f32 1.442695, %v770_v15  ;;  %v768_v22 = vsub.f32 %v636_v55, %v752_v16 }
 0x41b   : > { %v1631_v23 = vpop.eup %1374  ;;  %1378 = vpow2.f32 %v783_v17  ;;  %v779_v25 = vmul.f32 1.442695, %v768_v22 }
 0x41c   : > { %v755_v26 = vpop.xlane.xlu0 %754  ;;  %v789_v27 = vsel %vm740_vm2, %v1631_v23, 0.0 }
 0x41d   : > { %v1377_v30 = vpop.eup %1376  ;;  %1380 = vpow2.f32 %v779_v25  ;;  %v769_v31 = vsub.f32 %v683_v51, %v755_v26  ;;  %790 = vadd.xlane.f32.xlu0 %v789_v27 }
 0x41e   : > { %v792_v34 = vsel %vm740_vm2, %v1377_v30, 0.0  ;;  %v764_v52 = vpop.xlane.xlu1 %763 }
 0x41f   : > { %v781_v36 = vmul.f32 1.442695, %v769_v31  ;;  %793 = vadd.xlane.f32.xlu1 %v792_v34  ;;  %v772_v21 = vsub.f32 %v736_v61, %v764_v52 }
 0x420   : > { %v761_v37 = vpop.xlane.xlu0 %760 }
 0x421   : > { %1382 = vpow2.f32 %v781_v36  ;;  %v771_v20 = vsub.f32 %v733_v59, %v761_v37  ;;  %v787_v53 = vmul.f32 1.442695, %v772_v21 }
 0x422   : > { %1384 = vpow2.f32 %v777_v35 }
 0x423   : > { %v785_v40 = vmul.f32 1.442695, %v771_v20 }
 0x425   : > { %v1636_v41 = vpop.eup %1378  ;;  %1386 = vpow2.f32 %v785_v40 }
 0x426   : > { %v804_v42 = vsel %vm740_vm2, %v1636_v41, 0.0  ;;  %1388 = vpow2.f32 %v787_v53 }
 0x427   : > { %v1381_v43 = vpop.eup %1380  ;;  %805 = vadd.xlane.f32.xlu1 %v804_v42 }
 0x428   : > { %v798_v44 = vsel %vm740_vm2, %v1381_v43, 0.0 }
 0x42b   : > { %v1383_v45 = vpop.eup %1382  ;;  %799 = vadd.xlane.f32.xlu1 %v798_v44 }
 0x42c   : > { %v801_v46 = vsel %vm740_vm2, %v1383_v45, 0.0  ;;  %v1385_v47 = vpop.eup %1384 }
 0x42d   : > { %802 = vadd.xlane.f32.xlu0 %v801_v46  ;;  %v795_v50 = vsel %vm740_vm2, %v1385_v47, 0.0 }
 0x42f   : > { %v1643_v28 = vpop.eup %1386 }
 0x430   : > { %v807_v51 = vsel %vm740_vm2, %v1643_v28, 0.0  ;;  %v1389_v54 = vpop.eup %1388 }
 0x431   : > { %796 = vadd.xlane.f32.xlu0 %v795_v50  ;;  %v810_v55 = vsel %vm740_vm2, %v1389_v54, 0.0 }
 0x435   : > { %808 = vadd.xlane.f32.xlu0 %v807_v51 }
 0x43c   : > { %880 = vrot.lane.b32.xlu1 %v1587_v18, %s1417_s19 }
 0x440   : > { %927 = vrot.lane.b32.xlu1 %v1595_v33, %s1417_s19 }
 0x44b   : > { %833 = vrot.lane.b32.xlu0 %v1589_v19, %s1417_s19 }
 0x464   : > { %811 = vadd.xlane.f32.xlu1 %v810_v55 }
 0x475   : > { %974 = vrot.lane.b32.xlu1 %v1593_v32, %s1417_s19 }
 0x4aa   : > { %v791_v29 = vpop.xlane.xlu0 %790 }
 0x4ac   : > { %v794_v56 = vpop.xlane.xlu1 %793 }
 0x4ad   : > { %1390 = vrcp.f32 %v794_v56 }
 0x4ae   : > { %1392 = vrcp.f32 %v791_v29 }
 0x4b4   : > { %v806_v57 = vpop.xlane.xlu1 %805 }
 0x4b7   : > { %v1391_v59 = vpop.eup %1390 }
 0x4b8   : > { %v800_v58 = vpop.xlane.xlu1 %799  ;;  %v1393_v60 = vpop.eup %1392  ;;  %v822_v32 = vmul.f32 %v1391_v59, %v1377_v30  ;;  %v1357_v30 = vld [vmem:[%s1707_s5 + $0x8] sm:$0xff]  }
 0x4b9   : > { %1394 = vrcp.f32 %v800_v58  ;;  %v821_v61 = vmul.f32 %v1393_v60, %v1631_v23 }
 0x4ba   : > { %v803_v18 = vpop.xlane.xlu0 %802 }
 0x4bb   : > { %1396 = vrcp.f32 %v803_v18  ;;  %v829_v4 = vpack.c.bf16 %v822_v32, %v821_v61 }
 0x4bc   : > { %v881_v33 = vpop.permute.xlu1 %880 }
 0x4bd   : > { %1309 = vmatpush3.bf16.msra.mxu1 %v881_v33 }
 0x4be   : > { %v797_v19 = vpop.xlane.xlu0 %796  ;;  %1320 = vmatprep.subr.bf16.mxu1 %v1414_v48 }
 0x4bf   : > { %1398 = vrcp.f32 %v797_v19 }
 0x4c0   : > { %1400 = vrcp.f32 %v806_v57  ;;  %v928_v7 = vpop.permute.xlu1 %927 }
 0x4c2   : > { %v809_v38 = vpop.xlane.xlu0 %808 }
 0x4c3   : > { %v1395_v63 = vpop.eup %1394  ;;  %1402 = vrcp.f32 %v809_v38 }
 0x4c4   : > { %v824_v49 = vmul.f32 %v1395_v63, %v1381_v43 }
 0x4c5   : > { %v1397_v3 = vpop.eup %1396 }
 0x4c6   : > { %v834_v62 = vpop.permute.xlu0 %833  ;;  %v825_v11 = vmul.f32 %v1397_v3, %v1383_v45 }
 0x4c7   : > { %1303 = vmatpush3.bf16.msra.mxu0 %v834_v62 }
 0x4c8   : > { %1314 = vmatprep.subr.bf16.mxu0 %v1414_v48 }
 0x4c9   : > { %v1399_v39 = vpop.eup %1398 }
 0x4ca   : > { %v823_v6 = vmul.f32 %v1399_v39, %v1385_v47  ;;  %1305 = vmatmul.mubr.msk.bf16.vlgmr.msra.gmra.mrb[8].mxu0 %vm740_vm2, %v829_v4  ;;  %v1401_v10 = vpop.eup %1400 }
 0x4cb   : > { %1315 = vmatpush3.bf16.msra.mxu0 %v928_v7  ;;  %1316 = vmatprep.mubr.msk.bf16.mxu0 %vm1415_vm1, %v1414_v48  ;;  %v826_v15 = vmul.f32 %v1401_v10, %v1636_v41 }
 0x4cc   : > { %v830_v14 = vpack.c.bf16 %v824_v49, %v823_v6 }
 0x4cd   : > { %v831_v16 = vpack.c.bf16 %v826_v15, %v825_v11  ;;  %v1403_v23 = vpop.eup %1402 }
 0x4ce   : > { %1311 = vmatmul.mubr.msk.bf16.vlgmr.msra.gmra.mrb[16].mxu1 %vm740_vm2, %v830_v14  ;;  %v827_v25 = vmul.f32 %v1403_v23, %v1643_v28 }
 0x4cf   : > { %1322 = vmatprep.mubr.msk.bf16.mxu1 %vm1415_vm1, %v1414_v48  ;;  %v1356_v48 = vld [vmem:[%s1707_s5] sm:$0xff]  }
 0x4d0   : > { %1326 = vmatprep.subr.bf16.mxu0 %v1356_v48 }
 0x4d2   : > { %1317 = vmatmul.mubr.msk.bf16.vlgmr.msra.gmra.mrb[12].mxu0 %vm740_vm2, %v831_v16 }
 0x4d3   : > { %1327 = vmatpush3.bf16.msra.mxu0 %v1356_v48 }
 0x4d4   : > { %1328 = vmatprep.subr.bf16.mxu0 %v1357_v30 }
 0x4d7   : > { %1329 = vmatpush3.bf16.msra.mxu0 %v1357_v30 }
 0x4f1   : > { %v812_v17 = vpop.xlane.xlu1 %811 }
 0x4f2   : > { %1404 = vrcp.f32 %v812_v17 }
 0x4f5   : > { %v975_v22 = vpop.permute.xlu1 %974 }
 0x4f6   : > { %1321 = vmatpush3.bf16.msra.mxu1 %v975_v22 }
 0x4fc   : > { %v1405_v24 = vpop.eup %1404 }
 0x4fd   : > { %v828_v26 = vmul.f32 %v1405_v24, %v1389_v54  ;;  %v1227_v54 = vld [vmem:[%s1708_s6] ss:$0 sm:$0xff] }
 0x4ff   : > { %v832_v27 = vpack.c.bf16 %v828_v26, %v827_v25 }
 0x501   : > { %1323 = vmatmul.mubr.msk.bf16.vlgmr.msra.gmra.mrb[20].mxu1 %vm740_vm2, %v832_v27 }
 0x59d   : > { %v873_v31 = vpop.f32.mrb[8].mxu0 }
 0x59e   : > { %v1306_v34 = vpop.f32.mrb[9].mxu0 }
 0x59f   : > { %v876_v35 = vpop.f32.mrb[10].mxu0 }
 0x5a0   : > { %v1021_v36 = vpack.c.bf16 %v876_v35, %v873_v31  ;;  %v1307_v37 = vpop.f32.mrb[11].mxu0 }
 0x5a1   : > { %v920_v20 = vpop.f32.mrb[16].mxu1 }
 0x5a2   : > { %v1312_v40 = vpop.f32.mrb[17].mxu1  ;;  %1330 = vmatprep.mubr.msk.bf16.mxu0 %vm298_vm0, %v1021_v36 }
 0x5a3   : > { %v923_v41 = vpop.f32.mrb[18].mxu1 }
 0x5a4   : > { %v1022_v42 = vpack.c.bf16 %v923_v41, %v920_v20  ;;  %v1313_v43 = vpop.f32.mrb[19].mxu1 }
 0x5a5   : > { %v967_v44 = vpop.f32.mrb[12].mxu0 }
 0x5a6   : > { %v1318_v45 = vpop.f32.mrb[13].mxu0  ;;  %1331 = vmatmul.mubr.msk.bf16.vlgmr.msra.gmra.mrb[16].mxu0 %vm298_vm0, %v1022_v42 }
 0x5a7   : > { %v970_v46 = vpop.f32.mrb[14].mxu0 }
 0x5a8   : > { %v1023_v47 = vpack.c.bf16 %v970_v46, %v967_v44  ;;  %v1319_v50 = vpop.f32.mrb[15].mxu0 }
 0x5aa   : > { %1334 = vmatprep.mubr.msk.bf16.mxu0 %vm298_vm0, %v1023_v47 }
 0x5d4   : > { %v1014_v28 = vpop.f32.mrb[20].mxu1 }
 0x5d5   : > { %v1324_v51 = vpop.f32.mrb[21].mxu1 }
 0x5d6   : > { %v1017_v52 = vpop.f32.mrb[22].mxu1 }
 0x5d7   : > { %v1024_v21 = vpack.c.bf16 %v1017_v52, %v1014_v28  ;;  %v1325_v53 = vpop.f32.mrb[23].mxu1 }
 0x5d9   : > { %1335 = vmatmul.mubr.msk.bf16.gmra.mrb[20].mxu0 %vm298_vm0, %v1024_v21 }
 0x679   : > { %v1332_v55 = vpop.f32.mrb[16].mxu0 }
 0x67a   : > { %v1103_v56 = vadd.f32 %v1332_v55, %v1227_v54  ;;  %v1094_v57 = vpop.f32.mrb[17].mxu0 }
 0x67b   : > { %v1095_v29 = vadd.f32 %v1227_v54, %v1094_v57  ;;  %v1333_v58 = vpop.f32.mrb[18].mxu0 }
 0x67c   : > { %v1127_v18 = vadd.f32 %v1103_v56, %v1476_v1  ;;  %v1106_v33 = vadd.f32 %v1333_v58, %v1227_v54  ;;  %v1097_v19 = vpop.f32.mrb[19].mxu0 }
 0x67d   : > { %v1125_v59 = vadd.f32 %v1095_v29, %v1474_v0  ;;  %v1098_v38 = vadd.f32 %v1227_v54, %v1097_v19 }
 0x67e   : > { %1135 = vst.msk [vmem:[%s285_s8 + $0x10] sm:$0xff] %vm298_vm0, %v1127_v18  ;;  %v1128_v60 = vadd.f32 %v1106_v33, %v1484_v5 }
 0x67f   : > { %1133 = vst.msk [vmem:[%s285_s8] sm:$0xff] %vm298_vm0, %v1125_v59  ;;  %v1126_v32 = vadd.f32 %v1098_v38, %v1478_v2 }
 0x680   : > { %1136 = vst.msk [vmem:[%s285_s8 + $0x18] sm:$0xff] %vm298_vm0, %v1128_v60 }
 0x681   : > { %1134 = vst.msk [vmem:[%s285_s8 + $0x8] sm:$0xff] %vm298_vm0, %v1126_v32 }
 0x6ac   : > { %v1336_v61 = vpop.f32.mrb[20].mxu0 }
 0x6ad   : > { %v1119_v62 = vadd.f32 %v1336_v61, %v1227_v54  ;;  %v1110_v1 = vpop.f32.mrb[21].mxu0 }
 0x6ae   : > { %v1111_v63 = vadd.f32 %v1227_v54, %v1110_v1  ;;  %v1337_v3 = vpop.f32.mrb[22].mxu0 }
 0x6af   : > { %v1131_v0 = vadd.f32 %v1119_v62, %v1498_v12  ;;  %v1122_v4 = vadd.f32 %v1337_v3, %v1227_v54  ;;  %v1113_v39 = vpop.f32.mrb[23].mxu0 }
 0x6b0   : > { %v1129_v49 = vadd.f32 %v1111_v63, %v1490_v8  ;;  %v1114_v5 = vadd.f32 %v1227_v54, %v1113_v39 }
 0x6b1   : > { %1139 = vst.msk [vmem:[%s285_s8 + $0x30] sm:$0xff] %vm298_vm0, %v1131_v0  ;;  %v1132_v2 = vadd.f32 %v1122_v4, %v1500_v13 }
 0x6b2   : > { %1137 = vst.msk [vmem:[%s285_s8 + $0x20] sm:$0xff] %vm298_vm0, %v1129_v49  ;;  %v1130_v6 = vadd.f32 %v1114_v5, %v1492_v9 }
 0x6b3   : > { %1140 = vst.msk [vmem:[%s285_s8 + $0x38] sm:$0xff] %vm298_vm0, %v1132_v2 }
 0x6b4   : > { %1138 = vst.msk [vmem:[%s285_s8 + $0x28] sm:$0xff] %vm298_vm0, %v1130_v6 }
 0x6b5 PF: > { %s17_s24 = sadd.s32 1, %s1412_s24  }
 0x6b6   : > { %p14_p4 = scmp.ge.s32.totalorder %s17_s24, 6  }
 0x6b8   :  { %16 = sbr.rel (!%p14_p4) target bundleno = 1 (0x1), region = 78 }

// kernel: basic_layer_forward.10
= control target key start
LH: loop header
LB: loop body
LE: loop exit
PB: predicated region body
PF: predicated region fallthrough
CT: control target
= control target key end

     0   :  { %s1498_s27 = smov 0   ;;  %s1770_s0 = inlined_call_operand.vmem [shape: f32[16,16,32], index: 0, kind: input, shape index: {}]   ;;  %s1771_s1 = inlined_call_operand.vmem [shape: f32[4,16,16], index: 1, kind: input, shape index: {}]   ;;  %s1772_s2 = inlined_call_operand.vmem [shape: f32[1,32], index: 2, kind: input, shape index: {}]   ;;  %s1773_s3 = inlined_call_operand.vmem [shape: f32[1,32], index: 3, kind: input, shape index: {}]   ;;  %s1774_s4 = inlined_call_operand.vmem [shape: bf16[32,96], index: 4, kind: input, shape index: {}]   ;;  %s1775_s5 = inlined_call_operand.vmem [shape: f32[1,96], index: 5, kind: input, shape index: {}]   ;;  %s1776_s6 = inlined_call_operand.vmem [shape: bf16[32,32], index: 6, kind: input, shape index: {}]   ;;  %s1777_s7 = inlined_call_operand.vmem [shape: f32[1,32], index: 7, kind: input, shape index: {}]   ;;  %s1778_s8 = inlined_call_operand.vmem [shape: f32[16,16,32], index: 8, kind: output, shape index: {}]  }
   0x1 LB: > { %s1234_s28 = sadd.s32 4294967295, %s1447_s27   ;;  %p1238_p0 = scmp.ge.s32.totalorder %s1447_s27, 1  ;;  %s1447_s27 = sphi %s1498_s27, %s18_s27  }
   0x2   : > { %p264_p1 = scmp.lt.s32.totalorder %s1447_s27, 5 }
   0x4   : > { %p265_p2 = pnand %p1238_p0, %p264_p1 }
   0x5   : > { %s1239_s29 = sshll.u32 (!%p265_p2), %s1234_s28, 2  ;;  %vm325_vm0 = vcmask (!%p265_p2), 261120   ;;  %v1389_v56 = vld [vmem:[%s1774_s4] sm:$0xff] (!%p265_p2)   ;;  %v1390_v57 = vld [vmem:[%s1774_s4 + $0x8] sm:$0xff] (!%p265_p2)   ;;  %vm1450_vm1 = vmmov (!%p265_p2), 0   ;;  %s1451_s22 = smov (!%p265_p2), 96  }
   0x6   : > { %268 = sbr.rel (%p265_p2) target bundleno = 1719 (0x6b7), region = 52  ;;  %p301_p3 = scmp.lt.s32.totalorder (!%p265_p2), %s1239_s29, 15  ;;  %1301 = vmatprep.subr.bf16.mxu0 (!%p265_p2), %v1389_v56  ;;  %1373 = vmatprep.subr.bf16.mxu1 (!%p265_p2), %v1389_v56  ;;  %vm775_vm2 = vcmask (!%p265_p2), 130048  }
   0x7   : > { %1302 = vmatpush3.bf16.msra.mxu0 (!%p265_p2), %v1389_v56  ;;  %1375 = vmatpush3.bf16.msra.mxu1 (!%p265_p2), %v1389_v56  ;;  %s1452_s20 = smov (!%p265_p2), 64  }
   0x8   : > { %1303 = vmatprep.subr.bf16.mxu0 (!%p265_p2), %v1390_v57  ;;  %1374 = vmatprep.subr.bf16.mxu1 (!%p265_p2), %v1390_v57 }
   0xb   : > { %1304 = vmatpush3.bf16.msra.mxu0 (!%p265_p2), %v1390_v57  ;;  %1376 = vmatpush3.bf16.msra.mxu1 (!%p265_p2), %v1390_v57 }
   0xd   : > { %s1780_s29 = smov (!%p301_p3, %s1239_s29), 15 }
   0xe   : > { %s1271_s30 = sshll.u32 %s1780_s29, 4 }
   0xf   : > { %s305_s11 = scalar_lea.vmem %s1770_s0, %s1271_s30  ;;  %s312_s10 = scalar_lea.vmem %s1778_s8, %s1271_s30 }
  0x10   : > { %v1514_v0 = vld [vmem:[%s305_s11] sm:$0xff]  ;;  %v1516_v1 = vld [vmem:[%s305_s11 + $0x10] sm:$0xff]  ;;  %v1518_v2 = vld [vmem:[%s305_s11 + $0x8] sm:$0xff] }
  0x11   : > { %v326_v3 = vsel %vm325_vm0, %v1514_v0, 0.0  ;;  %v332_v4 = vsel %vm325_vm0, %v1516_v1, 0.0  ;;  %v1524_v5 = vld [vmem:[%s305_s11 + $0x18] sm:$0xff]  ;;  %v329_v6 = vsel %vm325_vm0, %v1518_v2, 0.0  ;;  %v1530_v8 = vld [vmem:[%s305_s11 + $0x20] sm:$0xff]  ;;  %v1532_v9 = vld [vmem:[%s305_s11 + $0x28] sm:$0xff] }
  0x12   : > { %327 = vadd.xlane.f32.xlu0 %v326_v3  ;;  %333 = vadd.xlane.f32.xlu1 %v332_v4  ;;  %v335_v7 = vsel %vm325_vm0, %v1524_v5, 0.0  ;;  %v338_v10 = vsel %vm325_vm0, %v1530_v8, 0.0  ;;  %v341_v11 = vsel %vm325_vm0, %v1532_v9, 0.0  ;;  %v1538_v12 = vld [vmem:[%s305_s11 + $0x30] sm:$0xff]  ;;  %v1540_v13 = vld [vmem:[%s305_s11 + $0x38] sm:$0xff] }
  0x13   : > { %v344_v14 = vsel %vm325_vm0, %v1538_v12, 0.0  ;;  %v347_v15 = vsel %vm325_vm0, %v1540_v13, 0.0 }
  0x16   : > { %330 = vadd.xlane.f32.xlu0 %v329_v6  ;;  %336 = vadd.xlane.f32.xlu1 %v335_v7 }
  0x1a   : > { %339 = vadd.xlane.f32.xlu0 %v338_v10  ;;  %342 = vadd.xlane.f32.xlu1 %v341_v11 }
  0x1e   : > { %345 = vadd.xlane.f32.xlu0 %v344_v14  ;;  %348 = vadd.xlane.f32.xlu1 %v347_v15 }
  0x9f   : > { %v328_v16 = vpop.xlane.xlu0 %327  ;;  %v334_v17 = vpop.xlane.xlu1 %333 }
  0xa0   : > { %v351_v18 = vmul.f32 0.03125, %v328_v16  ;;  %v353_v19 = vmul.f32 0.03125, %v334_v17 }
  0xa2   : > { %v1547_v20 = vsub.f32 %v1514_v0, %v351_v18  ;;  %v1550_v21 = vsub.f32 %v1516_v1, %v353_v19 }
  0xa3   : > { %v331_v22 = vpop.xlane.xlu0 %330  ;;  %v337_v23 = vpop.xlane.xlu1 %336 }
  0xa4   : > { %v352_v24 = vmul.f32 0.03125, %v331_v22  ;;  %v354_v25 = vmul.f32 0.03125, %v337_v23  ;;  %v367_v26 = vmul.f32 %v1547_v20, %v1547_v20  ;;  %v369_v27 = vmul.f32 %v1550_v21, %v1550_v21 }
  0xa6   : > { %v1557_v28 = vsub.f32 %v1518_v2, %v352_v24  ;;  %v1560_v29 = vsub.f32 %v1524_v5, %v354_v25  ;;  %v375_v30 = vsel %vm325_vm0, %v367_v26, 0.0  ;;  %v381_v33 = vsel %vm325_vm0, %v369_v27, 0.0 }
  0xa7   : > { %376 = vadd.xlane.f32.xlu0 %v375_v30  ;;  %v340_v31 = vpop.xlane.xlu0 %339  ;;  %v343_v32 = vpop.xlane.xlu1 %342 }
  0xa8   : > { %v355_v34 = vmul.f32 0.03125, %v340_v31  ;;  %v356_v35 = vmul.f32 0.03125, %v343_v32  ;;  %v368_v36 = vmul.f32 %v1557_v28, %v1557_v28  ;;  %v370_v37 = vmul.f32 %v1560_v29, %v1560_v29  ;;  %v1245_v31 = vld [vmem:[%s1772_s2] ss:$0 sm:$0xff] }
  0xaa   : > { %v1569_v38 = vsub.f32 %v1530_v8, %v355_v34  ;;  %v1572_v39 = vsub.f32 %v1532_v9, %v356_v35  ;;  %v378_v40 = vsel %vm325_vm0, %v368_v36, 0.0  ;;  %v384_v43 = vsel %vm325_vm0, %v370_v37, 0.0 }
  0xab   : > { %382 = vadd.xlane.f32.xlu0 %v381_v33  ;;  %379 = vadd.xlane.f32.xlu1 %v378_v40  ;;  %v346_v41 = vpop.xlane.xlu0 %345  ;;  %v349_v42 = vpop.xlane.xlu1 %348 }
  0xac   : > { %v357_v44 = vmul.f32 0.03125, %v346_v41  ;;  %v358_v45 = vmul.f32 0.03125, %v349_v42  ;;  %v371_v46 = vmul.f32 %v1569_v38, %v1569_v38  ;;  %v372_v47 = vmul.f32 %v1572_v39, %v1572_v39 }
  0xae   : > { %v1581_v48 = vsub.f32 %v1538_v12, %v357_v44  ;;  %v1584_v49 = vsub.f32 %v1540_v13, %v358_v45  ;;  %v387_v50 = vsel %vm325_vm0, %v371_v46, 0.0  ;;  %v390_v51 = vsel %vm325_vm0, %v372_v47, 0.0 }
  0xaf   : > { %385 = vadd.xlane.f32.xlu1 %v384_v43  ;;  %388 = vadd.xlane.f32.xlu0 %v387_v50 }
  0xb0   : > { %v373_v52 = vmul.f32 %v1581_v48, %v1581_v48  ;;  %v374_v53 = vmul.f32 %v1584_v49, %v1584_v49 }
  0xb2   : > { %v393_v54 = vsel %vm325_vm0, %v373_v52, 0.0  ;;  %v396_v55 = vsel %vm325_vm0, %v374_v53, 0.0 }
  0xb3   : > { %391 = vadd.xlane.f32.xlu1 %v390_v51  ;;  %394 = vadd.xlane.f32.xlu0 %v393_v54 }
  0xb7   : > { %397 = vadd.xlane.f32.xlu1 %v396_v55 }
 0x134   : > { %v377_v58 = vpop.xlane.xlu0 %376 }
 0x135   : > { %v399_v59 = vmul.f32 0.03125, %v377_v58 }
 0x137   : > { %v407_v60 = vadd.f32 1e-05, %v399_v59 }
 0x138   : > { %v380_v61 = vpop.xlane.xlu1 %379  ;;  %v383_v62 = vpop.xlane.xlu0 %382 }
 0x139   : > { %1393 = vrsqrt.f32 %v407_v60  ;;  %v400_v63 = vmul.f32 0.03125, %v380_v61  ;;  %v401_v3 = vmul.f32 0.03125, %v383_v62 }
 0x13b   : > { %v408_v4 = vadd.f32 1e-05, %v400_v63  ;;  %v409_v6 = vadd.f32 1e-05, %v401_v3 }
 0x13c   : > { %v386_v7 = vpop.xlane.xlu1 %385  ;;  %v389_v10 = vpop.xlane.xlu0 %388 }
 0x13d   : > { %1395 = vrsqrt.f32 %v408_v4  ;;  %v402_v11 = vmul.f32 0.03125, %v386_v7  ;;  %v403_v14 = vmul.f32 0.03125, %v389_v10 }
 0x13e   : > { %1397 = vrsqrt.f32 %v409_v6  ;;  %v1247_v6 = vld [vmem:[%s1775_s5] ss:$0 sm:$0xff] }
 0x13f   : > { %v410_v15 = vadd.f32 1e-05, %v402_v11  ;;  %v411_v16 = vadd.f32 1e-05, %v403_v14 }
 0x140   : > { %v392_v17 = vpop.xlane.xlu1 %391  ;;  %v395_v18 = vpop.xlane.xlu0 %394 }
 0x141   : > { %1399 = vrsqrt.f32 %v410_v15  ;;  %v404_v19 = vmul.f32 0.03125, %v392_v17  ;;  %v405_v22 = vmul.f32 0.03125, %v395_v18 }
 0x142   : > { %1401 = vrsqrt.f32 %v411_v16 }
 0x143   : > { %v1394_v23 = vpop.eup %1393  ;;  %v412_v24 = vadd.f32 1e-05, %v404_v19  ;;  %v413_v25 = vadd.f32 1e-05, %v405_v22 }
 0x144   : > { %v398_v26 = vpop.xlane.xlu1 %397  ;;  %v423_v27 = vmul.f32 %v1394_v23, %v1547_v20  ;;  %v1246_v20 = vld [vmem:[%s1773_s3] ss:$0 sm:$0xff] }
 0x145   : > { %1403 = vrsqrt.f32 %v412_v24  ;;  %v406_v30 = vmul.f32 0.03125, %v398_v26 }
 0x146   : > { %1405 = vrsqrt.f32 %v413_v25  ;;  %v437_v36 = vmul.f32 %v1245_v31, %v423_v27 }
 0x147   : > { %v1396_v32 = vpop.eup %1395  ;;  %v414_v33 = vadd.f32 1e-05, %v406_v30 }
 0x148   : > { %v1398_v34 = vpop.eup %1397  ;;  %v424_v35 = vmul.f32 %v1396_v32, %v1557_v28  ;;  %v451_v44 = vadd.f32 %v1246_v20, %v437_v36 }
 0x149   : > { %v425_v37 = vmul.f32 %v1398_v34, %v1550_v21  ;;  %1407 = vrsqrt.f32 %v414_v33 }
 0x14a   : > { %v438_v40 = vmul.f32 %v1245_v31, %v424_v35 }
 0x14b   : > { %v1400_v41 = vpop.eup %1399  ;;  %v439_v46 = vmul.f32 %v1245_v31, %v425_v37 }
 0x14c   : > { %v1402_v42 = vpop.eup %1401  ;;  %v426_v43 = vmul.f32 %v1400_v41, %v1560_v29  ;;  %v452_v45 = vadd.f32 %v1246_v20, %v438_v40 }
 0x14d   : > { %v427_v47 = vmul.f32 %v1402_v42, %v1569_v38  ;;  %v453_v21 = vadd.f32 %v1246_v20, %v439_v46 }
 0x14e   : > { %v459_v50 = vpack.c.bf16 %v452_v45, %v451_v44  ;;  %v440_v28 = vmul.f32 %v1245_v31, %v426_v43  ;;  %v567_v43 = vld [vmem:[%s1771_s1] sm:$0xff]  ;;  %v568_v45 = vld [vmem:[%s1771_s1 + $0x8] sm:$0xff] }
 0x14f   : > { %v1404_v51 = vpop.eup %1403  ;;  %v441_v55 = vmul.f32 %v1245_v31, %v427_v47 }
 0x150   : > { %v1406_v52 = vpop.eup %1405  ;;  %1305 = vmatprep.mubr.msk.bf16.mxu0 %vm325_vm0, %v459_v50  ;;  %v454_v53 = vadd.f32 %v1246_v20, %v440_v28  ;;  %v428_v54 = vmul.f32 %v1404_v51, %v1572_v39 }
 0x151   : > { %v429_v56 = vmul.f32 %v1406_v52, %v1581_v48  ;;  %v455_v38 = vadd.f32 %v1246_v20, %v441_v55  ;;  %v1449_v48 = vmov 0.0  }
 0x152   : > { %v460_v57 = vpack.c.bf16 %v454_v53, %v453_v21  ;;  %v442_v29 = vmul.f32 %v1245_v31, %v428_v54  ;;  %1313 = vmatprep.subr.bf16.mxu1 %v1449_v48  ;;  %1325 = vmatprep.subr.bf16.mxu0 %v1449_v48  ;;  %v569_v53 = vld [vmem:[%s1771_s1 + $0x10] sm:$0xff] }
 0x153   : > { %v1408_v58 = vpop.eup %1407  ;;  %v443_v61 = vmul.f32 %v1245_v31, %v429_v56  ;;  %v570_v56 = vld [vmem:[%s1771_s1 + $0x18] sm:$0xff] }
 0x154   : > { %v430_v59 = vmul.f32 %v1408_v58, %v1584_v49  ;;  %1306 = vmatmul.mubr.msk.bf16.vlgmr.msra.gmra.mrb[0].mxu0 %vm325_vm0, %v460_v57  ;;  %v456_v60 = vadd.f32 %v1246_v20, %v442_v29  ;;  %v572_v57 = vld [vmem:[%s1771_s1 + $0x28] sm:$0xff] }
 0x155   : > { %v457_v3 = vadd.f32 %v1246_v20, %v443_v61  ;;  %1327 = vmatprep.mubr.msk.bf16.mxu0 %vm1450_vm1, %v1449_v48 }
 0x156   : > { %v461_v62 = vpack.c.bf16 %v456_v60, %v455_v38  ;;  %v444_v63 = vmul.f32 %v1245_v31, %v430_v59 }
 0x158   : > { %1309 = vmatprep.mubr.msk.bf16.mxu1 %vm325_vm0, %v461_v62  ;;  %v458_v4 = vadd.f32 %v1246_v20, %v444_v63 }
 0x15a   : > { %v462_v39 = vpack.c.bf16 %v458_v4, %v457_v3 }
 0x15c   : > { %1310 = vmatmul.mubr.msk.bf16.vlgmr.msra.gmra.mrb[0].mxu1 %vm325_vm0, %v462_v39  ;;  %v571_v39 = vld [vmem:[%s1771_s1 + $0x20] sm:$0xff] }
 0x15d   : > { %1315 = vmatprep.mubr.msk.bf16.mxu1 %vm1450_vm1, %v1449_v48 }
 0x227   : > { %v1307_v49 = vpop.f32.mrb[0].mxu0 }
 0x228   : > { %v532_v7 = vpop.f32.mrb[1].mxu0  ;;  %v541_v11 = vadd.f32 %v1307_v49, %v1247_v6 }
 0x229   : > { %v1308_v10 = vpop.f32.mrb[2].mxu0  ;;  %v533_v16 = vadd.f32 %v1247_v6, %v532_v7 }
 0x22a   : > { %v544_v14 = vadd.f32 %v1308_v10, %v1247_v6  ;;  %v535_v15 = vpop.f32.mrb[3].mxu0  ;;  %v573_v10 = vld [vmem:[%s1771_s1 + $0x30] sm:$0xff] }
 0x22b   : > { %v536_v17 = vadd.f32 %v1247_v6, %v535_v15 }
 0x22c   : > { %v1627_v18 = vpack.c.bf16 %v544_v14, %v541_v11  ;;  %v574_v14 = vld [vmem:[%s1771_s1 + $0x38] sm:$0xff] }
 0x22d   : > { %v1629_v19 = vpack.c.bf16 %v536_v17, %v533_v16 }
 0x22e   : > { %626 = vrot.lane.b32.xlu1 %v1627_v18, %s1451_s22 }
 0x22f   : > { %576 = vrot.lane.b32.xlu0 %v1629_v19, %s1451_s22  ;;  %v1311_v22 = vpop.f32.mrb[0].mxu1 }
 0x230   : > { %v548_v23 = vpop.f32.mrb[1].mxu1  ;;  %v557_v25 = vadd.f32 %v1311_v22, %v1247_v6 }
 0x231   : > { %v1312_v24 = vpop.f32.mrb[2].mxu1  ;;  %v549_v30 = vadd.f32 %v1247_v6, %v548_v23 }
 0x232   : > { %v560_v26 = vadd.f32 %v1312_v24, %v1247_v6  ;;  %v551_v27 = vpop.f32.mrb[3].mxu1 }
 0x233   : > { %v552_v31 = vadd.f32 %v1247_v6, %v551_v27 }
 0x234   : > { %v1633_v32 = vpack.c.bf16 %v560_v26, %v557_v25 }
 0x235   : > { %v1635_v33 = vpack.c.bf16 %v552_v31, %v549_v30 }
 0x237   : > { %676 = vrot.lane.b32.xlu1 %v1635_v33, %s1451_s22 }
 0x23b   : > { %726 = vrot.lane.b32.xlu1 %v1633_v32, %s1451_s22 }
 0x2a0   : > { %v627_v36 = vpop.permute.xlu1 %626 }
 0x2a1   : > { %v577_v34 = vpop.permute.xlu0 %576  ;;  %v632_v20 = vsel %vm325_vm0, %v627_v36, 0 }
 0x2a2   : > { %v582_v35 = vsel %vm325_vm0, %v577_v34, 0 }
 0x2a3   : > { %1314 = vmatpush3.bf16.xpose.msra.mxu1 %v582_v35 }
 0x2a4   : > { %1319 = vmatprep.subr.bf16.mxu1 %v1449_v48 }
 0x2a9   : > { %v677_v37 = vpop.permute.xlu1 %676 }
 0x2aa   : > { %v682_v40 = vsel %vm325_vm0, %v677_v37, 0  ;;  %1316 = vmatmul.mubr.msk.bf16.vlgmr.msra.gmra.mrb[4].mxu1 %vm325_vm0, %v1629_v19 }
 0x2ab   : > { %1320 = vmatpush3.bf16.xpose.msra.mxu1 %v632_v20  ;;  %1326 = vmatpush3.bf16.xpose.msra.mxu0 %v682_v40 }
 0x2ac   : > { %1321 = vmatprep.mubr.msk.bf16.mxu1 %vm1450_vm1, %v1449_v48  ;;  %1331 = vmatprep.subr.bf16.mxu1 %v1449_v48 }
 0x2ad   : > { %1337 = vmatprep.subr.bf16.mxu0 %v1449_v48  ;;  %v727_v41 = vpop.permute.xlu1 %726 }
 0x2ae   : > { %v732_v42 = vsel %vm325_vm0, %v727_v41, 0 }
 0x2b2   : > { %1322 = vmatmul.mubr.msk.bf16.vlgmr.msra.gmra.mrb[8].mxu1 %vm325_vm0, %v1627_v18  ;;  %1328 = vmatmul.mubr.msk.bf16.vlgmr.msra.gmra.mrb[4].mxu0 %vm325_vm0, %v1635_v33 }
 0x2b3   : > { %1332 = vmatpush3.bf16.xpose.msra.mxu1 %v732_v42  ;;  %1333 = vmatprep.mubr.msk.bf16.mxu1 %vm1450_vm1, %v1449_v48 }
 0x2b4   : > { %1343 = vmatprep.subr.bf16.mxu1 %v1449_v48  ;;  %1339 = vmatprep.mubr.msk.bf16.mxu0 %vm1450_vm1, %v1449_v48 }
 0x2ba   : > { %1334 = vmatmul.mubr.msk.bf16.vlgmr.msra.gmra.mrb[12].mxu1 %vm325_vm0, %v1633_v32 }
 0x2bb   : > { %1345 = vmatprep.mubr.msk.bf16.mxu1 %vm1450_vm1, %v1449_v48 }
 0x37d   : > { %v618_v44 = vpop.f32.mrb[4].mxu1 }
 0x37e   : > { %v619_v46 = vadd.f32 %v618_v44, %v567_v43  ;;  %v1317_v47 = vpop.f32.mrb[5].mxu1 }
 0x37f   : > { %v621_v50 = vpop.f32.mrb[6].mxu1 }
 0x380   : > { %v622_v28 = vadd.f32 %v621_v50, %v568_v45  ;;  %v1318_v51 = vpop.f32.mrb[7].mxu1  ;;  %v776_v52 = vsel %vm775_vm2, %v619_v46, -inf }
 0x381   : > { %777 = vmax.xlane.f32.xlu0 %v776_v52 }
 0x382   : > { %v779_v21 = vsel %vm775_vm2, %v622_v28, -inf }
 0x383   : > { %780 = vmax.xlane.f32.xlu1 %v779_v21 }
 0x385   : > { %v668_v54 = vpop.f32.mrb[8].mxu1  ;;  %v718_v55 = vpop.f32.mrb[4].mxu0 }
 0x386   : > { %v669_v29 = vadd.f32 %v668_v54, %v569_v53  ;;  %v1323_v58 = vpop.f32.mrb[9].mxu1  ;;  %v1329_v59 = vpop.f32.mrb[5].mxu0  ;;  %v719_v6 = vadd.f32 %v718_v55, %v571_v39 }
 0x387   : > { %v671_v38 = vpop.f32.mrb[10].mxu1  ;;  %v721_v60 = vpop.f32.mrb[6].mxu0 }
 0x388   : > { %v672_v61 = vadd.f32 %v671_v38, %v570_v56  ;;  %v722_v62 = vadd.f32 %v721_v60, %v572_v57  ;;  %v1324_v63 = vpop.f32.mrb[11].mxu1  ;;  %v1330_v3 = vpop.f32.mrb[7].mxu0  ;;  %v782_v4 = vsel %vm775_vm2, %v669_v29, -inf  ;;  %v788_v24 = vsel %vm775_vm2, %v719_v6, -inf }
 0x389   : > { %783 = vmax.xlane.f32.xlu0 %v782_v4 }
 0x38a   : > { %v791_v49 = vsel %vm775_vm2, %v722_v62, -inf  ;;  %v785_v7 = vsel %vm775_vm2, %v672_v61, -inf }
 0x38b   : > { %792 = vmax.xlane.f32.xlu1 %v791_v49 }
 0x38d   : > { %786 = vmax.xlane.f32.xlu0 %v785_v7  ;;  %v768_v11 = vpop.f32.mrb[12].mxu1 }
 0x38e   : > { %v1335_v15 = vpop.f32.mrb[13].mxu1  ;;  %v769_v17 = vadd.f32 %v768_v11, %v573_v10 }
 0x38f   : > { %v771_v16 = vpop.f32.mrb[14].mxu1 }
 0x390   : > { %v1692_v22 = vadd.f32 %v771_v16, %v574_v14  ;;  %v1336_v23 = vpop.f32.mrb[15].mxu1  ;;  %v794_v26 = vsel %vm775_vm2, %v769_v17, -inf }
 0x391   : > { %789 = vmax.xlane.f32.xlu0 %v788_v24 }
 0x392   : > { %v797_v25 = vsel %vm775_vm2, %v1692_v22, -inf }
 0x393   : > { %798 = vmax.xlane.f32.xlu1 %v797_v25 }
 0x395   : > { %795 = vmax.xlane.f32.xlu0 %v794_v26 }
 0x40e   : > { %v778_v27 = vpop.xlane.xlu0 %777 }
 0x40f   : > { %v800_v30 = vsub.f32 %v619_v46, %v778_v27 }
 0x410   : > { %v781_v31 = vpop.xlane.xlu1 %780 }
 0x411   : > { %v808_v34 = vmul.f32 1.442695, %v800_v30  ;;  %v801_v35 = vsub.f32 %v622_v28, %v781_v31 }
 0x413   : > { %1409 = vpow2.f32 %v808_v34  ;;  %v810_v36 = vmul.f32 1.442695, %v801_v35 }
 0x415   : > { %1411 = vpow2.f32 %v810_v36 }
 0x416   : > { %v784_v37 = vpop.xlane.xlu0 %783 }
 0x417   : > { %v802_v45 = vsub.f32 %v669_v29, %v784_v37 }
 0x418   : > { %v793_v20 = vpop.xlane.xlu1 %792 }
 0x419   : > { %v805_v40 = vsub.f32 %v722_v62, %v793_v20  ;;  %v812_v21 = vmul.f32 1.442695, %v802_v45 }
 0x41a   : > { %v787_v41 = vpop.xlane.xlu0 %786 }
 0x41b   : > { %v818_v42 = vmul.f32 1.442695, %v805_v40  ;;  %v803_v43 = vsub.f32 %v672_v61, %v787_v41 }
 0x41d   : > { %v1698_v44 = vpop.eup %1409  ;;  %1413 = vpow2.f32 %v818_v42  ;;  %v814_v47 = vmul.f32 1.442695, %v803_v43 }
 0x41e   : > { %v790_v50 = vpop.xlane.xlu0 %789  ;;  %v824_v46 = vsel %vm775_vm2, %v1698_v44, 0.0 }
 0x41f   : > { %v1412_v51 = vpop.eup %1411  ;;  %1415 = vpow2.f32 %v814_v47  ;;  %v804_v28 = vsub.f32 %v719_v6, %v790_v50  ;;  %825 = vadd.xlane.f32.xlu0 %v824_v46 }
 0x420   : > { %v827_v52 = vsel %vm775_vm2, %v1412_v51, 0.0  ;;  %v799_v4 = vpop.xlane.xlu1 %798 }
 0x421   : > { %v816_v53 = vmul.f32 1.442695, %v804_v28  ;;  %828 = vadd.xlane.f32.xlu1 %v827_v52  ;;  %v807_v39 = vsub.f32 %v1692_v22, %v799_v4 }
 0x422   : > { %v796_v54 = vpop.xlane.xlu0 %795 }
 0x423   : > { %1417 = vpow2.f32 %v816_v53  ;;  %v806_v55 = vsub.f32 %v769_v17, %v796_v54  ;;  %v822_v49 = vmul.f32 1.442695, %v807_v39 }
 0x424   : > { %1419 = vpow2.f32 %v812_v21 }
 0x425   : > { %v820_v56 = vmul.f32 1.442695, %v806_v55 }
 0x427   : > { %v1703_v57 = vpop.eup %1413  ;;  %1421 = vpow2.f32 %v820_v56 }
 0x428   : > { %v839_v29 = vsel %vm775_vm2, %v1703_v57, 0.0  ;;  %1423 = vpow2.f32 %v822_v49 }
 0x429   : > { %v1416_v58 = vpop.eup %1415  ;;  %840 = vadd.xlane.f32.xlu1 %v839_v29 }
 0x42a   : > { %v833_v59 = vsel %vm775_vm2, %v1416_v58, 0.0 }
 0x42d   : > { %v1418_v38 = vpop.eup %1417  ;;  %834 = vadd.xlane.f32.xlu1 %v833_v59 }
 0x42e   : > { %v836_v60 = vsel %vm775_vm2, %v1418_v38, 0.0  ;;  %v1420_v61 = vpop.eup %1419 }
 0x42f   : > { %837 = vadd.xlane.f32.xlu0 %v836_v60  ;;  %v830_v62 = vsel %vm775_vm2, %v1420_v61, 0.0 }
 0x431   : > { %v1710_v63 = vpop.eup %1421 }
 0x432   : > { %v842_v3 = vsel %vm775_vm2, %v1710_v63, 0.0  ;;  %v1424_v6 = vpop.eup %1423 }
 0x433   : > { %831 = vadd.xlane.f32.xlu0 %v830_v62  ;;  %v845_v7 = vsel %vm775_vm2, %v1424_v6, 0.0 }
 0x437   : > { %843 = vadd.xlane.f32.xlu0 %v842_v3 }
 0x43e   : > { %915 = vrot.lane.b32.xlu1 %v1627_v18, %s1452_s20 }
 0x442   : > { %962 = vrot.lane.b32.xlu1 %v1635_v33, %s1452_s20 }
 0x44d   : > { %868 = vrot.lane.b32.xlu0 %v1629_v19, %s1452_s20 }
 0x466   : > { %846 = vadd.xlane.f32.xlu1 %v845_v7 }
 0x477   : > { %1009 = vrot.lane.b32.xlu1 %v1633_v32, %s1452_s20 }
 0x4ac   : > { %v826_v14 = vpop.xlane.xlu0 %825 }
 0x4ae   : > { %v829_v10 = vpop.xlane.xlu1 %828 }
 0x4af   : > { %1425 = vrcp.f32 %v829_v10 }
 0x4b0   : > { %1427 = vrcp.f32 %v826_v14 }
 0x4b6   : > { %v841_v11 = vpop.xlane.xlu1 %840 }
 0x4b9   : > { %v1426_v16 = vpop.eup %1425 }
 0x4ba   : > { %v835_v18 = vpop.xlane.xlu1 %834  ;;  %v1428_v22 = vpop.eup %1427  ;;  %v857_v32 = vmul.f32 %v1426_v16, %v1412_v51  ;;  %v1392_v51 = vld [vmem:[%s1776_s6 + $0x8] sm:$0xff]  }
 0x4bb   : > { %1429 = vrcp.f32 %v835_v18  ;;  %v856_v23 = vmul.f32 %v1428_v22, %v1698_v44 }
 0x4bc   : > { %v838_v33 = vpop.xlane.xlu0 %837 }
 0x4bd   : > { %1431 = vrcp.f32 %v838_v33  ;;  %v864_v27 = vpack.c.bf16 %v857_v32, %v856_v23 }
 0x4be   : > { %v916_v15 = vpop.permute.xlu1 %915 }
 0x4bf   : > { %1344 = vmatpush3.bf16.msra.mxu1 %v916_v15 }
 0x4c0   : > { %v832_v19 = vpop.xlane.xlu0 %831  ;;  %1355 = vmatprep.subr.bf16.mxu1 %v1449_v48 }
 0x4c1   : > { %1433 = vrcp.f32 %v832_v19 }
 0x4c2   : > { %1435 = vrcp.f32 %v841_v11  ;;  %v963_v35 = vpop.permute.xlu1 %962 }
 0x4c4   : > { %v844_v17 = vpop.xlane.xlu0 %843 }
 0x4c5   : > { %v1430_v25 = vpop.eup %1429  ;;  %1437 = vrcp.f32 %v844_v17 }
 0x4c6   : > { %v859_v31 = vmul.f32 %v1430_v25, %v1416_v58 }
 0x4c7   : > { %v1432_v26 = vpop.eup %1431 }
 0x4c8   : > { %v869_v24 = vpop.permute.xlu0 %868  ;;  %v860_v37 = vmul.f32 %v1432_v26, %v1418_v38 }
 0x4c9   : > { %1338 = vmatpush3.bf16.msra.mxu0 %v869_v24 }
 0x4ca   : > { %1349 = vmatprep.subr.bf16.mxu0 %v1449_v48 }
 0x4cb   : > { %v1434_v30 = vpop.eup %1433 }
 0x4cc   : > { %v858_v34 = vmul.f32 %v1434_v30, %v1420_v61  ;;  %1340 = vmatmul.mubr.msk.bf16.vlgmr.msra.gmra.mrb[8].mxu0 %vm775_vm2, %v864_v27  ;;  %v1436_v36 = vpop.eup %1435 }
 0x4cd   : > { %1350 = vmatpush3.bf16.msra.mxu0 %v963_v35  ;;  %1351 = vmatprep.mubr.msk.bf16.mxu0 %vm1450_vm1, %v1449_v48  ;;  %v861_v40 = vmul.f32 %v1436_v36, %v1703_v57 }
 0x4ce   : > { %v865_v20 = vpack.c.bf16 %v859_v31, %v858_v34 }
 0x4cf   : > { %v866_v41 = vpack.c.bf16 %v861_v40, %v860_v37  ;;  %v1438_v44 = vpop.eup %1437 }
 0x4d0   : > { %1346 = vmatmul.mubr.msk.bf16.vlgmr.msra.gmra.mrb[16].mxu1 %vm775_vm2, %v865_v20  ;;  %v862_v47 = vmul.f32 %v1438_v44, %v1710_v63 }
 0x4d1   : > { %1357 = vmatprep.mubr.msk.bf16.mxu1 %vm1450_vm1, %v1449_v48  ;;  %v1391_v48 = vld [vmem:[%s1776_s6] sm:$0xff]  }
 0x4d2   : > { %1361 = vmatprep.subr.bf16.mxu0 %v1391_v48 }
 0x4d4   : > { %1352 = vmatmul.mubr.msk.bf16.vlgmr.msra.gmra.mrb[12].mxu0 %vm775_vm2, %v866_v41 }
 0x4d5   : > { %1362 = vmatpush3.bf16.msra.mxu0 %v1391_v48 }
 0x4d6   : > { %1363 = vmatprep.subr.bf16.mxu0 %v1392_v51 }
 0x4d9   : > { %1364 = vmatpush3.bf16.msra.mxu0 %v1392_v51 }
 0x4f3   : > { %v847_v42 = vpop.xlane.xlu1 %846 }
 0x4f4   : > { %1439 = vrcp.f32 %v847_v42 }
 0x4f7   : > { %v1010_v43 = vpop.permute.xlu1 %1009 }
 0x4f8   : > { %1356 = vmatpush3.bf16.msra.mxu1 %v1010_v43 }
 0x4fe   : > { %v1440_v45 = vpop.eup %1439 }
 0x4ff   : > { %v863_v50 = vmul.f32 %v1440_v45, %v1424_v6  ;;  %v1262_v6 = vld [vmem:[%s1777_s7] ss:$0 sm:$0xff] }
 0x501   : > { %v867_v46 = vpack.c.bf16 %v863_v50, %v862_v47 }
 0x503   : > { %1358 = vmatmul.mubr.msk.bf16.vlgmr.msra.gmra.mrb[20].mxu1 %vm775_vm2, %v867_v46 }
 0x59f   : > { %v908_v28 = vpop.f32.mrb[8].mxu0 }
 0x5a0   : > { %v1341_v52 = vpop.f32.mrb[9].mxu0 }
 0x5a1   : > { %v911_v21 = vpop.f32.mrb[10].mxu0 }
 0x5a2   : > { %v1056_v53 = vpack.c.bf16 %v911_v21, %v908_v28  ;;  %v1342_v54 = vpop.f32.mrb[11].mxu0 }
 0x5a3   : > { %v955_v55 = vpop.f32.mrb[16].mxu1 }
 0x5a4   : > { %v1347_v56 = vpop.f32.mrb[17].mxu1  ;;  %1365 = vmatprep.mubr.msk.bf16.mxu0 %vm325_vm0, %v1056_v53 }
 0x5a5   : > { %v958_v57 = vpop.f32.mrb[18].mxu1 }
 0x5a6   : > { %v1057_v29 = vpack.c.bf16 %v958_v57, %v955_v55  ;;  %v1348_v58 = vpop.f32.mrb[19].mxu1 }
 0x5a7   : > { %v1002_v59 = vpop.f32.mrb[12].mxu0 }
 0x5a8   : > { %v1353_v38 = vpop.f32.mrb[13].mxu0  ;;  %1366 = vmatmul.mubr.msk.bf16.vlgmr.msra.gmra.mrb[16].mxu0 %vm325_vm0, %v1057_v29 }
 0x5a9   : > { %v1005_v60 = vpop.f32.mrb[14].mxu0 }
 0x5aa   : > { %v1058_v61 = vpack.c.bf16 %v1005_v60, %v1002_v59  ;;  %v1354_v62 = vpop.f32.mrb[15].mxu0 }
 0x5ac   : > { %1369 = vmatprep.mubr.msk.bf16.mxu0 %vm325_vm0, %v1058_v61 }
 0x5d6   : > { %v1049_v63 = vpop.f32.mrb[20].mxu1 }
 0x5d7   : > { %v1359_v3 = vpop.f32.mrb[21].mxu1 }
 0x5d8   : > { %v1052_v4 = vpop.f32.mrb[22].mxu1 }
 0x5d9   : > { %v1059_v39 = vpack.c.bf16 %v1052_v4, %v1049_v63  ;;  %v1360_v49 = vpop.f32.mrb[23].mxu1 }
 0x5db   : > { %1370 = vmatmul.mubr.msk.bf16.gmra.mrb[20].mxu0 %vm325_vm0, %v1059_v39 }
 0x67b   : > { %v1367_v7 = vpop.f32.mrb[16].mxu0 }
 0x67c   : > { %v1138_v10 = vadd.f32 %v1367_v7, %v1262_v6  ;;  %v1129_v11 = vpop.f32.mrb[17].mxu0 }
 0x67d   : > { %v1130_v14 = vadd.f32 %v1262_v6, %v1129_v11  ;;  %v1368_v18 = vpop.f32.mrb[18].mxu0 }
 0x67e   : > { %v1162_v33 = vadd.f32 %v1138_v10, %v1516_v1  ;;  %v1141_v15 = vadd.f32 %v1368_v18, %v1262_v6  ;;  %v1132_v19 = vpop.f32.mrb[19].mxu0 }
 0x67f   : > { %v1160_v16 = vadd.f32 %v1130_v14, %v1514_v0  ;;  %v1133_v17 = vadd.f32 %v1262_v6, %v1132_v19 }
 0x680   : > { %1170 = vst.msk [vmem:[%s312_s10 + $0x10] sm:$0xff] %vm325_vm0, %v1162_v33  ;;  %v1163_v22 = vadd.f32 %v1141_v15, %v1524_v5 }
 0x681   : > { %1168 = vst.msk [vmem:[%s312_s10] sm:$0xff] %vm325_vm0, %v1160_v16  ;;  %v1161_v32 = vadd.f32 %v1133_v17, %v1518_v2 }
 0x682   : > { %1171 = vst.msk [vmem:[%s312_s10 + $0x18] sm:$0xff] %vm325_vm0, %v1163_v22 }
 0x683   : > { %1169 = vst.msk [vmem:[%s312_s10 + $0x8] sm:$0xff] %vm325_vm0, %v1161_v32 }
 0x6ae   : > { %v1371_v23 = vpop.f32.mrb[20].mxu0 }
 0x6af   : > { %v1154_v24 = vadd.f32 %v1371_v23, %v1262_v6  ;;  %v1145_v1 = vpop.f32.mrb[21].mxu0 }
 0x6b0   : > { %v1146_v25 = vadd.f32 %v1262_v6, %v1145_v1  ;;  %v1372_v26 = vpop.f32.mrb[22].mxu0 }
 0x6b1   : > { %v1166_v0 = vadd.f32 %v1154_v24, %v1538_v12  ;;  %v1157_v27 = vadd.f32 %v1372_v26, %v1262_v6  ;;  %v1148_v30 = vpop.f32.mrb[23].mxu0 }
 0x6b2   : > { %v1164_v31 = vadd.f32 %v1146_v25, %v1530_v8  ;;  %v1149_v5 = vadd.f32 %v1262_v6, %v1148_v30 }
 0x6b3   : > { %1174 = vst.msk [vmem:[%s312_s10 + $0x30] sm:$0xff] %vm325_vm0, %v1166_v0  ;;  %v1167_v2 = vadd.f32 %v1157_v27, %v1540_v13 }
 0x6b4   : > { %1172 = vst.msk [vmem:[%s312_s10 + $0x20] sm:$0xff] %vm325_vm0, %v1164_v31  ;;  %v1165_v34 = vadd.f32 %v1149_v5, %v1532_v9 }
 0x6b5   : > { %1175 = vst.msk [vmem:[%s312_s10 + $0x38] sm:$0xff] %vm325_vm0, %v1167_v2 }
 0x6b6   : > { %1173 = vst.msk [vmem:[%s312_s10 + $0x28] sm:$0xff] %vm325_vm0, %v1165_v34 }
 0x6b7 PF: > { %s18_s27 = sadd.s32 1, %s1447_s27  }
 0x6b8   : > { %p15_p4 = scmp.ge.s32.totalorder %s18_s27, 6  }
 0x6ba   :  { %17 = sbr.rel (!%p15_p4) target bundleno = 1 (0x1), region = 82 }

// kernel: basic_layer_forward.15
= control target key start
LH: loop header
LB: loop body
LE: loop exit
PB: predicated region body
PF: predicated region fallthrough
CT: control target
= control target key end

     0   :  { %13 = vsyncpa [#allocation3], 0  ;;  %s1141_s0 = inlined_call_operand.vmem [shape: f32[128,32], index: 0, kind: input, shape index: {}]   ;;  %s1142_s1 = inlined_call_operand.vmem [shape: f32[128,32], index: 1, kind: input, shape index: {}]   ;;  %s1143_s2 = inlined_call_operand.vmem [shape: f32[1,32], index: 2, kind: input, shape index: {}]   ;;  %s1144_s3 = inlined_call_operand.vmem [shape: f32[1,32], index: 3, kind: input, shape index: {}]   ;;  %s1145_s4 = inlined_call_operand.vmem [shape: bf16[32,64], index: 4, kind: input, shape index: {}]   ;;  %s1146_s5 = inlined_call_operand.vmem [shape: f32[1,64], index: 5, kind: input, shape index: {}]   ;;  %s1147_s6 = inlined_call_operand.vmem [shape: bf16[64,32], index: 6, kind: input, shape index: {}]   ;;  %s1148_s7 = inlined_call_operand.vmem [shape: f32[1,32], index: 7, kind: input, shape index: {}]   ;;  %s1149_s8 = inlined_call_operand.hbm [shape: f32[128,32], index: 8, kind: output, shape index: {}]  }
   0x1   :  { %15 = vsyncpa [#allocation3 + $0x1], 0  ;;  %s961_s27 = smov 0   ;;  %s963_s28 = smov 0  }
   0x2   :  { %s965_s29 = smov 0   ;;  %s967_s30 = smov 0  }
   0x3 LB: > { %s982_s9 = sadd.s32 4294967295, %s911_s30   ;;  %s727_s10 = sadd.s32 4294967294, %s911_s30   ;;  %s911_s30 = sphi %s967_s30, %s1155_s30   ;;  %s907_s29 = sphi %s965_s29, %s1154_s29   ;;  %s903_s28 = sphi %s963_s28, %s1153_s28   ;;  %s899_s27 = sphi %s961_s27, %s1152_s27  }
   0x4   : > { %s986_s11 = sadd.s32 1, %s911_s30   ;;  %s206_s12 = sadd.s32 1, %s907_s29 }
   0x5   : > { %s203_s13 = ssub.s32 %s911_s30, %s986_s11  ;;  %p216_p0 = scmp.ne.s32.totalorder %s907_s29, %s903_s28 }
   0x6   : > { %p204_p1 = scmp.eq.s32.totalorder %s203_s13, 0  ;;  %p217_p2 = scmp.eq.s32.totalorder %s982_s9, 3 }
   0x7   : > { %p222_p3 = scmp.ne.s32.totalorder %s903_s28, %s899_s27  ;;  %p223_p4 = scmp.eq.s32.totalorder %s727_s10, 3 }
   0x8   : > { %s997_s14 = scalar_select %p204_p1, %s907_s29, %s206_s12  }
   0x9   : > { %p999_p5 = por %p217_p2, %p216_p0  ;;  %p1003_p6 = por %p223_p4, %p222_p3 }
   0xa   : > { %p730_p7 = scmp.ge.s32.totalorder %s911_s30, 1  ;;  %p277_p8 = scmp.lt.s32.totalorder %s911_s30, 5 }
   0xc   : > { %p278_p9 = pnand %p730_p7, %p277_p8 }
   0xd   : > { %s732_s17 = sshll.u32 (!%p278_p9), %s982_s9, 2  ;;  %vm336_vm0 = vcmask (!%p278_p9), 261120   ;;  %v827_v28 = vld [vmem:[%s1145_s4] sm:$0xff] (!%p278_p9)   ;;  %v828_v29 = vld [vmem:[%s1145_s4 + $0x8] sm:$0xff] (!%p278_p9)   ;;  %vm567_vm1 = vcmask (!%p278_p9), 523264   ;;  %s313_s13 = sand.u32 (!%p278_p9), 1, %s903_s28  }
   0xe   : > { %281 = sbr.rel (%p278_p9) target bundleno = 829 (0x33d), region = 52  ;;  %p317_p10 = scmp.lt.s32.totalorder (!%p278_p9), %s732_s17, 15  ;;  %766 = vmatprep.subr.bf16.mxu0 (!%p278_p9), %v827_v28  ;;  %v736_v44 = vld [vmem:[%s1143_s2] ss:$0 sm:$0xff] (!%p278_p9)  ;;  %v830_v63 = vld [vmem:[%s1147_s6 + $0x8] sm:$0xff] (!%p278_p9)  }
   0xf   : > { %767 = vmatpush3.bf16.msra.mxu0 (!%p278_p9), %v827_v28  ;;  %v737_v50 = vld [vmem:[%s1144_s3] ss:$0 sm:$0xff] (!%p278_p9)  ;;  %s731_s24 = sshll.u32 (!%p278_p9), %s313_s13, 5  ;;  %s913_s20 = smov (!%p278_p9), [#allocation2]  }
  0x10   : > { %768 = vmatprep.subr.bf16.mxu0 (!%p278_p9), %v828_v29  ;;  %v829_v62 = vld [vmem:[%s1147_s6] sm:$0xff] (!%p278_p9)  }
  0x11   : > { %774 = vmatprep.subr.bf16.mxu1 (!%p278_p9), %v829_v62 }
  0x12   : > { %775 = vmatpush3.bf16.msra.mxu1 (!%p278_p9), %v829_v62 }
  0x13   : > { %769 = vmatpush3.bf16.msra.mxu0 (!%p278_p9), %v828_v29  ;;  %776 = vmatprep.subr.bf16.mxu1 (!%p278_p9), %v830_v63 }
  0x15   : > { %s1157_s17 = smov (!%p317_p10, %s732_s17), 15 }
  0x16   : > { %s733_s18 = sshll.u32 %s1157_s17, 3  ;;  %777 = vmatpush3.bf16.msra.mxu1 %v830_v63  ;;  %s755_s17 = sshll.u32 %s982_s9, 9 }
  0x17   : > { %s320_s21 = scalar_lea.vmem %s1141_s0, %s733_s18  ;;  %s326_s23 = scalar_lea.vmem %s1142_s1, %s733_s18 }
  0x18   : > { %v1018_v0 = vld [vmem:[%s320_s21] sm:$0xff]  ;;  %v1020_v1 = vld [vmem:[%s320_s21 + $0x10] sm:$0xff]  ;;  %v1022_v2 = vld [vmem:[%s320_s21 + $0x8] sm:$0xff]  ;;  %s315_s18 = scalar_lea.vmem [#allocation2], %s731_s24  ;;  %s1091_s12 = scalar_lea.hbm %s1149_s8, %s755_s17 }
  0x19   : > { %v337_v3 = vsel %vm336_vm0, %v1018_v0, 0.0  ;;  %v343_v4 = vsel %vm336_vm0, %v1020_v1, 0.0  ;;  %v1028_v5 = vld [vmem:[%s320_s21 + $0x18] sm:$0xff]  ;;  %v340_v6 = vsel %vm336_vm0, %v1022_v2, 0.0  ;;  %s653_s25 = sshll.u32 %s315_s18, 4  ;;  %s1100_s9 = scalar_lea.sflag [#allocation3], %s313_s13  ;;  %s1093_s25 = int_to_ptr.vmem [resolvable:$true] %s653_s25 }
  0x1a   : > { %338 = vadd.xlane.f32.xlu0 %v337_v3  ;;  %344 = vadd.xlane.f32.xlu1 %v343_v4  ;;  %v346_v7 = vsel %vm336_vm0, %v1028_v5, 0.0  ;;  %v831_v3 = vld [vmem:[%s1147_s6 + $0x10] sm:$0xff]   ;;  %v832_v4 = vld [vmem:[%s1147_s6 + $0x18] sm:$0xff]   ;;  %s849_s19 = scalar_lea.vmem %s1093_s25, 512  ;;  %s853_s21 = sshll.u32 %s913_s20, 4  ;;  %s854_s21 = int_to_ptr.vmem [resolvable:$false] %s853_s21 }
  0x1b   : > { %778 = vmatprep.subr.bf16.mxu1 %v831_v3  ;;  %p850_p11 = scmp.ne.s32.totalorder %s1093_s25, %s849_s19  ;;  %s855_s22 = scalar_lea.vmem %s854_s21, 1024 }
  0x1c   : > { %779 = vmatpush3.bf16.msra.mxu1 %v831_v3  ;;  %p856_p0 = scmp.lt.s32.totalorder %s1093_s25, %s854_s21  ;;  %p857_p1 = scmp.lt.s32.totalorder %s855_s22, %s849_s19 }
  0x1d   : > { %780 = vmatprep.subr.bf16.mxu1 %v832_v4  ;;  %p851_p12 = pnand %p850_p11, %p999_p5 }
  0x1e   : > { %341 = vadd.xlane.f32.xlu0 %v340_v6  ;;  %347 = vadd.xlane.f32.xlu1 %v346_v7  ;;  %v738_v6 = vld [vmem:[%s1146_s5] ss:$0 sm:$0xff]  ;;  %p858_p2 = por %p857_p1, %p856_p0 }
  0x1f   : > { %p852_p13 = pneg %p851_p12 }
  0x20   : > { %781 = vmatpush3.bf16.msra.mxu1 %v832_v4  ;;  %v630_v4 = vld [vmem:[%s326_s23 + $0x18] sm:$0xff] }
  0x21   : > { %p859_p3 = pnand %p858_p2, %p852_p13 }
  0xa7   : > { %v339_v8 = vpop.xlane.xlu0 %338  ;;  %v345_v9 = vpop.xlane.xlu1 %344 }
  0xa8   : > { %v350_v10 = vmul.f32 0.03125, %v339_v8  ;;  %v352_v11 = vmul.f32 0.03125, %v345_v9 }
  0xaa   : > { %v354_v12 = vsub.f32 %v1018_v0, %v350_v10  ;;  %v356_v13 = vsub.f32 %v1020_v1, %v352_v11 }
  0xab   : > { %v342_v14 = vpop.xlane.xlu0 %341  ;;  %v348_v15 = vpop.xlane.xlu1 %347 }
  0xac   : > { %v351_v16 = vmul.f32 0.03125, %v342_v14  ;;  %v353_v17 = vmul.f32 0.03125, %v348_v15  ;;  %v358_v18 = vmul.f32 %v354_v12, %v354_v12  ;;  %v360_v19 = vmul.f32 %v356_v13, %v356_v13 }
  0xae   : > { %v355_v20 = vsub.f32 %v1022_v2, %v351_v16  ;;  %v357_v21 = vsub.f32 %v1028_v5, %v353_v17  ;;  %v362_v22 = vsel %vm336_vm0, %v358_v18, 0.0  ;;  %v368_v23 = vsel %vm336_vm0, %v360_v19, 0.0 }
  0xaf   : > { %363 = vadd.xlane.f32.xlu0 %v362_v22 }
  0xb0   : > { %v359_v24 = vmul.f32 %v355_v20, %v355_v20  ;;  %v361_v25 = vmul.f32 %v357_v21, %v357_v21 }
  0xb2   : > { %v365_v26 = vsel %vm336_vm0, %v359_v24, 0.0  ;;  %v371_v27 = vsel %vm336_vm0, %v361_v25, 0.0 }
  0xb3   : > { %369 = vadd.xlane.f32.xlu0 %v368_v23  ;;  %366 = vadd.xlane.f32.xlu1 %v365_v26 }
  0xb7   : > { %372 = vadd.xlane.f32.xlu1 %v371_v27 }
 0x13c   : > { %v364_v30 = vpop.xlane.xlu0 %363 }
 0x13d   : > { %v374_v31 = vmul.f32 0.03125, %v364_v30 }
 0x13f   : > { %v378_v32 = vadd.f32 1e-05, %v374_v31 }
 0x140   : > { %v367_v33 = vpop.xlane.xlu1 %366  ;;  %v370_v34 = vpop.xlane.xlu0 %369 }
 0x141   : > { %833 = vrsqrt.f32 %v378_v32  ;;  %v375_v35 = vmul.f32 0.03125, %v367_v33  ;;  %v376_v36 = vmul.f32 0.03125, %v370_v34 }
 0x143   : > { %v379_v37 = vadd.f32 1e-05, %v375_v35  ;;  %v380_v38 = vadd.f32 1e-05, %v376_v36 }
 0x144   : > { %v373_v39 = vpop.xlane.xlu1 %372 }
 0x145   : > { %835 = vrsqrt.f32 %v379_v37  ;;  %v377_v40 = vmul.f32 0.03125, %v373_v39 }
 0x146   : > { %837 = vrsqrt.f32 %v380_v38 }
 0x147   : > { %v381_v41 = vadd.f32 1e-05, %v377_v40 }
 0x149   : > { %839 = vrsqrt.f32 %v381_v41 }
 0x14b   : > { %v834_v42 = vpop.eup %833 }
 0x14c   : > { %v386_v43 = vmul.f32 %v834_v42, %v354_v12 }
 0x14e   : > { %v396_v48 = vmul.f32 %v736_v44, %v386_v43 }
 0x14f   : > { %v836_v45 = vpop.eup %835 }
 0x150   : > { %v838_v46 = vpop.eup %837  ;;  %v387_v47 = vmul.f32 %v836_v45, %v355_v20  ;;  %v406_v54 = vadd.f32 %v737_v50, %v396_v48 }
 0x151   : > { %v388_v49 = vmul.f32 %v838_v46, %v356_v13 }
 0x152   : > { %v397_v51 = vmul.f32 %v736_v44, %v387_v47 }
 0x153   : > { %v840_v52 = vpop.eup %839  ;;  %v398_v56 = vmul.f32 %v736_v44, %v388_v49 }
 0x154   : > { %v389_v53 = vmul.f32 %v840_v52, %v357_v21  ;;  %v407_v55 = vadd.f32 %v737_v50, %v397_v51 }
 0x155   : > { %v408_v59 = vadd.f32 %v737_v50, %v398_v56 }
 0x156   : > { %v410_v57 = vpack.c.bf16 %v407_v55, %v406_v54  ;;  %v399_v58 = vmul.f32 %v736_v44, %v389_v53  ;;  %v743_v53 = vld [vmem:[%s1148_s7] ss:$0 sm:$0xff] }
 0x158   : > { %770 = vmatprep.mubr.msk.bf16.mxu0 %vm336_vm0, %v410_v57  ;;  %v409_v60 = vadd.f32 %v737_v50, %v399_v58  ;;  %v629_v57 = vld [vmem:[%s326_s23 + $0x10] sm:$0xff] }
 0x15a   : > { %v411_v61 = vpack.c.bf16 %v409_v60, %v408_v59 }
 0x15c   : > { %771 = vmatmul.mubr.msk.bf16.vlgmr.msra.gmra.mrb[0].mxu0 %vm336_vm0, %v411_v61  ;;  %v627_v61 = vld [vmem:[%s326_s23] sm:$0xff] }
 0x22f   : > { %v772_v7 = vpop.f32.mrb[0].mxu0 }
 0x230   : > { %v484_v8 = vadd.f32 %v772_v7, %v738_v6  ;;  %v475_v9 = vpop.f32.mrb[1].mxu0 }
 0x231   : > { %v476_v10 = vadd.f32 %v738_v6, %v475_v9  ;;  %v773_v11 = vpop.f32.mrb[2].mxu0  ;;  %v628_v9 = vld [vmem:[%s326_s23 + $0x8] sm:$0xff] }
 0x232   : > { %v496_v12 = vmul.f32 0.044715, %v484_v8  ;;  %v487_v13 = vadd.f32 %v773_v11, %v738_v6  ;;  %v478_v14 = vpop.f32.mrb[3].mxu0  ;;  %v492_v41 = vmul.f32 0.5, %v484_v8 }
 0x233   : > { %v494_v15 = vmul.f32 0.044715, %v476_v10  ;;  %v479_v16 = vadd.f32 %v738_v6, %v478_v14  ;;  %v490_v44 = vmul.f32 0.5, %v476_v10 }
 0x234   : > { %v500_v17 = vmul.f32 %v496_v12, %v484_v8  ;;  %v497_v18 = vmul.f32 0.044715, %v487_v13  ;;  %v493_v42 = vmul.f32 0.5, %v487_v13 }
 0x235   : > { %v498_v19 = vmul.f32 %v494_v15, %v476_v10  ;;  %v495_v20 = vmul.f32 0.044715, %v479_v16  ;;  %v491_v45 = vmul.f32 0.5, %v479_v16 }
 0x236   : > { %v504_v21 = vmul.f32 %v500_v17, %v484_v8  ;;  %v501_v22 = vmul.f32 %v497_v18, %v487_v13 }
 0x237   : > { %v499_v23 = vmul.f32 %v495_v20, %v479_v16  ;;  %v502_v24 = vmul.f32 %v498_v19, %v476_v10 }
 0x238   : > { %v508_v25 = vadd.f32 %v504_v21, %v484_v8  ;;  %v505_v26 = vmul.f32 %v501_v22, %v487_v13 }
 0x239   : > { %v503_v27 = vmul.f32 %v499_v23, %v479_v16  ;;  %v506_v28 = vadd.f32 %v502_v24, %v476_v10 }
 0x23a   : > { %v512_v29 = vmul.f32 0.7978846, %v508_v25  ;;  %v509_v30 = vadd.f32 %v505_v26, %v487_v13 }
 0x23b   : > { %v507_v31 = vadd.f32 %v503_v27, %v479_v16  ;;  %v510_v32 = vmul.f32 0.7978846, %v506_v28 }
 0x23c   : > { %841 = vtanh.f32 %v512_v29  ;;  %v513_v33 = vmul.f32 0.7978846, %v509_v30 }
 0x23d   : > { %v511_v34 = vmul.f32 0.7978846, %v507_v31  ;;  %843 = vtanh.f32 %v510_v32 }
 0x23e   : > { %845 = vtanh.f32 %v513_v33 }
 0x23f   : > { %847 = vtanh.f32 %v511_v34 }
 0x246   : > { %v842_v35 = vpop.eup %841 }
 0x247   : > { %v844_v36 = vpop.eup %843  ;;  %v520_v37 = vadd.f32 1.0, %v842_v35 }
 0x248   : > { %v846_v38 = vpop.eup %845  ;;  %v518_v39 = vadd.f32 1.0, %v844_v36 }
 0x249   : > { %v848_v40 = vpop.eup %847  ;;  %v521_v43 = vadd.f32 1.0, %v846_v38  ;;  %v524_v47 = vmul.f32 %v520_v37, %v492_v41 }
 0x24a   : > { %v519_v46 = vadd.f32 1.0, %v848_v40  ;;  %v522_v49 = vmul.f32 %v518_v39, %v490_v44 }
 0x24b   : > { %v525_v48 = vmul.f32 %v521_v43, %v493_v42 }
 0x24c   : > { %v523_v50 = vmul.f32 %v519_v46, %v491_v45 }
 0x24d   : > { %v527_v51 = vpack.c.bf16 %v525_v48, %v524_v47 }
 0x24e   : > { %v526_v52 = vpack.c.bf16 %v523_v50, %v522_v49 }
 0x250   : > { %782 = vmatprep.mubr.msk.bf16.mxu1 %vm567_vm1, %v526_v52 }
 0x251   : > { %783 = vmatmul.mubr.msk.bf16.vlgmr.msra.gmra.mrb[0].mxu1 %vm567_vm1, %v527_v51 }
 0x324   : > { %v784_v54 = vpop.f32.mrb[0].mxu1 }
 0x325   : > { %v617_v55 = vadd.f32 %v784_v54, %v743_v53  ;;  %v608_v56 = vpop.f32.mrb[1].mxu1 }
 0x326   : > { %v609_v58 = vadd.f32 %v743_v53, %v608_v56  ;;  %v785_v59 = vpop.f32.mrb[2].mxu1 }
 0x327   : > { %v625_v60 = vadd.f32 %v617_v55, %v1020_v1  ;;  %v620_v62 = vadd.f32 %v785_v59, %v743_v53  ;;  %v611_v63 = vpop.f32.mrb[3].mxu1 }
 0x328   : > { %v623_v3 = vadd.f32 %v609_v58, %v1018_v0  ;;  %v612_v6 = vadd.f32 %v743_v53, %v611_v63 }
 0x329   : > { %v633_v7 = vadd.f32 %v629_v57, %v625_v60  ;;  %v626_v8 = vadd.f32 %v620_v62, %v1028_v5 }
 0x32a   : > { %v631_v10 = vadd.f32 %v627_v61, %v623_v3  ;;  %v624_v11 = vadd.f32 %v612_v6, %v1022_v2 }
 0x32b   : > { %637 = vst.msk [vmem:[%s315_s18 + $0x10] sm:$0xff] %vm336_vm0, %v633_v7  ;;  %v634_v1 = vadd.f32 %v630_v4, %v626_v8 }
 0x32c   : > { %635 = vst.msk [vmem:[%s315_s18] sm:$0xff] %vm336_vm0, %v631_v10  ;;  %v632_v0 = vadd.f32 %v628_v9, %v624_v11 }
 0x32d   : > { %638 = vst.msk [vmem:[%s315_s18 + $0x18] sm:$0xff] %vm336_vm0, %v634_v1 }
 0x32e   : > { %636 = vst.msk [vmem:[%s315_s18 + $0x8] sm:$0xff] %vm336_vm0, %v632_v0 }
 0x32f   : > { %862 = shalt.err (!%p859_p3)
}
 0x330   : > { %s863_s13 = scalar_lea.hbm %s1091_s12, 512  ;;  %s867_s17 = scalar_lea.hbm %s1149_s8, 2048 }
 0x331   : > { %p864_p4 = scmp.ne.s32.totalorder %s1091_s12, %s863_s13  ;;  %p868_p9 = scmp.lt.u32.totalorder %s1091_s12, %s1149_s8 }
 0x332   : > { %p869_p10 = scmp.lt.u32.totalorder %s867_s17, %s863_s13  ;;  %p871_p12 = scmp.lt.u32.totalorder %s863_s13, %s1091_s12 }
 0x333   : > { %p865_p7 = pnand %p864_p4, %p999_p5 }
 0x334   : > { %p870_p11 = por %p869_p10, %p868_p9 }
 0x335   : > { %p866_p8 = pneg %p865_p7 }
 0x336   : > { %p872_p13 = por %p871_p12, %p870_p11 }
 0x338   : > { %p873_p0 = pnand %p872_p13, %p866_p8 }
 0x33a   : > { %876 = shalt.err (!%p873_p0)
}
 0x33b   : > { %s914_s10 = smov 128   ;;  %s915_s19 = smov 8  }
 0x33c   : > { %786 = dma.vmem_to_hbm [thread:$0]  (%p999_p5), %s1093_s25, 512, %s1091_s12, %s1100_s9, %s914_s10, %s914_s10, %s915_s19  }
 0x33d PF: > { %p792_p1 = scmp.ge.s32.totalorder %s911_s30, 2  ;;  %s668_s20 = sand.u32 1, %s899_s27  }
 0x33e   : > { %s669_s21 = scalar_lea.sflag [#allocation3], %s668_s20 }
 0x33f   : > { %p789_p2 = pnand %p792_p1, %p1003_p6 }
 0x341   : > { %894 = dma.done.wait (!%p789_p2), %s669_s21, 512  }
 0x342   : > { %896 = vsyncadd (!%p789_p2), %s669_s21, 4294966784  ;;  %p18_p3 = scmp.ge.s32.totalorder %s986_s11, 6   ;;  %s1152_s27 = smov %s903_s28 }
 0x343   : > { %s1153_s28 = smov %s907_s29  ;;  %s1154_s29 = smov %s997_s14 }
 0x344   : > { %s1155_s30 = smov %s986_s11  ;;  %20 = sbr.rel (!%p18_p3) target bundleno = 3 (0x3), region = 90 }
 0x34b   :  { %674 = vsyncpa [#allocation3], 1 }
 0x34c   :  { %676 = vsyncpa [#allocation3 + $0x1], 1 }

// kernel: basic_layer_forward.13
= control target key start
LH: loop header
LB: loop body
LE: loop exit
PB: predicated region body
PF: predicated region fallthrough
CT: control target
= control target key end

     0   :  { %s849_s27 = smov 0   ;;  %s938_s0 = inlined_call_operand.vmem [shape: f32[128,32], index: 0, kind: input, shape index: {}]   ;;  %s939_s1 = inlined_call_operand.vmem [shape: f32[128,32], index: 1, kind: input, shape index: {}]   ;;  %s940_s2 = inlined_call_operand.vmem [shape: f32[1,32], index: 2, kind: input, shape index: {}]   ;;  %s941_s3 = inlined_call_operand.vmem [shape: f32[1,32], index: 3, kind: input, shape index: {}]   ;;  %s942_s4 = inlined_call_operand.vmem [shape: bf16[32,64], index: 4, kind: input, shape index: {}]   ;;  %s943_s5 = inlined_call_operand.vmem [shape: f32[1,64], index: 5, kind: input, shape index: {}]   ;;  %s944_s6 = inlined_call_operand.vmem [shape: bf16[64,32], index: 6, kind: input, shape index: {}]   ;;  %s945_s7 = inlined_call_operand.vmem [shape: f32[1,32], index: 7, kind: input, shape index: {}]   ;;  %s946_s8 = inlined_call_operand.vmem [shape: f32[128,32], index: 8, kind: output, shape index: {}]  }
   0x1 LB: > { %s709_s28 = sadd.s32 4294967295, %s802_s27   ;;  %p713_p0 = scmp.ge.s32.totalorder %s802_s27, 1  ;;  %s802_s27 = sphi %s849_s27, %s18_s27  }
   0x2   : > { %p274_p1 = scmp.lt.s32.totalorder %s802_s27, 5 }
   0x4   : > { %p275_p2 = pnand %p713_p0, %p274_p1 }
   0x5   : > { %s714_s29 = sshll.u32 (!%p275_p2), %s709_s28, 2  ;;  %vm338_vm0 = vcmask (!%p275_p2), 261120   ;;  %v774_v28 = vld [vmem:[%s942_s4] sm:$0xff] (!%p275_p2)   ;;  %v775_v29 = vld [vmem:[%s942_s4 + $0x8] sm:$0xff] (!%p275_p2)   ;;  %vm569_vm1 = vcmask (!%p275_p2), 523264  }
   0x6   : > { %278 = sbr.rel (%p275_p2) target bundleno = 807 (0x327), region = 52  ;;  %p314_p3 = scmp.lt.s32.totalorder (!%p275_p2), %s714_s29, 15  ;;  %746 = vmatprep.subr.bf16.mxu0 (!%p275_p2), %v774_v28  ;;  %v720_v44 = vld [vmem:[%s940_s2] ss:$0 sm:$0xff] (!%p275_p2)  ;;  %v777_v63 = vld [vmem:[%s944_s6 + $0x8] sm:$0xff] (!%p275_p2)  }
   0x7   : > { %747 = vmatpush3.bf16.msra.mxu0 (!%p275_p2), %v774_v28  ;;  %v721_v50 = vld [vmem:[%s941_s3] ss:$0 sm:$0xff] (!%p275_p2) }
   0x8   : > { %748 = vmatprep.subr.bf16.mxu0 (!%p275_p2), %v775_v29  ;;  %v776_v62 = vld [vmem:[%s944_s6] sm:$0xff] (!%p275_p2)  }
   0x9   : > { %754 = vmatprep.subr.bf16.mxu1 (!%p275_p2), %v776_v62 }
   0xa   : > { %755 = vmatpush3.bf16.msra.mxu1 (!%p275_p2), %v776_v62 }
   0xb   : > { %749 = vmatpush3.bf16.msra.mxu0 (!%p275_p2), %v775_v29  ;;  %756 = vmatprep.subr.bf16.mxu1 (!%p275_p2), %v777_v63 }
   0xd   : > { %s948_s29 = smov (!%p314_p3, %s714_s29), 15 }
   0xe   : > { %s857_s30 = sshll.u32 %s948_s29, 3  ;;  %757 = vmatpush3.bf16.msra.mxu1 %v777_v63 }
   0xf   : > { %s317_s11 = scalar_lea.vmem %s938_s0, %s857_s30  ;;  %s323_s14 = scalar_lea.vmem %s939_s1, %s857_s30 }
  0x10   : > { %v863_v0 = vld [vmem:[%s317_s11] sm:$0xff]  ;;  %v865_v1 = vld [vmem:[%s317_s11 + $0x10] sm:$0xff]  ;;  %v867_v2 = vld [vmem:[%s317_s11 + $0x8] sm:$0xff]  ;;  %s329_s17 = scalar_lea.vmem %s946_s8, %s857_s30 }
  0x11   : > { %v339_v3 = vsel %vm338_vm0, %v863_v0, 0.0  ;;  %v345_v4 = vsel %vm338_vm0, %v865_v1, 0.0  ;;  %v873_v5 = vld [vmem:[%s317_s11 + $0x18] sm:$0xff]  ;;  %v342_v6 = vsel %vm338_vm0, %v867_v2, 0.0 }
  0x12   : > { %340 = vadd.xlane.f32.xlu0 %v339_v3  ;;  %346 = vadd.xlane.f32.xlu1 %v345_v4  ;;  %v348_v7 = vsel %vm338_vm0, %v873_v5, 0.0  ;;  %v778_v3 = vld [vmem:[%s944_s6 + $0x10] sm:$0xff]   ;;  %v779_v4 = vld [vmem:[%s944_s6 + $0x18] sm:$0xff]  }
  0x13   : > { %758 = vmatprep.subr.bf16.mxu1 %v778_v3 }
  0x14   : > { %759 = vmatpush3.bf16.msra.mxu1 %v778_v3 }
  0x15   : > { %760 = vmatprep.subr.bf16.mxu1 %v779_v4 }
  0x16   : > { %343 = vadd.xlane.f32.xlu0 %v342_v6  ;;  %349 = vadd.xlane.f32.xlu1 %v348_v7  ;;  %v722_v6 = vld [vmem:[%s943_s5] ss:$0 sm:$0xff] }
  0x18   : > { %761 = vmatpush3.bf16.msra.mxu1 %v779_v4  ;;  %v632_v4 = vld [vmem:[%s323_s14 + $0x18] sm:$0xff] }
  0x9f   : > { %v341_v8 = vpop.xlane.xlu0 %340  ;;  %v347_v9 = vpop.xlane.xlu1 %346 }
  0xa0   : > { %v352_v10 = vmul.f32 0.03125, %v341_v8  ;;  %v354_v11 = vmul.f32 0.03125, %v347_v9 }
  0xa2   : > { %v356_v12 = vsub.f32 %v863_v0, %v352_v10  ;;  %v358_v13 = vsub.f32 %v865_v1, %v354_v11 }
  0xa3   : > { %v344_v14 = vpop.xlane.xlu0 %343  ;;  %v350_v15 = vpop.xlane.xlu1 %349 }
  0xa4   : > { %v353_v16 = vmul.f32 0.03125, %v344_v14  ;;  %v355_v17 = vmul.f32 0.03125, %v350_v15  ;;  %v360_v18 = vmul.f32 %v356_v12, %v356_v12  ;;  %v362_v19 = vmul.f32 %v358_v13, %v358_v13 }
  0xa6   : > { %v357_v20 = vsub.f32 %v867_v2, %v353_v16  ;;  %v359_v21 = vsub.f32 %v873_v5, %v355_v17  ;;  %v364_v22 = vsel %vm338_vm0, %v360_v18, 0.0  ;;  %v370_v23 = vsel %vm338_vm0, %v362_v19, 0.0 }
  0xa7   : > { %365 = vadd.xlane.f32.xlu0 %v364_v22 }
  0xa8   : > { %v361_v24 = vmul.f32 %v357_v20, %v357_v20  ;;  %v363_v25 = vmul.f32 %v359_v21, %v359_v21 }
  0xaa   : > { %v367_v26 = vsel %vm338_vm0, %v361_v24, 0.0  ;;  %v373_v27 = vsel %vm338_vm0, %v363_v25, 0.0 }
  0xab   : > { %371 = vadd.xlane.f32.xlu0 %v370_v23  ;;  %368 = vadd.xlane.f32.xlu1 %v367_v26 }
  0xaf   : > { %374 = vadd.xlane.f32.xlu1 %v373_v27 }
 0x134   : > { %v366_v30 = vpop.xlane.xlu0 %365 }
 0x135   : > { %v376_v31 = vmul.f32 0.03125, %v366_v30 }
 0x137   : > { %v380_v32 = vadd.f32 1e-05, %v376_v31 }
 0x138   : > { %v369_v33 = vpop.xlane.xlu1 %368  ;;  %v372_v34 = vpop.xlane.xlu0 %371 }
 0x139   : > { %780 = vrsqrt.f32 %v380_v32  ;;  %v377_v35 = vmul.f32 0.03125, %v369_v33  ;;  %v378_v36 = vmul.f32 0.03125, %v372_v34 }
 0x13b   : > { %v381_v37 = vadd.f32 1e-05, %v377_v35  ;;  %v382_v38 = vadd.f32 1e-05, %v378_v36 }
 0x13c   : > { %v375_v39 = vpop.xlane.xlu1 %374 }
 0x13d   : > { %782 = vrsqrt.f32 %v381_v37  ;;  %v379_v40 = vmul.f32 0.03125, %v375_v39 }
 0x13e   : > { %784 = vrsqrt.f32 %v382_v38 }
 0x13f   : > { %v383_v41 = vadd.f32 1e-05, %v379_v40 }
 0x141   : > { %786 = vrsqrt.f32 %v383_v41 }
 0x143   : > { %v781_v42 = vpop.eup %780 }
 0x144   : > { %v388_v43 = vmul.f32 %v781_v42, %v356_v12 }
 0x146   : > { %v398_v48 = vmul.f32 %v720_v44, %v388_v43 }
 0x147   : > { %v783_v45 = vpop.eup %782 }
 0x148   : > { %v785_v46 = vpop.eup %784  ;;  %v389_v47 = vmul.f32 %v783_v45, %v357_v20  ;;  %v408_v54 = vadd.f32 %v721_v50, %v398_v48 }
 0x149   : > { %v390_v49 = vmul.f32 %v785_v46, %v358_v13 }
 0x14a   : > { %v399_v51 = vmul.f32 %v720_v44, %v389_v47 }
 0x14b   : > { %v787_v52 = vpop.eup %786  ;;  %v400_v56 = vmul.f32 %v720_v44, %v390_v49 }
 0x14c   : > { %v391_v53 = vmul.f32 %v787_v52, %v359_v21  ;;  %v409_v55 = vadd.f32 %v721_v50, %v399_v51 }
 0x14d   : > { %v410_v59 = vadd.f32 %v721_v50, %v400_v56 }
 0x14e   : > { %v412_v57 = vpack.c.bf16 %v409_v55, %v408_v54  ;;  %v401_v58 = vmul.f32 %v720_v44, %v391_v53  ;;  %v727_v53 = vld [vmem:[%s945_s7] ss:$0 sm:$0xff] }
 0x150   : > { %750 = vmatprep.mubr.msk.bf16.mxu0 %vm338_vm0, %v412_v57  ;;  %v411_v60 = vadd.f32 %v721_v50, %v401_v58  ;;  %v631_v57 = vld [vmem:[%s323_s14 + $0x10] sm:$0xff] }
 0x152   : > { %v413_v61 = vpack.c.bf16 %v411_v60, %v410_v59 }
 0x154   : > { %751 = vmatmul.mubr.msk.bf16.vlgmr.msra.gmra.mrb[0].mxu0 %vm338_vm0, %v413_v61  ;;  %v629_v61 = vld [vmem:[%s323_s14] sm:$0xff] }
 0x227   : > { %v752_v7 = vpop.f32.mrb[0].mxu0 }
 0x228   : > { %v486_v8 = vadd.f32 %v752_v7, %v722_v6  ;;  %v477_v9 = vpop.f32.mrb[1].mxu0 }
 0x229   : > { %v478_v10 = vadd.f32 %v722_v6, %v477_v9  ;;  %v753_v11 = vpop.f32.mrb[2].mxu0  ;;  %v630_v9 = vld [vmem:[%s323_s14 + $0x8] sm:$0xff] }
 0x22a   : > { %v498_v12 = vmul.f32 0.044715, %v486_v8  ;;  %v489_v13 = vadd.f32 %v753_v11, %v722_v6  ;;  %v480_v14 = vpop.f32.mrb[3].mxu0  ;;  %v494_v41 = vmul.f32 0.5, %v486_v8 }
 0x22b   : > { %v496_v15 = vmul.f32 0.044715, %v478_v10  ;;  %v481_v16 = vadd.f32 %v722_v6, %v480_v14  ;;  %v492_v44 = vmul.f32 0.5, %v478_v10 }
 0x22c   : > { %v502_v17 = vmul.f32 %v498_v12, %v486_v8  ;;  %v499_v18 = vmul.f32 0.044715, %v489_v13  ;;  %v495_v42 = vmul.f32 0.5, %v489_v13 }
 0x22d   : > { %v500_v19 = vmul.f32 %v496_v15, %v478_v10  ;;  %v497_v20 = vmul.f32 0.044715, %v481_v16  ;;  %v493_v45 = vmul.f32 0.5, %v481_v16 }
 0x22e   : > { %v506_v21 = vmul.f32 %v502_v17, %v486_v8  ;;  %v503_v22 = vmul.f32 %v499_v18, %v489_v13 }
 0x22f   : > { %v501_v23 = vmul.f32 %v497_v20, %v481_v16  ;;  %v504_v24 = vmul.f32 %v500_v19, %v478_v10 }
 0x230   : > { %v510_v25 = vadd.f32 %v506_v21, %v486_v8  ;;  %v507_v26 = vmul.f32 %v503_v22, %v489_v13 }
 0x231   : > { %v505_v27 = vmul.f32 %v501_v23, %v481_v16  ;;  %v508_v28 = vadd.f32 %v504_v24, %v478_v10 }
 0x232   : > { %v514_v29 = vmul.f32 0.7978846, %v510_v25  ;;  %v511_v30 = vadd.f32 %v507_v26, %v489_v13 }
 0x233   : > { %v509_v31 = vadd.f32 %v505_v27, %v481_v16  ;;  %v512_v32 = vmul.f32 0.7978846, %v508_v28 }
 0x234   : > { %788 = vtanh.f32 %v514_v29  ;;  %v515_v33 = vmul.f32 0.7978846, %v511_v30 }
 0x235   : > { %v513_v34 = vmul.f32 0.7978846, %v509_v31  ;;  %790 = vtanh.f32 %v512_v32 }
 0x236   : > { %792 = vtanh.f32 %v515_v33 }
 0x237   : > { %794 = vtanh.f32 %v513_v34 }
 0x23e   : > { %v789_v35 = vpop.eup %788 }
 0x23f   : > { %v791_v36 = vpop.eup %790  ;;  %v522_v37 = vadd.f32 1.0, %v789_v35 }
 0x240   : > { %v793_v38 = vpop.eup %792  ;;  %v520_v39 = vadd.f32 1.0, %v791_v36 }
 0x241   : > { %v795_v40 = vpop.eup %794  ;;  %v523_v43 = vadd.f32 1.0, %v793_v38  ;;  %v526_v47 = vmul.f32 %v522_v37, %v494_v41 }
 0x242   : > { %v521_v46 = vadd.f32 1.0, %v795_v40  ;;  %v524_v49 = vmul.f32 %v520_v39, %v492_v44 }
 0x243   : > { %v527_v48 = vmul.f32 %v523_v43, %v495_v42 }
 0x244   : > { %v525_v50 = vmul.f32 %v521_v46, %v493_v45 }
 0x245   : > { %v529_v51 = vpack.c.bf16 %v527_v48, %v526_v47 }
 0x246   : > { %v528_v52 = vpack.c.bf16 %v525_v50, %v524_v49 }
 0x248   : > { %762 = vmatprep.mubr.msk.bf16.mxu1 %vm569_vm1, %v528_v52 }
 0x249   : > { %763 = vmatmul.mubr.msk.bf16.vlgmr.msra.gmra.mrb[0].mxu1 %vm569_vm1, %v529_v51 }
 0x31c   : > { %v764_v54 = vpop.f32.mrb[0].mxu1 }
 0x31d   : > { %v619_v55 = vadd.f32 %v764_v54, %v727_v53  ;;  %v610_v56 = vpop.f32.mrb[1].mxu1 }
 0x31e   : > { %v611_v58 = vadd.f32 %v727_v53, %v610_v56  ;;  %v765_v59 = vpop.f32.mrb[2].mxu1 }
 0x31f   : > { %v627_v60 = vadd.f32 %v619_v55, %v865_v1  ;;  %v622_v62 = vadd.f32 %v765_v59, %v727_v53  ;;  %v613_v63 = vpop.f32.mrb[3].mxu1 }
 0x320   : > { %v625_v3 = vadd.f32 %v611_v58, %v863_v0  ;;  %v614_v6 = vadd.f32 %v727_v53, %v613_v63 }
 0x321   : > { %v635_v7 = vadd.f32 %v631_v57, %v627_v60  ;;  %v628_v8 = vadd.f32 %v622_v62, %v873_v5 }
 0x322   : > { %v633_v10 = vadd.f32 %v629_v61, %v625_v3  ;;  %v626_v11 = vadd.f32 %v614_v6, %v867_v2 }
 0x323   : > { %639 = vst.msk [vmem:[%s329_s17 + $0x10] sm:$0xff] %vm338_vm0, %v635_v7  ;;  %v636_v1 = vadd.f32 %v632_v4, %v628_v8 }
 0x324   : > { %637 = vst.msk [vmem:[%s329_s17] sm:$0xff] %vm338_vm0, %v633_v10  ;;  %v634_v12 = vadd.f32 %v630_v9, %v626_v11 }
 0x325   : > { %640 = vst.msk [vmem:[%s329_s17 + $0x18] sm:$0xff] %vm338_vm0, %v636_v1 }
 0x326   : > { %638 = vst.msk [vmem:[%s329_s17 + $0x8] sm:$0xff] %vm338_vm0, %v634_v12 }
 0x327 PF: > { %s18_s27 = sadd.s32 1, %s802_s27  }
 0x328   : > { %p15_p4 = scmp.ge.s32.totalorder %s18_s27, 6  }
 0x32a   :  { %17 = sbr.rel (!%p15_p4) target bundleno = 1 (0x1), region = 85 }

// kernel: basic_layer_forward.12
= control target key start
LH: loop header
LB: loop body
LE: loop exit
PB: predicated region body
PF: predicated region fallthrough
CT: control target
= control target key end

     0   :  { %s1710_s21 = smov 0   ;;  %s2052_s0 = inlined_call_operand.vmem [shape: f32[2,64,32], index: 0, kind: input, shape index: {}]   ;;  %s2053_s1 = inlined_call_operand.vmem [shape: f32[2,64,32], index: 1, kind: input, shape index: {}]   ;;  %s2054_s2 = inlined_call_operand.vmem [shape: f32[1,32], index: 2, kind: input, shape index: {}]   ;;  %s2055_s3 = inlined_call_operand.vmem [shape: f32[1,32], index: 3, kind: input, shape index: {}]   ;;  %s2056_s4 = inlined_call_operand.vmem [shape: f32[1,32], index: 4, kind: input, shape index: {}]   ;;  %s2057_s5 = inlined_call_operand.vmem [shape: f32[1,32], index: 5, kind: input, shape index: {}]   ;;  %s2058_s6 = inlined_call_operand.vmem [shape: bf16[32,32], index: 6, kind: input, shape index: {}]   ;;  %s2059_s7 = inlined_call_operand.vmem [shape: f32[1,32], index: 7, kind: input, shape index: {}]   ;;  %s2060_s8 = inlined_call_operand.vmem [shape: bf16[32,64], index: 8, kind: input, shape index: {}]   ;;  %s2061_s9 = inlined_call_operand.vmem [shape: f32[1,64], index: 9, kind: input, shape index: {}]   ;;  %s2062_s10 = inlined_call_operand.vmem [shape: bf16[32,32], index: 10, kind: input, shape index: {}]   ;;  %s2063_s11 = inlined_call_operand.vmem [shape: f32[1,32], index: 11, kind: input, shape index: {}]   ;;  %s2064_s12 = inlined_call_operand.vmem [shape: f32[2,64,32], index: 12, kind: output, shape index: {}]  }
   0x1 LB: > { %s1399_s22 = sadd.s32 4294967295, %s1642_s21   ;;  %p1403_p0 = scmp.ge.s32.totalorder %s1642_s21, 1  ;;  %s1642_s21 = sphi %s1710_s21, %s22_s21  }
   0x2   : > { %p372_p1 = scmp.lt.s32.totalorder %s1642_s21, 3 }
   0x4   : > { %p373_p2 = pnand %p1403_p0, %p372_p1 }
   0x5   : > { %p419_p3 = scmp.lt.s32.totalorder (!%p373_p2), %s1399_s22, 1  ;;  %vm453_vm0 = vcmask (!%p373_p2), 261120   ;;  %vm1026_vm1 = vcmask (!%p373_p2), 523264   ;;  %s1644_s17 = smov (!%p373_p2), 96  }
   0x6   : > { %376 = sbr.rel (%p373_p2) target bundleno = 1630 (0x65e), region = 68 }
   0xd   : > { %s2066_s22 = smov (!%p419_p3, %s1399_s22), 1 }
   0xe   : > { %s1718_s23 = sshll.u32 %s2066_s22, 6 }
   0xf   : > { %s428_s26 = scalar_lea.vmem %s2053_s1, %s1718_s23  ;;  %s1738_s29 = scalar_lea.vmem %s2052_s0, %s1718_s23 }
  0x10   : > { %v443_v0 = vld [vmem:[%s428_s26] sm:$0xff]  ;;  %v445_v1 = vld [vmem:[%s428_s26 + $0x10] sm:$0xff]  ;;  %v444_v2 = vld [vmem:[%s428_s26 + $0x8] sm:$0xff]  ;;  %s2023_s28 = scalar_lea.vmem %s2064_s12, %s1718_s23 }
  0x11   : > { %v589_v3 = vsel %vm453_vm0, %v443_v0, 0.0  ;;  %v595_v4 = vsel %vm453_vm0, %v445_v1, 0.0  ;;  %v446_v5 = vld [vmem:[%s428_s26 + $0x18] sm:$0xff]  ;;  %v592_v6 = vsel %vm453_vm0, %v444_v2, 0.0  ;;  %v447_v8 = vld [vmem:[%s428_s26 + $0x20] sm:$0xff]  ;;  %v448_v9 = vld [vmem:[%s428_s26 + $0x28] sm:$0xff] }
  0x12   : > { %590 = vadd.xlane.f32.xlu0 %v589_v3  ;;  %596 = vadd.xlane.f32.xlu1 %v595_v4  ;;  %v598_v7 = vsel %vm453_vm0, %v446_v5, 0.0  ;;  %v601_v10 = vsel %vm453_vm0, %v447_v8, 0.0  ;;  %v604_v11 = vsel %vm453_vm0, %v448_v9, 0.0  ;;  %v1730_v12 = vld [vmem:[%s428_s26 + $0x30] sm:$0xff]  ;;  %v1732_v13 = vld [vmem:[%s428_s26 + $0x38] sm:$0xff]  ;;  %v1745_v16 = vld [vmem:[%s1738_s29] sm:$0xff] }
  0x13   : > { %v607_v14 = vsel %vm453_vm0, %v1730_v12, 0.0  ;;  %v610_v15 = vsel %vm453_vm0, %v1732_v13, 0.0  ;;  %v1748_v17 = vld [vmem:[%s1738_s29 + $0x8] sm:$0xff]  ;;  %v454_v18 = vsel %vm453_vm0, %v1745_v16, 0.0  ;;  %v1755_v20 = vld [vmem:[%s1738_s29 + $0x10] sm:$0xff]  ;;  %v1758_v21 = vld [vmem:[%s1738_s29 + $0x18] sm:$0xff] }
  0x14   : > { %v457_v19 = vsel %vm453_vm0, %v1748_v17, 0.0  ;;  %v460_v22 = vsel %vm453_vm0, %v1755_v20, 0.0  ;;  %v463_v23 = vsel %vm453_vm0, %v1758_v21, 0.0  ;;  %v1765_v24 = vld [vmem:[%s1738_s29 + $0x20] sm:$0xff]  ;;  %v1768_v25 = vld [vmem:[%s1738_s29 + $0x28] sm:$0xff]  ;;  %v1775_v28 = vld [vmem:[%s1738_s29 + $0x30] sm:$0xff] }
  0x15   : > { %v466_v26 = vsel %vm453_vm0, %v1765_v24, 0.0  ;;  %v469_v27 = vsel %vm453_vm0, %v1768_v25, 0.0  ;;  %v1778_v29 = vld [vmem:[%s1738_s29 + $0x38] sm:$0xff]  ;;  %v472_v30 = vsel %vm453_vm0, %v1775_v28, 0.0 }
  0x16   : > { %593 = vadd.xlane.f32.xlu0 %v592_v6  ;;  %599 = vadd.xlane.f32.xlu1 %v598_v7  ;;  %v475_v31 = vsel %vm453_vm0, %v1778_v29, 0.0 }
  0x1a   : > { %602 = vadd.xlane.f32.xlu0 %v601_v10  ;;  %605 = vadd.xlane.f32.xlu1 %v604_v11 }
  0x1e   : > { %608 = vadd.xlane.f32.xlu0 %v607_v14  ;;  %611 = vadd.xlane.f32.xlu1 %v610_v15 }
  0x22   : > { %455 = vadd.xlane.f32.xlu0 %v454_v18  ;;  %458 = vadd.xlane.f32.xlu1 %v457_v19 }
  0x26   : > { %461 = vadd.xlane.f32.xlu0 %v460_v22  ;;  %464 = vadd.xlane.f32.xlu1 %v463_v23 }
  0x2a   : > { %467 = vadd.xlane.f32.xlu0 %v466_v26  ;;  %470 = vadd.xlane.f32.xlu1 %v469_v27 }
  0x2e   : > { %473 = vadd.xlane.f32.xlu0 %v472_v30  ;;  %476 = vadd.xlane.f32.xlu1 %v475_v31 }
  0x9f   : > { %v591_v32 = vpop.xlane.xlu0 %590  ;;  %v597_v33 = vpop.xlane.xlu1 %596 }
  0xa0   : > { %v613_v34 = vmul.f32 0.03125, %v591_v32  ;;  %v615_v35 = vmul.f32 0.03125, %v597_v33 }
  0xa2   : > { %v1784_v36 = vsub.f32 %v443_v0, %v613_v34  ;;  %v1786_v37 = vsub.f32 %v445_v1, %v615_v35 }
  0xa3   : > { %v594_v38 = vpop.xlane.xlu0 %593  ;;  %v600_v39 = vpop.xlane.xlu1 %599 }
  0xa4   : > { %v614_v40 = vmul.f32 0.03125, %v594_v38  ;;  %v616_v41 = vmul.f32 0.03125, %v600_v39  ;;  %v629_v42 = vmul.f32 %v1784_v36, %v1784_v36  ;;  %v631_v43 = vmul.f32 %v1786_v37, %v1786_v37 }
  0xa6   : > { %v1792_v44 = vsub.f32 %v444_v2, %v614_v40  ;;  %v1794_v45 = vsub.f32 %v446_v5, %v616_v41  ;;  %v637_v46 = vsel %vm453_vm0, %v629_v42, 0.0  ;;  %v643_v49 = vsel %vm453_vm0, %v631_v43, 0.0 }
  0xa7   : > { %v603_v47 = vpop.xlane.xlu0 %602  ;;  %638 = vadd.xlane.f32.xlu0 %v637_v46  ;;  %v606_v48 = vpop.xlane.xlu1 %605 }
  0xa8   : > { %v617_v50 = vmul.f32 0.03125, %v603_v47  ;;  %v618_v51 = vmul.f32 0.03125, %v606_v48  ;;  %v630_v52 = vmul.f32 %v1792_v44, %v1792_v44  ;;  %v632_v53 = vmul.f32 %v1794_v45, %v1794_v45 }
  0xaa   : > { %v1802_v54 = vsub.f32 %v447_v8, %v617_v50  ;;  %v1804_v55 = vsub.f32 %v448_v9, %v618_v51  ;;  %v640_v56 = vsel %vm453_vm0, %v630_v52, 0.0  ;;  %v646_v59 = vsel %vm453_vm0, %v632_v53, 0.0 }
  0xab   : > { %v609_v57 = vpop.xlane.xlu0 %608  ;;  %641 = vadd.xlane.f32.xlu1 %v640_v56  ;;  %644 = vadd.xlane.f32.xlu0 %v643_v49  ;;  %v612_v58 = vpop.xlane.xlu1 %611 }
  0xac   : > { %v619_v60 = vmul.f32 0.03125, %v609_v57  ;;  %v620_v61 = vmul.f32 0.03125, %v612_v58  ;;  %v633_v62 = vmul.f32 %v1802_v54, %v1802_v54  ;;  %v634_v63 = vmul.f32 %v1804_v55, %v1804_v55 }
  0xae   : > { %v1813_v0 = vsub.f32 %v1730_v12, %v619_v60  ;;  %v1816_v1 = vsub.f32 %v1732_v13, %v620_v61  ;;  %v649_v2 = vsel %vm453_vm0, %v633_v62, 0.0  ;;  %v652_v4 = vsel %vm453_vm0, %v634_v63, 0.0  ;;  %v1564_v60 = vld [vmem:[%s2060_s8 + $0x8] sm:$0xff]   ;;  %v1565_v61 = vld [vmem:[%s2058_s6] sm:$0xff]  }
  0xaf   : > { %647 = vadd.xlane.f32.xlu1 %v646_v59  ;;  %650 = vadd.xlane.f32.xlu0 %v649_v2  ;;  %v456_v3 = vpop.xlane.xlu0 %455  ;;  %v459_v5 = vpop.xlane.xlu1 %458  ;;  %v1563_v59 = vld [vmem:[%s2060_s8] sm:$0xff]   ;;  %v1566_v62 = vld [vmem:[%s2058_s6 + $0x8] sm:$0xff]  }
  0xb0   : > { %v479_v6 = vmul.f32 0.03125, %v456_v3  ;;  %v480_v7 = vmul.f32 0.03125, %v459_v5  ;;  %v635_v8 = vmul.f32 %v1813_v0, %v1813_v0  ;;  %v636_v9 = vmul.f32 %v1816_v1, %v1816_v1  ;;  %1494 = vmatprep.subr.bf16.mxu1 %v1563_v59  ;;  %1482 = vmatprep.subr.bf16.mxu0 %v1565_v61 }
  0xb1   : > { %1495 = vmatpush3.bf16.msra.mxu1 %v1563_v59  ;;  %1483 = vmatpush3.bf16.msra.mxu0 %v1565_v61 }
  0xb2   : > { %v1825_v10 = vsub.f32 %v1745_v16, %v479_v6  ;;  %v1828_v11 = vsub.f32 %v1748_v17, %v480_v7  ;;  %v655_v12 = vsel %vm453_vm0, %v635_v8, 0.0  ;;  %v658_v14 = vsel %vm453_vm0, %v636_v9, 0.0  ;;  %1496 = vmatprep.subr.bf16.mxu1 %v1564_v60  ;;  %1484 = vmatprep.subr.bf16.mxu0 %v1566_v62 }
  0xb3   : > { %653 = vadd.xlane.f32.xlu1 %v652_v4  ;;  %656 = vadd.xlane.f32.xlu0 %v655_v12  ;;  %v462_v13 = vpop.xlane.xlu0 %461  ;;  %v465_v15 = vpop.xlane.xlu1 %464 }
  0xb4   : > { %v481_v18 = vmul.f32 0.03125, %v462_v13  ;;  %v482_v19 = vmul.f32 0.03125, %v465_v15  ;;  %v495_v22 = vmul.f32 %v1825_v10, %v1825_v10  ;;  %v496_v23 = vmul.f32 %v1828_v11, %v1828_v11 }
  0xb5   : > { %1497 = vmatpush3.bf16.msra.mxu1 %v1564_v60  ;;  %1485 = vmatpush3.bf16.msra.mxu0 %v1566_v62 }
  0xb6   : > { %v1837_v26 = vsub.f32 %v1755_v20, %v481_v18  ;;  %v1840_v17 = vsub.f32 %v1758_v21, %v482_v19  ;;  %v503_v27 = vsel %vm453_vm0, %v495_v22, 0.0  ;;  %v506_v31 = vsel %vm453_vm0, %v496_v23, 0.0 }
  0xb7   : > { %659 = vadd.xlane.f32.xlu1 %v658_v14  ;;  %504 = vadd.xlane.f32.xlu0 %v503_v27  ;;  %v468_v30 = vpop.xlane.xlu0 %467  ;;  %v471_v32 = vpop.xlane.xlu1 %470 }
  0xb8   : > { %v483_v33 = vmul.f32 0.03125, %v468_v30  ;;  %v484_v34 = vmul.f32 0.03125, %v471_v32  ;;  %v497_v35 = vmul.f32 %v1837_v26, %v1837_v26  ;;  %v498_v38 = vmul.f32 %v1840_v17, %v1840_v17 }
  0xba   : > { %v1849_v39 = vsub.f32 %v1765_v24, %v483_v33  ;;  %v1852_v40 = vsub.f32 %v1768_v25, %v484_v34  ;;  %v509_v41 = vsel %vm453_vm0, %v497_v35, 0.0  ;;  %v512_v43 = vsel %vm453_vm0, %v498_v38, 0.0 }
  0xbb   : > { %507 = vadd.xlane.f32.xlu1 %v506_v31  ;;  %510 = vadd.xlane.f32.xlu0 %v509_v41  ;;  %v474_v42 = vpop.xlane.xlu0 %473  ;;  %v477_v46 = vpop.xlane.xlu1 %476 }
  0xbc   : > { %v485_v47 = vmul.f32 0.03125, %v474_v42  ;;  %v486_v48 = vmul.f32 0.03125, %v477_v46  ;;  %v499_v49 = vmul.f32 %v1849_v39, %v1849_v39  ;;  %v500_v24 = vmul.f32 %v1852_v40, %v1852_v40 }
  0xbe   : > { %v1861_v50 = vsub.f32 %v1775_v28, %v485_v47  ;;  %v1864_v25 = vsub.f32 %v1778_v29, %v486_v48  ;;  %v515_v51 = vsel %vm453_vm0, %v499_v49, 0.0  ;;  %v518_v52 = vsel %vm453_vm0, %v500_v24, 0.0 }
  0xbf   : > { %513 = vadd.xlane.f32.xlu1 %v512_v43  ;;  %516 = vadd.xlane.f32.xlu0 %v515_v51  ;;  %v1890_v43 = vld [vmem:[%s2056_s4] ss:$0 sm:$0xff] }
  0xc0   : > { %v501_v53 = vmul.f32 %v1861_v50, %v1861_v50  ;;  %v502_v56 = vmul.f32 %v1864_v25, %v1864_v25 }
  0xc2   : > { %v521_v57 = vsel %vm453_vm0, %v501_v53, 0.0  ;;  %v524_v58 = vsel %vm453_vm0, %v502_v56, 0.0 }
  0xc3   : > { %519 = vadd.xlane.f32.xlu1 %v518_v52  ;;  %522 = vadd.xlane.f32.xlu0 %v521_v57 }
  0xc7   : > { %525 = vadd.xlane.f32.xlu1 %v524_v58  ;;  %v1413_v58 = vld [vmem:[%s2057_s5] ss:$0 sm:$0xff] }
 0x134   : > { %v639_v63 = vpop.xlane.xlu0 %638 }
 0x135   : > { %v661_v2 = vmul.f32 0.03125, %v639_v63 }
 0x137   : > { %v669_v3 = vadd.f32 1e-05, %v661_v2 }
 0x138   : > { %v642_v4 = vpop.xlane.xlu1 %641  ;;  %v645_v5 = vpop.xlane.xlu0 %644 }
 0x139   : > { %1569 = vrsqrt.f32 %v669_v3  ;;  %v662_v6 = vmul.f32 0.03125, %v642_v4  ;;  %v663_v7 = vmul.f32 0.03125, %v645_v5 }
 0x13b   : > { %v670_v8 = vadd.f32 1e-05, %v662_v6  ;;  %v671_v9 = vadd.f32 1e-05, %v663_v7 }
 0x13c   : > { %v648_v12 = vpop.xlane.xlu1 %647  ;;  %v651_v13 = vpop.xlane.xlu0 %650 }
 0x13d   : > { %1571 = vrsqrt.f32 %v670_v8  ;;  %v664_v14 = vmul.f32 0.03125, %v648_v12  ;;  %v665_v15 = vmul.f32 0.03125, %v651_v13 }
 0x13e   : > { %1573 = vrsqrt.f32 %v671_v9 }
 0x13f   : > { %v672_v18 = vadd.f32 1e-05, %v664_v14  ;;  %v673_v19 = vadd.f32 1e-05, %v665_v15 }
 0x140   : > { %v654_v22 = vpop.xlane.xlu1 %653  ;;  %v657_v23 = vpop.xlane.xlu0 %656 }
 0x141   : > { %1575 = vrsqrt.f32 %v672_v18  ;;  %v666_v27 = vmul.f32 0.03125, %v654_v22  ;;  %v667_v30 = vmul.f32 0.03125, %v657_v23 }
 0x142   : > { %1577 = vrsqrt.f32 %v673_v19 }
 0x143   : > { %v1570_v31 = vpop.eup %1569  ;;  %v674_v32 = vadd.f32 1e-05, %v666_v27  ;;  %v675_v33 = vadd.f32 1e-05, %v667_v30 }
 0x144   : > { %v660_v34 = vpop.xlane.xlu1 %659  ;;  %v505_v35 = vpop.xlane.xlu0 %504  ;;  %v685_v38 = vmul.f32 %v1570_v31, %v1784_v36 }
 0x145   : > { %1579 = vrsqrt.f32 %v674_v32  ;;  %v668_v41 = vmul.f32 0.03125, %v660_v34  ;;  %v527_v42 = vmul.f32 0.03125, %v505_v35 }
 0x146   : > { %1581 = vrsqrt.f32 %v675_v33  ;;  %v699_v53 = vmul.f32 %v1890_v43, %v685_v38 }
 0x147   : > { %v1572_v46 = vpop.eup %1571  ;;  %v676_v47 = vadd.f32 1e-05, %v668_v41  ;;  %v535_v48 = vadd.f32 1e-05, %v527_v42 }
 0x148   : > { %v1574_v49 = vpop.eup %1573  ;;  %v508_v24 = vpop.xlane.xlu1 %507  ;;  %v686_v52 = vmul.f32 %v1572_v46, %v1792_v44  ;;  %v713_v4 = vadd.f32 %v1413_v58, %v699_v53 }
 0x149   : > { %v511_v51 = vpop.xlane.xlu0 %510  ;;  %v687_v36 = vmul.f32 %v1574_v49, %v1786_v37  ;;  %1583 = vrsqrt.f32 %v676_v47  ;;  %v528_v56 = vmul.f32 0.03125, %v508_v24  ;;  %v1410_v24 = vld [vmem:[%s2054_s2] ss:$0 sm:$0xff] }
 0x14a   : > { %v529_v57 = vmul.f32 0.03125, %v511_v51  ;;  %1585 = vrsqrt.f32 %v535_v48  ;;  %v700_v59 = vmul.f32 %v1890_v43, %v686_v52 }
 0x14b   : > { %v1576_v60 = vpop.eup %1575  ;;  %v536_v61 = vadd.f32 1e-05, %v528_v56  ;;  %v701_v5 = vmul.f32 %v1890_v43, %v687_v36 }
 0x14c   : > { %v537_v62 = vadd.f32 1e-05, %v529_v57  ;;  %v1578_v63 = vpop.eup %1577  ;;  %v688_v44 = vmul.f32 %v1576_v60, %v1794_v45  ;;  %v514_v2 = vpop.xlane.xlu1 %513  ;;  %v714_v37 = vadd.f32 %v1413_v58, %v700_v59 }
 0x14d   : > { %v517_v3 = vpop.xlane.xlu0 %516  ;;  %v689_v6 = vmul.f32 %v1578_v63, %v1802_v54  ;;  %1587 = vrsqrt.f32 %v536_v61  ;;  %v530_v7 = vmul.f32 0.03125, %v514_v2  ;;  %v715_v23 = vadd.f32 %v1413_v58, %v701_v5 }
 0x14e   : > { %v531_v8 = vmul.f32 0.03125, %v517_v3  ;;  %1589 = vrsqrt.f32 %v537_v62  ;;  %v825_v9 = vpack.c.bf16 %v714_v37, %v713_v4  ;;  %v702_v12 = vmul.f32 %v1890_v43, %v688_v44 }
 0x14f   : > { %v1580_v13 = vpop.eup %1579  ;;  %v538_v14 = vadd.f32 1e-05, %v530_v7  ;;  %v703_v54 = vmul.f32 %v1890_v43, %v689_v6 }
 0x150   : > { %v539_v15 = vadd.f32 1e-05, %v531_v8  ;;  %v1582_v18 = vpop.eup %1581  ;;  %v690_v45 = vmul.f32 %v1580_v13, %v1804_v55  ;;  %v520_v19 = vpop.xlane.xlu1 %519  ;;  %1498 = vmatprep.mubr.msk.bf16.mxu1 %vm453_vm0, %v825_v9  ;;  %v716_v27 = vadd.f32 %v1413_v58, %v702_v12 }
 0x151   : > { %v523_v22 = vpop.xlane.xlu0 %522  ;;  %v691_v30 = vmul.f32 %v1582_v18, %v1813_v0  ;;  %1591 = vrsqrt.f32 %v538_v14  ;;  %v532_v31 = vmul.f32 0.03125, %v520_v19  ;;  %v717_v47 = vadd.f32 %v1413_v58, %v703_v54 }
 0x152   : > { %v533_v32 = vmul.f32 0.03125, %v523_v22  ;;  %1593 = vrsqrt.f32 %v539_v15  ;;  %v826_v33 = vpack.c.bf16 %v716_v27, %v715_v23  ;;  %v704_v34 = vmul.f32 %v1890_v43, %v690_v45 }
 0x153   : > { %v1584_v35 = vpop.eup %1583  ;;  %v540_v38 = vadd.f32 1e-05, %v532_v31  ;;  %v705_v0 = vmul.f32 %v1890_v43, %v691_v30  ;;  %v1421_v31 = vld [vmem:[%s2061_s9] ss:$0 sm:$0xff] }
 0x154   : > { %v541_v55 = vadd.f32 1e-05, %v533_v32  ;;  %v1586_v41 = vpop.eup %1585  ;;  %v692_v42 = vmul.f32 %v1584_v35, %v1816_v1  ;;  %v526_v46 = vpop.xlane.xlu1 %525  ;;  %1499 = vmatmul.mubr.msk.bf16.vlgmr.msra.gmra.mrb[0].mxu1 %vm453_vm0, %v826_v33  ;;  %v718_v48 = vadd.f32 %v1413_v58, %v704_v34 }
 0x155   : > { %1595 = vrsqrt.f32 %v540_v38  ;;  %v534_v49 = vmul.f32 0.03125, %v526_v46  ;;  %v551_v51 = vmul.f32 %v1586_v41, %v1825_v10  ;;  %v719_v57 = vadd.f32 %v1413_v58, %v705_v0  ;;  %v1411_v10 = vld [vmem:[%s2055_s3] ss:$0 sm:$0xff] }
 0x156   : > { %1597 = vrsqrt.f32 %v541_v55  ;;  %v827_v52 = vpack.c.bf16 %v718_v48, %v717_v47  ;;  %v706_v53 = vmul.f32 %v1890_v43, %v692_v42 }
 0x157   : > { %v1588_v1 = vpop.eup %1587  ;;  %v542_v36 = vadd.f32 1e-05, %v534_v49  ;;  %v565_v61 = vmul.f32 %v1410_v24, %v551_v51 }
 0x158   : > { %v1590_v56 = vpop.eup %1589  ;;  %1502 = vmatprep.mubr.msk.bf16.mxu1 %vm453_vm0, %v827_v52  ;;  %v720_v59 = vadd.f32 %v1413_v58, %v706_v53  ;;  %v552_v60 = vmul.f32 %v1588_v1, %v1828_v11 }
 0x159   : > { %v553_v62 = vmul.f32 %v1590_v56, %v1837_v26  ;;  %1599 = vrsqrt.f32 %v542_v36  ;;  %v579_v4 = vadd.f32 %v1411_v10, %v565_v61 }
 0x15a   : > { %v828_v63 = vpack.c.bf16 %v720_v59, %v719_v57  ;;  %v566_v44 = vmul.f32 %v1410_v24, %v552_v60  ;;  %v1414_v57 = vld [vmem:[%s2059_s7] ss:$0 sm:$0xff] }
 0x15b   : > { %v1592_v43 = vpop.eup %1591  ;;  %v567_v37 = vmul.f32 %v1410_v24, %v553_v62 }
 0x15c   : > { %v1594_v2 = vpop.eup %1593  ;;  %v554_v3 = vmul.f32 %v1592_v43, %v1840_v17  ;;  %1503 = vmatmul.mubr.msk.bf16.gmra.mrb[4].mxu1 %vm453_vm0, %v828_v63  ;;  %v580_v58 = vadd.f32 %v1411_v10, %v566_v44 }
 0x15d   : > { %v555_v11 = vmul.f32 %v1594_v2, %v1849_v39  ;;  %v581_v9 = vadd.f32 %v1411_v10, %v567_v37 }
 0x15e   : > { %v721_v5 = vpack.c.bf16 %v580_v58, %v579_v4  ;;  %v568_v26 = vmul.f32 %v1410_v24, %v554_v3 }
 0x15f   : > { %v1596_v6 = vpop.eup %1595  ;;  %v569_v13 = vmul.f32 %v1410_v24, %v555_v11 }
 0x160   : > { %v1598_v7 = vpop.eup %1597  ;;  %v556_v8 = vmul.f32 %v1596_v6, %v1852_v40  ;;  %1486 = vmatprep.mubr.msk.bf16.mxu0 %vm453_vm0, %v721_v5  ;;  %v582_v12 = vadd.f32 %v1411_v10, %v568_v26 }
 0x161   : > { %v557_v17 = vmul.f32 %v1598_v7, %v1861_v50  ;;  %v583_v39 = vadd.f32 %v1411_v10, %v569_v13 }
 0x162   : > { %v722_v14 = vpack.c.bf16 %v582_v12, %v581_v9  ;;  %v570_v15 = vmul.f32 %v1410_v24, %v556_v8 }
 0x163   : > { %v1600_v18 = vpop.eup %1599  ;;  %v571_v22 = vmul.f32 %v1410_v24, %v557_v17 }
 0x164   : > { %v558_v45 = vmul.f32 %v1600_v18, %v1864_v25  ;;  %1487 = vmatmul.mubr.msk.bf16.vlgmr.msra.gmra.mrb[0].mxu0 %vm453_vm0, %v722_v14  ;;  %v584_v19 = vadd.f32 %v1411_v10, %v570_v15 }
 0x165   : > { %v585_v40 = vadd.f32 %v1411_v10, %v571_v22 }
 0x166   : > { %v723_v23 = vpack.c.bf16 %v584_v19, %v583_v39  ;;  %v572_v27 = vmul.f32 %v1410_v24, %v558_v45 }
 0x168   : > { %1490 = vmatprep.mubr.msk.bf16.mxu0 %vm453_vm0, %v723_v23  ;;  %v586_v54 = vadd.f32 %v1411_v10, %v572_v27 }
 0x16a   : > { %v724_v30 = vpack.c.bf16 %v586_v54, %v585_v40 }
 0x16c   : > { %1491 = vmatmul.mubr.msk.bf16.gmra.mrb[4].mxu0 %vm453_vm0, %v724_v30 }
 0x227   : > { %v1500_v50 = vpop.f32.mrb[0].mxu1 }
 0x228   : > { %v898_v25 = vpop.f32.mrb[1].mxu1  ;;  %v907_v33 = vadd.f32 %v1500_v50, %v1421_v31 }
 0x229   : > { %v1501_v32 = vpop.f32.mrb[2].mxu1  ;;  %v899_v38 = vadd.f32 %v1421_v31, %v898_v25 }
 0x22a   : > { %v910_v34 = vadd.f32 %v1501_v32, %v1421_v31  ;;  %v901_v35 = vpop.f32.mrb[3].mxu1 }
 0x22b   : > { %v902_v55 = vadd.f32 %v1421_v31, %v901_v35 }
 0x22c   : > { %v1935_v41 = vpack.c.bf16 %v910_v34, %v907_v33 }
 0x22d   : > { %v1937_v42 = vpack.c.bf16 %v902_v55, %v899_v38 }
 0x22e   : > { %v953_v59 = vsel %vm453_vm0, %v1935_v41, 0 }
 0x22f   : > { %v1504_v46 = vpop.f32.mrb[4].mxu1  ;;  %1550 = vmatprep.subr.msk.bf16.mxu0 %vm453_vm0, %v1937_v42  ;;  %v950_v47 = vsel %vm453_vm0, %v1937_v42, 0 }
 0x230   : > { %v914_v48 = vpop.f32.mrb[5].mxu1  ;;  %1507 = vmatpush3.bf16.xpose.msra.mxu0 %v950_v47  ;;  %v923_v49 = vadd.f32 %v1504_v46, %v1421_v31 }
 0x231   : > { %v1505_v0 = vpop.f32.mrb[6].mxu1  ;;  %1551 = vmatprep.subr.msk.bf16.mxu0 %vm453_vm0, %v1935_v41  ;;  %v915_v52 = vadd.f32 %v1421_v31, %v914_v48 }
 0x232   : > { %v926_v24 = vadd.f32 %v1505_v0, %v1421_v31  ;;  %v917_v51 = vpop.f32.mrb[7].mxu1 }
 0x233   : > { %v918_v53 = vadd.f32 %v1421_v31, %v917_v51 }
 0x234   : > { %v1945_v1 = vpack.c.bf16 %v926_v24, %v923_v49 }
 0x235   : > { %v1947_v36 = vpack.c.bf16 %v918_v53, %v915_v52 }
 0x236   : > { %v959_v13 = vsel %vm453_vm0, %v1945_v1, 0 }
 0x237   : > { %v1488_v56 = vpop.f32.mrb[0].mxu0  ;;  %v956_v58 = vsel %vm453_vm0, %v1947_v36, 0 }
 0x238   : > { %v794_v60 = vpop.f32.mrb[1].mxu0  ;;  %1509 = vmatpush3.bf16.xpose.msra.mxu0 %v953_v59  ;;  %v803_v62 = vadd.f32 %v1488_v56, %v1414_v57 }
 0x239   : > { %v1489_v61 = vpop.f32.mrb[2].mxu0  ;;  %1552 = vmatprep.subr.msk.bf16.mxu0 %vm453_vm0, %v1947_v36  ;;  %v795_v44 = vadd.f32 %v1414_v57, %v794_v60 }
 0x23a   : > { %v806_v10 = vadd.f32 %v1489_v61, %v1414_v57  ;;  %v797_v63 = vpop.f32.mrb[3].mxu0 }
 0x23b   : > { %v798_v43 = vadd.f32 %v1414_v57, %v797_v63 }
 0x23c   : > { %v930_v2 = vpack.c.bf16 %v806_v10, %v803_v62 }
 0x23d   : > { %v929_v3 = vpack.c.bf16 %v798_v43, %v795_v44 }
 0x23f   : > { %v1492_v4 = vpop.f32.mrb[4].mxu0  ;;  %1514 = vmatprep.mubr.msk.bf16.mxu0 %vm453_vm0, %v929_v3 }
 0x240   : > { %v810_v37 = vpop.f32.mrb[5].mxu0  ;;  %1511 = vmatpush3.bf16.xpose.msra.mxu0 %v956_v58  ;;  %v819_v5 = vadd.f32 %v1492_v4, %v1414_v57 }
 0x241   : > { %v1493_v11 = vpop.f32.mrb[6].mxu0  ;;  %1553 = vmatprep.subr.msk.bf16.mxu0 %vm453_vm0, %v1945_v1  ;;  %v811_v7 = vadd.f32 %v1414_v57, %v810_v37 }
 0x242   : > { %v822_v26 = vadd.f32 %v1493_v11, %v1414_v57  ;;  %v813_v6 = vpop.f32.mrb[7].mxu0 }
 0x243   : > { %v814_v8 = vadd.f32 %v1414_v57, %v813_v6 }
 0x244   : > { %v932_v9 = vpack.c.bf16 %v822_v26, %v819_v5 }
 0x245   : > { %v931_v12 = vpack.c.bf16 %v814_v8, %v811_v7 }
 0x248   : > { %1513 = vmatpush3.bf16.xpose.msra.mxu0 %v959_v13 }
 0x24f   : > { %1515 = vmatmul.mubr.msk.bf16.vlgmr.msra.gmra.mrb[8].mxu0 %vm453_vm0, %v930_v2 }
 0x250   : > { %1518 = vmatprep.mubr.msk.bf16.mxu0 %vm453_vm0, %v931_v12 }
 0x257   : > { %1519 = vmatmul.mubr.msk.bf16.gmra.mrb[12].mxu0 %vm453_vm0, %v932_v9 }
 0x322   : > { %v1516_v17 = vpop.f32.mrb[8].mxu0 }
 0x323   : > { %v995_v14 = vpop.f32.mrb[9].mxu0  ;;  %v1033_v19 = vsel %vm1026_vm1, %v1516_v17, -inf }
 0x324   : > { %v1517_v15 = vpop.f32.mrb[10].mxu0  ;;  %v1027_v18 = vsel %vm1026_vm1, %v995_v14, -inf }
 0x325   : > { %1028 = vmax.xlane.f32.xlu0 %v1027_v18  ;;  %v998_v45 = vpop.f32.mrb[11].mxu0  ;;  %v1036_v23 = vsel %vm1026_vm1, %v1517_v15, -inf }
 0x326   : > { %v1030_v39 = vsel %vm1026_vm1, %v998_v45, -inf }
 0x327   : > { %1031 = vmax.xlane.f32.xlu1 %v1030_v39 }
 0x329   : > { %1034 = vmax.xlane.f32.xlu0 %v1033_v19 }
 0x32a   : > { %v1520_v22 = vpop.f32.mrb[12].mxu0 }
 0x32b   : > { %1037 = vmax.xlane.f32.xlu1 %v1036_v23  ;;  %v1011_v27 = vpop.f32.mrb[13].mxu0  ;;  %v1045_v31 = vsel %vm1026_vm1, %v1520_v22, -inf }
 0x32c   : > { %v1521_v40 = vpop.f32.mrb[14].mxu0  ;;  %v1039_v54 = vsel %vm1026_vm1, %v1011_v27, -inf }
 0x32d   : > { %1040 = vmax.xlane.f32.xlu0 %v1039_v54  ;;  %v1014_v30 = vpop.f32.mrb[15].mxu0  ;;  %v1048_v25 = vsel %vm1026_vm1, %v1521_v40, -inf }
 0x32e   : > { %v1042_v50 = vsel %vm1026_vm1, %v1014_v30, -inf }
 0x32f   : > { %1043 = vmax.xlane.f32.xlu1 %v1042_v50 }
 0x331   : > { %1046 = vmax.xlane.f32.xlu0 %v1045_v31 }
 0x333   : > { %1049 = vmax.xlane.f32.xlu1 %v1048_v25 }
 0x3b2   : > { %v1029_v32 = vpop.xlane.xlu0 %1028 }
 0x3b3   : > { %v1051_v33 = vsub.f32 %v995_v14, %v1029_v32  ;;  %v1567_v32 = vld [vmem:[%s2062_s10] sm:$0xff]  }
 0x3b4   : > { %v1032_v34 = vpop.xlane.xlu1 %1031 }
 0x3b5   : > { %v1052_v38 = vsub.f32 %v998_v45, %v1032_v34  ;;  %v1059_v46 = vmul.f32 1.442695, %v1051_v33 }
 0x3b6   : > { %v1035_v35 = vpop.xlane.xlu0 %1034 }
 0x3b7   : > { %v1053_v55 = vsub.f32 %v1516_v17, %v1035_v35  ;;  %v1061_v24 = vmul.f32 1.442695, %v1052_v38  ;;  %v1568_v38 = vld [vmem:[%s2062_s10 + $0x8] sm:$0xff]  }
 0x3b8   : > { %v1038_v47 = vpop.xlane.xlu1 %1037 }
 0x3b9   : > { %v1063_v48 = vmul.f32 1.442695, %v1053_v55  ;;  %v1054_v0 = vsub.f32 %v1517_v15, %v1038_v47 }
 0x3ba   : > { %v1041_v49 = vpop.xlane.xlu0 %1040 }
 0x3bb   : > { %1601 = vpow2.f32 %v1063_v48  ;;  %v1065_v51 = vmul.f32 1.442695, %v1054_v0  ;;  %v1055_v52 = vsub.f32 %v1011_v27, %v1041_v49 }
 0x3bc   : > { %1603 = vpow2.f32 %v1059_v46  ;;  %v1044_v11 = vpop.xlane.xlu1 %1043 }
 0x3bd   : > { %1605 = vpow2.f32 %v1065_v51  ;;  %v1067_v57 = vmul.f32 1.442695, %v1055_v52  ;;  %v1056_v6 = vsub.f32 %v1014_v30, %v1044_v11 }
 0x3be   : > { %v1047_v53 = vpop.xlane.xlu0 %1046  ;;  %1607 = vpow2.f32 %v1061_v24 }
 0x3bf   : > { %v1057_v56 = vsub.f32 %v1520_v22, %v1047_v53  ;;  %v1069_v8 = vmul.f32 1.442695, %v1056_v6 }
 0x3c0   : > { %v1050_v5 = vpop.xlane.xlu1 %1049 }
 0x3c1   : > { %v1071_v59 = vmul.f32 1.442695, %v1057_v56  ;;  %v1058_v26 = vsub.f32 %v1521_v40, %v1050_v5 }
 0x3c3   : > { %1609 = vpow2.f32 %v1071_v59  ;;  %v1073_v7 = vmul.f32 1.442695, %v1058_v26 }
 0x3c4   : > { %1611 = vpow2.f32 %v1067_v57 }
 0x3c5   : > { %v1974_v60 = vpop.eup %1601  ;;  %1613 = vpow2.f32 %v1073_v7 }
 0x3c6   : > { %v1604_v61 = vpop.eup %1603  ;;  %v1081_v62 = vsel %vm1026_vm1, %v1974_v60, 0.0  ;;  %1615 = vpow2.f32 %v1069_v8 }
 0x3c7   : > { %v1978_v10 = vpop.eup %1605  ;;  %1082 = vadd.xlane.f32.xlu0 %v1081_v62  ;;  %v1075_v43 = vsel %vm1026_vm1, %v1604_v61, 0.0 }
 0x3c8   : > { %v1084_v63 = vsel %vm1026_vm1, %v1978_v10, 0.0  ;;  %v1608_v44 = vpop.eup %1607 }
 0x3c9   : > { %1085 = vadd.xlane.f32.xlu1 %v1084_v63  ;;  %v1078_v2 = vsel %vm1026_vm1, %v1608_v44, 0.0 }
 0x3cb   : > { %1076 = vadd.xlane.f32.xlu0 %v1075_v43 }
 0x3cd   : > { %v1984_v3 = vpop.eup %1609  ;;  %1079 = vadd.xlane.f32.xlu1 %v1078_v2 }
 0x3ce   : > { %v1093_v4 = vsel %vm1026_vm1, %v1984_v3, 0.0  ;;  %v1988_v58 = vpop.eup %1611 }
 0x3cf   : > { %1094 = vadd.xlane.f32.xlu0 %v1093_v4  ;;  %v1087_v37 = vsel %vm1026_vm1, %v1988_v58, 0.0  ;;  %v1614_v9 = vpop.eup %1613  ;;  %v1436_v4 = vld [vmem:[%s2063_s11] ss:$0 sm:$0xff] }
 0x3d0   : > { %v1096_v12 = vsel %vm1026_vm1, %v1614_v9, 0.0  ;;  %v1616_v13 = vpop.eup %1615 }
 0x3d1   : > { %v1090_v17 = vsel %vm1026_vm1, %v1616_v13, 0.0 }
 0x3d3   : > { %1088 = vadd.xlane.f32.xlu0 %v1087_v37 }
 0x3de   : > { %1125 = vrot.lane.b32.xlu1 %v1935_v41, %s1644_s17 }
 0x3e2   : > { %1127 = vrot.lane.b32.xlu1 %v1947_v36, %s1644_s17 }
 0x3e9   : > { %1123 = vrot.lane.b32.xlu0 %v1937_v42, %s1644_s17 }
 0x406   : > { %1097 = vadd.xlane.f32.xlu1 %v1096_v12 }
 0x40a   : > { %1091 = vadd.xlane.f32.xlu1 %v1090_v17  ;;  %v1633_v17 = vld [vmem:[%s1738_s29 + $0x8] sm:$0xff] }
 0x41b   : > { %1129 = vrot.lane.b32.xlu1 %v1945_v1, %s1644_s17 }
 0x454   : > { %v1083_v41 = vpop.xlane.xlu0 %1082 }
 0x456   : > { %v1086_v36 = vpop.xlane.xlu1 %1085 }
 0x458   : > { %v1077_v42 = vpop.xlane.xlu0 %1076 }
 0x459   : > { %1617 = vrcp.f32 %v1077_v42 }
 0x45a   : > { %v1080_v14 = vpop.xlane.xlu1 %1079 }
 0x45b   : > { %1619 = vrcp.f32 %v1080_v14 }
 0x45c   : > { %v1095_v15 = vpop.xlane.xlu0 %1094  ;;  %1621 = vrcp.f32 %v1086_v36 }
 0x45d   : > { %1623 = vrcp.f32 %v1083_v41 }
 0x45e   : > { %v1126_v39 = vpop.permute.xlu1 %1125 }
 0x460   : > { %v1089_v18 = vpop.xlane.xlu0 %1088 }
 0x462   : > { %v1128_v54 = vpop.permute.xlu1 %1127 }
 0x463   : > { %v1618_v45 = vpop.eup %1617 }
 0x464   : > { %v1124_v19 = vpop.permute.xlu0 %1123  ;;  %v1107_v23 = vmul.f32 %v1618_v45, %v1604_v61  ;;  %v1634_v45 = vld [vmem:[%s1738_s29 + $0x20] sm:$0xff] }
 0x465   : > { %v1620_v22 = vpop.eup %1619  ;;  %1522 = vmatprep.subr.bf16.mxu1 %v1124_v19 }
 0x466   : > { %1523 = vmatpush3.bf16.msra.mxu1 %v1124_v19  ;;  %v1108_v27 = vmul.f32 %v1620_v22, %v1608_v44  ;;  %v1622_v30 = vpop.eup %1621 }
 0x467   : > { %1524 = vmatprep.subr.bf16.mxu1 %v1126_v39  ;;  %v1624_v31 = vpop.eup %1623  ;;  %v1110_v25 = vmul.f32 %v1622_v30, %v1978_v10 }
 0x468   : > { %v1115_v40 = vpack.c.bf16 %v1108_v27, %v1107_v23  ;;  %v1109_v34 = vmul.f32 %v1624_v31, %v1974_v60  ;;  %v1635_v23 = vld [vmem:[%s1738_s29 + $0x28] sm:$0xff] }
 0x46a   : > { %1525 = vmatpush3.bf16.msra.mxu1 %v1126_v39  ;;  %1530 = vmatprep.mubr.msk.bf16.mxu1 %vm1026_vm1, %v1115_v40  ;;  %v1116_v35 = vpack.c.bf16 %v1110_v25, %v1109_v34 }
 0x46b   : > { %1526 = vmatprep.subr.bf16.mxu1 %v1128_v54 }
 0x46e   : > { %1527 = vmatpush3.bf16.msra.mxu1 %v1128_v54 }
 0x493   : > { %v1098_v1 = vpop.xlane.xlu1 %1097 }
 0x494   : > { %1625 = vrcp.f32 %v1098_v1 }
 0x495   : > { %1627 = vrcp.f32 %v1089_v18 }
 0x496   : > { %1629 = vrcp.f32 %v1095_v15 }
 0x497   : > { %v1092_v50 = vpop.xlane.xlu1 %1091 }
 0x498   : > { %1631 = vrcp.f32 %v1092_v50 }
 0x49b   : > { %v1130_v33 = vpop.permute.xlu1 %1129 }
 0x49c   : > { %1528 = vmatprep.subr.bf16.mxu1 %v1130_v33 }
 0x49d   : > { %1529 = vmatpush3.bf16.msra.mxu1 %v1130_v33 }
 0x49e   : > { %1538 = vmatprep.subr.bf16.mxu1 %v1567_v32  ;;  %v1626_v55 = vpop.eup %1625 }
 0x49f   : > { %v1628_v46 = vpop.eup %1627  ;;  %v1114_v0 = vmul.f32 %v1626_v55, %v1614_v9 }
 0x4a0   : > { %1531 = vmatmul.mubr.msk.bf16.vlgmr.msra.gmra.mrb[8].mxu1 %vm1026_vm1, %v1116_v35  ;;  %v1630_v47 = vpop.eup %1629  ;;  %v1111_v49 = vmul.f32 %v1628_v46, %v1988_v58 }
 0x4a1   : > { %1539 = vmatpush3.bf16.msra.mxu1 %v1567_v32  ;;  %v1113_v51 = vmul.f32 %v1630_v47, %v1984_v3 }
 0x4a2   : > { %v1632_v48 = vpop.eup %1631  ;;  %1540 = vmatprep.subr.bf16.mxu1 %v1568_v38 }
 0x4a3   : > { %v1112_v24 = vmul.f32 %v1632_v48, %v1616_v13  ;;  %v1118_v53 = vpack.c.bf16 %v1114_v0, %v1113_v51 }
 0x4a5   : > { %v1117_v52 = vpack.c.bf16 %v1112_v24, %v1111_v49  ;;  %1541 = vmatpush3.bf16.msra.mxu1 %v1568_v38 }
 0x4a7   : > { %1534 = vmatprep.mubr.msk.bf16.mxu1 %vm1026_vm1, %v1117_v52 }
 0x4a8   : > { %1535 = vmatmul.mubr.msk.bf16.gmra.mrb[12].mxu1 %vm1026_vm1, %v1118_v53 }
 0x573   : > { %v1532_v56 = vpop.f32.mrb[8].mxu1 }
 0x574   : > { %v1181_v57 = vpop.f32.mrb[9].mxu1 }
 0x575   : > { %v1533_v59 = vpop.f32.mrb[10].mxu1 }
 0x576   : > { %v1213_v60 = vpack.c.bf16 %v1533_v59, %v1532_v56  ;;  %v1184_v61 = vpop.f32.mrb[11].mxu1 }
 0x577   : > { %v1212_v62 = vpack.c.bf16 %v1184_v61, %v1181_v57 }
 0x579   : > { %1542 = vmatprep.mubr.msk.bf16.mxu1 %vm453_vm0, %v1212_v62 }
 0x57a   : > { %1543 = vmatmul.mubr.msk.bf16.vlgmr.msra.gmra.mrb[16].mxu1 %vm453_vm0, %v1213_v60 }
 0x57b   : > { %v1536_v10 = vpop.f32.mrb[12].mxu1 }
 0x57c   : > { %v1197_v63 = vpop.f32.mrb[13].mxu1 }
 0x57d   : > { %v1537_v44 = vpop.f32.mrb[14].mxu1 }
 0x57e   : > { %v1215_v43 = vpack.c.bf16 %v1537_v44, %v1536_v10  ;;  %v1200_v2 = vpop.f32.mrb[15].mxu1 }
 0x57f   : > { %v1214_v3 = vpack.c.bf16 %v1200_v2, %v1197_v63 }
 0x581   : > { %1546 = vmatprep.mubr.msk.bf16.mxu1 %vm453_vm0, %v1214_v3 }
 0x582   : > { %1547 = vmatmul.mubr.msk.bf16.gmra.mrb[20].mxu1 %vm453_vm0, %v1215_v43 }
 0x64d   : > { %v1544_v58 = vpop.f32.mrb[16].mxu1 }
 0x64e   : > { %v1294_v37 = vadd.f32 %v1544_v58, %v1436_v4  ;;  %v1285_v11 = vpop.f32.mrb[17].mxu1 }
 0x64f   : > { %v1286_v5 = vadd.f32 %v1436_v4, %v1285_v11  ;;  %v1545_v26 = vpop.f32.mrb[18].mxu1 }
 0x650   : > { %v1318_v6 = vadd.f32 %v1294_v37, %v1755_v20  ;;  %v1297_v7 = vadd.f32 %v1545_v26, %v1436_v4  ;;  %v1288_v8 = vpop.f32.mrb[19].mxu1 }
 0x651   : > { %v1316_v9 = vadd.f32 %v1286_v5, %v1745_v16  ;;  %v1289_v12 = vadd.f32 %v1436_v4, %v1288_v8 }
 0x652   : > { %1326 = vst.msk [vmem:[%s2023_s28 + $0x10] sm:$0xff] %vm453_vm0, %v1318_v6  ;;  %v1319_v13 = vadd.f32 %v1297_v7, %v1758_v21 }
 0x653   : > { %1324 = vst.msk [vmem:[%s2023_s28] sm:$0xff] %vm453_vm0, %v1316_v9  ;;  %v1317_v41 = vadd.f32 %v1633_v17, %v1289_v12 }
 0x654   : > { %1327 = vst.msk [vmem:[%s2023_s28 + $0x18] sm:$0xff] %vm453_vm0, %v1319_v13 }
 0x655   : > { %1325 = vst.msk [vmem:[%s2023_s28 + $0x8] sm:$0xff] %vm453_vm0, %v1317_v41  ;;  %v1548_v20 = vpop.f32.mrb[20].mxu1 }
 0x656   : > { %v1310_v16 = vadd.f32 %v1548_v20, %v1436_v4  ;;  %v1301_v36 = vpop.f32.mrb[21].mxu1 }
 0x657   : > { %v1302_v42 = vadd.f32 %v1436_v4, %v1301_v36  ;;  %v1549_v14 = vpop.f32.mrb[22].mxu1 }
 0x658   : > { %v1322_v21 = vadd.f32 %v1310_v16, %v1775_v28  ;;  %v1313_v15 = vadd.f32 %v1549_v14, %v1436_v4  ;;  %v1304_v18 = vpop.f32.mrb[23].mxu1 }
 0x659   : > { %v1320_v39 = vadd.f32 %v1634_v45, %v1302_v42  ;;  %v1305_v19 = vadd.f32 %v1436_v4, %v1304_v18 }
 0x65a   : > { %1330 = vst.msk [vmem:[%s2023_s28 + $0x30] sm:$0xff] %vm453_vm0, %v1322_v21  ;;  %v1323_v22 = vadd.f32 %v1313_v15, %v1778_v29 }
 0x65b   : > { %1328 = vst.msk [vmem:[%s2023_s28 + $0x20] sm:$0xff] %vm453_vm0, %v1320_v39  ;;  %v1321_v27 = vadd.f32 %v1635_v23, %v1305_v19 }
 0x65c   : > { %1331 = vst.msk [vmem:[%s2023_s28 + $0x38] sm:$0xff] %vm453_vm0, %v1323_v22 }
 0x65d   : > { %1329 = vst.msk [vmem:[%s2023_s28 + $0x28] sm:$0xff] %vm453_vm0, %v1321_v27 }
 0x65e PF: > { %s22_s21 = sadd.s32 1, %s1642_s21  }
 0x65f   : > { %p19_p4 = scmp.ge.s32.totalorder %s22_s21, 4  }
 0x661   :  { %21 = sbr.rel (!%p19_p4) target bundleno = 1 (0x1), region = 101 }

</bundles_post_ra>
